<compile_context>
chip_gen: v7x
topology: tpu7x:2x2x1
jax: 0.10.0
libtpu: 0.0.40
codegen_flags: <defaults>
</compile_context>

<pallas_src>
import functools

import jax
import jax.numpy as jnp
from jax.experimental import pallas as pl
from jax.experimental.pallas import tpu as pltpu


# -----------------------------------------------------------------------------
# Kernel: fused mean / unbiased-var / normalize / affine over the C*T axis.
# Block layout: x tile is (B_tile, CT, HW_tile); the reduction runs along the
# sublane (CT) axis, alpha/beta are (1, CT, 2) and broadcast across lanes/batch.
# -----------------------------------------------------------------------------
def _channel_norm_kernel(x_ref, ab_ref, o_ref, *, inv_n, inv_nm1, eps):
    x = x_ref[...].astype(jnp.float32)                 # (Bt, CT, HWt) f32 working copy
    ab = ab_ref[...].astype(jnp.float32)               # (1, CT, 2)
    alpha = ab[:, :, 0:1]                               # (1, CT, 1)
    beta = ab[:, :, 1:2]                                # (1, CT, 1)

    # One-pass moments over the fused C*T (sublane) axis, accumulated in f32.
    s1 = jnp.sum(x, axis=1, keepdims=True)              # (Bt, 1, HWt)
    s2 = jnp.sum(x * x, axis=1, keepdims=True)          # (Bt, 1, HWt)
    mean = s1 * inv_n
    # Unbiased variance (torch.var default).  Clamp guards f32 cancellation for
    # near-constant pixels; switch back to the two-pass form if inputs can carry
    # very large per-pixel means.
    var = jnp.maximum(s2 - s1 * mean, 0.0) * inv_nm1
    inv_std = jax.lax.rsqrt(var + eps)                   # EUP slot, not a VALU divide
    o_ref[...] = ((x - mean) * inv_std * alpha + beta).astype(o_ref.dtype)


# -----------------------------------------------------------------------------
# Generation-aware VMEM budgeting + tile selection.
# -----------------------------------------------------------------------------
def _vmem_budget_and_limit():
    """(tiling budget, scoped vmem_limit_bytes) chosen per TPU generation."""
    try:
        cap = int(pltpu.get_tpu_info().vmem_capacity_bytes)
    except Exception:
        cap = 64 * 1024 * 1024                # conservative: assume v7x-class VMEM
    if cap > 64 * 1024 * 1024:                # v5e / v6e: 128 MiB physical VMEM
        return 40 * 1024 * 1024, 48 * 1024 * 1024
    # v7x-class: 64 MiB physical, 32 MiB scoped default -> stay well under it.
    return 20 * 1024 * 1024, 30 * 1024 * 1024


def _choose_tiles(B, CT, HW, x_itemsize, budget_bytes):
    """Pick (b_tile, tile_hw, HWp).

    Footprint model per block element: 2 double-buffered copies each of the
    input and output in their native dtype (4 * itemsize) plus ~2 f32 working
    values inside the kernel (8 B).  The (1, CT, 2) alpha/beta block pads to
    128 lanes and is double-buffered.
    """
    per_elem = 4 * x_itemsize + 8
    ab_bytes = 2 * CT * 128 * 4
    avail = max(budget_bytes - ab_bytes, 2 * 1024 * 1024)
    max_lanes = max(avail // (per_elem * CT), 128)

    if HW < 128:
        # Tiny images: full-extent lane dim (BlockSpec full-dim exception);
        # amortize the ~0.35us/step overhead by blocking batches below.
        HWp, tile_hw = HW, HW
    else:
        HWp = ((HW + 127) // 128) * 128       # pad to lane width (wrapper zero-pads)
        tile_hw = 128
        t = 256
        while t <= min(HWp, 1024, max_lanes):  # >1024 lanes: no measured roofline gain
            if HWp % t == 0:
                tile_hw = t
            t += 128
        # v7x megacore: keep >= 2 grid steps when batch alone cannot supply them.
        if B == 1 and HWp == tile_hw and HWp > 128:
            divs = [d for d in range(128, HWp, 128) if HWp % d == 0]
            if divs:
                tile_hw = divs[-1]

    n_hw = HWp // tile_hw
    b_tile = 1
    for d in range(2, B + 1):
        if B % d:
            continue
        if d * CT * tile_hw * per_elem > avail:
            break
        if (B // d) * n_hw >= 2:               # never collapse the grid below 2 steps
            b_tile = d
    return b_tile, tile_hw, HWp


# -----------------------------------------------------------------------------
# Wrapper
# -----------------------------------------------------------------------------
@functools.partial(jax.jit, static_argnames=("eps",))
def channel_norm_forward(x, alpha, beta, eps=1e-5):
    """x: (B, C, T, H, W); alpha/beta: (1, C*T, 1, 1) -> (B, C, T, H, W), x.dtype."""
    B, C, T, H, W = x.shape
    CT = C * T
    HW = H * W
    assert alpha.shape[1] == CT and beta.shape[1] == CT, \
        "alpha/beta channel dim must equal C*T (module uses 768)"

    # Contiguous reshapes only; keep the input's native dtype (no f32 HBM copy).
    x3 = x.reshape(B, CT, HW)
    ab = jnp.concatenate([alpha.reshape(CT, 1), beta.reshape(CT, 1)],
                         axis=1).reshape(1, CT, 2)

    budget, vmem_limit = _vmem_budget_and_limit()
    b_tile, tile_hw, HWp = _choose_tiles(B, CT, HW, x.dtype.itemsize, budget)

    if HWp != HW:
        x3 = jnp.pad(x3, ((0, 0), (0, 0), (0, HWp - HW)))   # zero pad: per-pixel stats stay exact

    grid = (B // b_tile, HWp // tile_hw)

    kernel = functools.partial(
        _channel_norm_kernel,
        inv_n=1.0 / float(CT),
        inv_nm1=1.0 / float(max(CT - 1, 1)),    # torch.var default: unbiased
        eps=float(eps),
    )

    out3 = pl.pallas_call(
        kernel,
        out_shape=jax.ShapeDtypeStruct((B, CT, HWp), x.dtype),
        grid=grid,
        in_specs=[
            pl.BlockSpec((b_tile, CT, tile_hw), lambda b, j: (b, 0, j)),
            pl.BlockSpec((1, CT, 2), lambda b, j: (0, 0, 0)),
        ],
        out_specs=pl.BlockSpec((b_tile, CT, tile_hw), lambda b, j: (b, 0, j)),
        compiler_params=pltpu.CompilerParams(
            dimension_semantics=("parallel", "parallel"),
            vmem_limit_bytes=int(vmem_limit)),
    )(x3, ab)

    if HWp != HW:
        out3 = out3[:, :, :HW]
    return out3.reshape(B, C, T, H, W)


# -----------------------------------------------------------------------------
# Pure-JAX reference mirroring the PyTorch forward verbatim (for checking).
# -----------------------------------------------------------------------------
def reference_forward(x, alpha, beta, eps=1e-5):
    B, C, T, H, W = x.shape
    xr = x.reshape(B, C * T, H, W)
    mean = jnp.mean(xr, axis=1, keepdims=True)
    var = jnp.sum((xr - mean) ** 2, axis=1, keepdims=True) / (C * T - 1)
    xn = (xr - mean) / jnp.sqrt(var + eps)
    xn = xn * alpha + beta
    return xn.reshape(B, C, T, H, W)


if __name__ == "__main__":
    key = jax.random.PRNGKey(0)
    # The module's alpha/beta are sized 768 on the fused C*T axis -> C*T must be 768.
    B, C, T, H, W = 2, 96, 8, 8, 8
    CT = C * T   # = 768

    k0, k1, k2 = jax.random.split(key, 3)
    x = jax.random.normal(k0, (B, C, T, H, W), jnp.float32)
    alpha = 1.0 + 0.1 * jax.random.normal(k1, (1, CT, 1, 1), jnp.float32)
    beta = 0.1 * jax.random.normal(k2, (1, CT, 1, 1), jnp.float32)

    # f32 path
    y = channel_norm_forward(x, alpha, beta)
    jax.block_until_ready(y)
    y_ref = reference_forward(x, alpha, beta)
    assert y.shape == (B, C, T, H, W) and y.dtype == x.dtype
    err = float(jnp.max(jnp.abs(y - y_ref)))
    assert err < 1e-3, f"f32 max abs error {err}"

    # bf16 path (native-dtype I/O: bf16 in -> bf16 out, f32 accumulation in-kernel)
    x_bf = x.astype(jnp.bfloat16)
    y_bf = channel_norm_forward(x_bf, alpha, beta)
    jax.block_until_ready(y_bf)
    assert y_bf.dtype == jnp.bfloat16
    y_bf_ref = reference_forward(x_bf.astype(jnp.float32), alpha, beta)
    err_bf = float(jnp.max(jnp.abs(y_bf.astype(jnp.float32) - y_bf_ref)))
    assert err_bf < 1e-1, f"bf16 max abs error {err_bf}"

    # H*W not a multiple of 128 (exercises lane padding + single-batch grid split)
    xh = jax.random.normal(k0, (1, C, T, 12, 12), jnp.float32)
    yh = channel_norm_forward(xh, alpha, beta)
    jax.block_until_ready(yh)
    yh_ref = reference_forward(xh, alpha, beta)
    err_h = float(jnp.max(jnp.abs(yh - yh_ref)))
    assert err_h < 1e-3, f"padded-HW max abs error {err_h}"

    print("KERNEL_OK")
</pallas_src>

<mosaic_0001>
module attributes {stable_mosaic.version = 11 : i64} {
  func.func @_channel_norm_kernel(%arg0: i32, %arg1: i32, %arg2: memref<1x768x64xf32, #tpu.memory_space<vmem>>, %arg3: memref<1x768x2xf32, #tpu.memory_space<vmem>>, %arg4: memref<1x768x64xf32, #tpu.memory_space<vmem>>) attributes {dimension_semantics = [#tpu.dimension_semantics<parallel>, #tpu.dimension_semantics<parallel>], iteration_bounds = array<i64: 2, 1>, scalar_prefetch = 0 : i64, scratch_operands = 0 : i64, tpu.core_type = #tpu.core_type<tc>, window_params = [{transform_indices = @transform_0, window_bounds = array<i64: 1, 768, 64>}, {pipeline_mode = #tpu.pipeline_mode<synchronous>, transform_indices = @transform_1, window_bounds = array<i64: 1, 768, 2>}, {transform_indices = @transform_2, window_bounds = array<i64: 1, 768, 64>}]} {
    %c0 = arith.constant 0 : index
    %c0_0 = arith.constant 0 : index
    %c0_1 = arith.constant 0 : index
    %0 = vector.load %arg2[%c0, %c0_0, %c0_1] : memref<1x768x64xf32, #tpu.memory_space<vmem>>, vector<1x768x64xf32>
    %c0_2 = arith.constant 0 : index
    %c0_3 = arith.constant 0 : index
    %c0_4 = arith.constant 0 : index
    %1 = vector.load %arg3[%c0_2, %c0_3, %c0_4] : memref<1x768x2xf32, #tpu.memory_space<vmem>>, vector<1x768x2xf32>
    %2 = vector.extract_strided_slice %1 {offsets = [0, 0, 0], sizes = [1, 768, 1], strides = [1, 1, 1]} : vector<1x768x2xf32> to vector<1x768x1xf32>
    %3 = vector.extract_strided_slice %1 {offsets = [0, 0, 1], sizes = [1, 768, 1], strides = [1, 1, 1]} : vector<1x768x2xf32> to vector<1x768x1xf32>
    %cst = arith.constant dense<0.000000e+00> : vector<1x64xf32>
    %4 = vector.multi_reduction <add>, %0, %cst [1] : vector<1x768x64xf32> to vector<1x64xf32>
    %5 = vector.shape_cast %4 : vector<1x64xf32> to vector<1x1x64xf32>
    %6 = arith.mulf %0, %0 : vector<1x768x64xf32>
    %cst_5 = arith.constant dense<0.000000e+00> : vector<1x64xf32>
    %7 = vector.multi_reduction <add>, %6, %cst_5 [1] : vector<1x768x64xf32> to vector<1x64xf32>
    %8 = vector.shape_cast %7 : vector<1x64xf32> to vector<1x1x64xf32>
    %cst_6 = arith.constant 0.00130208337 : f32
    %9 = vector.broadcast %cst_6 : f32 to vector<1x1x64xf32>
    %10 = arith.mulf %5, %9 : vector<1x1x64xf32>
    %11 = arith.mulf %5, %10 : vector<1x1x64xf32>
    %12 = arith.subf %8, %11 : vector<1x1x64xf32>
    %cst_7 = arith.constant 0.000000e+00 : f32
    %13 = vector.broadcast %cst_7 : f32 to vector<1x1x64xf32>
    %14 = arith.maximumf %12, %13 : vector<1x1x64xf32>
    %cst_8 = arith.constant 0.00130378094 : f32
    %15 = vector.broadcast %cst_8 : f32 to vector<1x1x64xf32>
    %16 = arith.mulf %14, %15 : vector<1x1x64xf32>
    %cst_9 = arith.constant 9.99999974E-6 : f32
    %17 = vector.broadcast %cst_9 : f32 to vector<1x1x64xf32>
    %18 = arith.addf %16, %17 : vector<1x1x64xf32>
    %19 = math.rsqrt %18 : vector<1x1x64xf32>
    %20 = vector.broadcast %10 : vector<1x1x64xf32> to vector<1x768x64xf32>
    %21 = arith.subf %0, %20 : vector<1x768x64xf32>
    %22 = vector.broadcast %19 : vector<1x1x64xf32> to vector<1x768x64xf32>
    %23 = arith.mulf %21, %22 : vector<1x768x64xf32>
    %24 = vector.broadcast %2 : vector<1x768x1xf32> to vector<1x768x64xf32>
    %25 = arith.mulf %23, %24 : vector<1x768x64xf32>
    %26 = vector.broadcast %3 : vector<1x768x1xf32> to vector<1x768x64xf32>
    %27 = arith.addf %25, %26 : vector<1x768x64xf32>
    %c0_10 = arith.constant 0 : index
    %c0_11 = arith.constant 0 : index
    %c0_12 = arith.constant 0 : index
    %28 = vector.load %arg4[%c0_10, %c0_11, %c0_12] : memref<1x768x64xf32, #tpu.memory_space<vmem>>, vector<1x768x64xf32>
    tpu.vector_store %arg4[%c0_10, %c0_11, %c0_12], %27 {strides = array<i32>} : memref<1x768x64xf32, #tpu.memory_space<vmem>>, vector<1x768x64xf32>,
    return
  }
  func.func @transform_0(%arg0: i32, %arg1: i32) -> (i32, i32, i32) {
    %c0_i32 = arith.constant 0 : i32
    %c0_i32_0 = arith.constant 0 : i32
    return %arg0, %c0_i32, %arg1 : i32, i32, i32
  }
  func.func @transform_1(%arg0: i32, %arg1: i32) -> (i32, i32, i32) {
    %c0_i32 = arith.constant 0 : i32
    %c0_i32_0 = arith.constant 0 : i32
    %c0_i32_1 = arith.constant 0 : i32
    %c0_i32_2 = arith.constant 0 : i32
    return %c0_i32, %c0_i32_0, %c0_i32_1 : i32, i32, i32
  }
  func.func @transform_2(%arg0: i32, %arg1: i32) -> (i32, i32, i32) {
    %c0_i32 = arith.constant 0 : i32
    %c0_i32_0 = arith.constant 0 : i32
    return %arg0, %c0_i32, %arg1 : i32, i32, i32
  }
}

</mosaic_0001>

<bundles_post_ra>
// kernel: channel_norm_forward.1
= control target key start
LH: loop header
LB: loop body
LE: loop exit
PB: predicated region body
PF: predicated region fallthrough
CT: control target
= control target key end

     0   :  { %s2540_s9 = smov 0   ;;  %s2542_s10 = smov 0   ;;  %s5262_s0 = inlined_call_operand.vmem [shape: f32[2,768,64], index: 0, kind: input, shape index: {}]   ;;  %s5263_s1 = inlined_call_operand.vmem [shape: f32[1,768,2], index: 1, kind: input, shape index: {}]   ;;  %s5264_s2 = inlined_call_operand.vmem [shape: f32[2,768,64], index: 2, kind: output, shape index: {}]  }
   0x1   :  { %s2544_s11 = smov 0  }
   0x2 LB: > { %s24_s12 = sadd.s32 1, %s2517_s10  ;;  %p2296_p0 = scmp.ge.s32.totalorder %s2521_s11, 1  ;;  %s2521_s11 = sphi %s2544_s11, %s12_s11   ;;  %s2517_s10 = sphi %s2542_s10, %s5665_s10   ;;  %s2513_s9 = sphi %s2540_s9, %s5664_s9  }
   0x3   : > { %p26_p1 = scmp.ge.s32.totalorder %s24_s12, 2  ;;  %p131_p2 = scmp.lt.s32.totalorder %s2521_s11, 3 }
   0x5   : > { %s5667_s12 = smov (%p26_p1, %s24_s12), 0  ;;  %p132_p3 = pnand %p2296_p0, %p131_p2 }
   0x7   : > { %135 = sbr.rel (%p132_p3) target bundleno = 544 (0x220), region = 28 }
   0xe   : > { %v273_v0 = vld [vmem:[%s5263_s1 + $0x10] sm:$0xff]  ;;  %v271_v1 = vld [vmem:[%s5263_s1] sm:$0xff]  ;;  %v2523_v2 = vmov 0   ;;  %v274_v3 = vld [vmem:[%s5263_s1 + $0x18] sm:$0xff]  ;;  %p159_p4 = scmp.lt.s32.totalorder %s2513_s9, 1  ;;  %vm367_vm0 = vcmask 523264  }
   0xf   : > { %2329 = vset.pattern.permute.xlu1 %v2523_v2  ;;  %2328 = vset.pattern.permute.xlu0 %v2523_v2  ;;  %v272_v4 = vld [vmem:[%s5263_s1 + $0x8] sm:$0xff]  ;;  %v275_v6 = vld [vmem:[%s5263_s1 + $0x20] sm:$0xff]  ;;  %v278_v7 = vld [vmem:[%s5263_s1 + $0x38] sm:$0xff] }
  0x10   : > { %1069 = vperm.xlu1 %2329, %v273_v0   ;;  %1059 = vperm.xlu0 %2328, %v271_v1   ;;  %v276_v5 = vld [vmem:[%s5263_s1 + $0x28] sm:$0xff]  ;;  %s5669_s9 = smov (!%p159_p4, %s2513_s9), 1  ;;  %v277_v8 = vld [vmem:[%s5263_s1 + $0x30] sm:$0xff]  ;;  %v279_v10 = vld [vmem:[%s5263_s1 + $0x40] sm:$0xff] }
  0x11   : > { %s2301_s29 = smul.u32 768, %s5669_s9  ;;  %v280_v9 = vld [vmem:[%s5263_s1 + $0x48] sm:$0xff]  ;;  %v282_v11 = vld [vmem:[%s5263_s1 + $0x58] sm:$0xff]  ;;  %v281_v12 = vld [vmem:[%s5263_s1 + $0x50] sm:$0xff] }
  0x12   : > { %v284_v19 = vld [vmem:[%s5263_s1 + $0x68] sm:$0xff]  ;;  %v283_v20 = vld [vmem:[%s5263_s1 + $0x60] sm:$0xff]  ;;  %v286_v28 = vld [vmem:[%s5263_s1 + $0x78] sm:$0xff] }
  0x13   : > { %s2596_s8 = scalar_lea.vmem %s5262_s0, %s2301_s29  ;;  %v285_v29 = vld [vmem:[%s5263_s1 + $0x70] sm:$0xff]  ;;  %v288_v36 = vld [vmem:[%s5263_s1 + $0x88] sm:$0xff]  ;;  %v287_v37 = vld [vmem:[%s5263_s1 + $0x80] sm:$0xff]  ;;  %s4782_s30 = scalar_lea.vmem %s5264_s2, %s2301_s29 }
  0x14   : > { %1074 = vperm.xlu1 %2329, %v274_v3   ;;  %1064 = vperm.xlu0 %2328, %v272_v4   ;;  %v2605_v13 = vld [vmem:[%s2596_s8] sm:$0xff]  ;;  %v2608_v14 = vld [vmem:[%s2596_s8 + $0x8] sm:$0xff]  ;;  %v2611_v15 = vld [vmem:[%s2596_s8 + $0x10] sm:$0xff] }
  0x15   : > { %v2614_v16 = vld [vmem:[%s2596_s8 + $0x18] sm:$0xff]  ;;  %v368_v17 = vsel %vm367_vm0, %v2605_v13, 0.0  ;;  %v369_v18 = vsel %vm367_vm0, %v2608_v14, 0.0  ;;  %v2627_v21 = vld [vmem:[%s2596_s8 + $0x20] sm:$0xff]  ;;  %v371_v23 = vsel %vm367_vm0, %v2611_v15, 0.0  ;;  %v2634_v25 = vld [vmem:[%s2596_s8 + $0x28] sm:$0xff] }
  0x16   : > { %v370_v22 = vadd.f32 %v369_v18, %v368_v17  ;;  %v373_v24 = vsel %vm367_vm0, %v2614_v16, 0.0  ;;  %v375_v27 = vsel %vm367_vm0, %v2627_v21, 0.0  ;;  %v2645_v30 = vld [vmem:[%s2596_s8 + $0x30] sm:$0xff]  ;;  %v377_v32 = vsel %vm367_vm0, %v2634_v25, 0.0  ;;  %v2650_v33 = vld [vmem:[%s2596_s8 + $0x38] sm:$0xff]  ;;  %v2661_v38 = vld [vmem:[%s2596_s8 + $0x40] sm:$0xff] }
  0x17   : > { %v379_v35 = vsel %vm367_vm0, %v2645_v30, 0.0  ;;  %v381_v40 = vsel %vm367_vm0, %v2650_v33, 0.0  ;;  %v2666_v41 = vld [vmem:[%s2596_s8 + $0x48] sm:$0xff]  ;;  %v383_v43 = vsel %vm367_vm0, %v2661_v38, 0.0  ;;  %v290_v44 = vld [vmem:[%s5263_s1 + $0x98] sm:$0xff]  ;;  %v289_v45 = vld [vmem:[%s5263_s1 + $0x90] sm:$0xff] }
  0x18   : > { %1084 = vperm.xlu1 %2329, %v276_v5   ;;  %1079 = vperm.xlu0 %2328, %v275_v6   ;;  %v372_v26 = vadd.f32 %v371_v23, %v370_v22  ;;  %v2677_v46 = vld [vmem:[%s2596_s8 + $0x50] sm:$0xff]  ;;  %v385_v48 = vsel %vm367_vm0, %v2666_v41, 0.0  ;;  %v2682_v49 = vld [vmem:[%s2596_s8 + $0x58] sm:$0xff]  ;;  %v292_v52 = vld [vmem:[%s5263_s1 + $0xa8] sm:$0xff] }
  0x19   : > { %v387_v51 = vsel %vm367_vm0, %v2677_v46, 0.0  ;;  %v291_v53 = vld [vmem:[%s5263_s1 + $0xa0] sm:$0xff]  ;;  %v389_v56 = vsel %vm367_vm0, %v2682_v49, 0.0  ;;  %v2698_v57 = vld [vmem:[%s2596_s8 + $0x68] sm:$0xff]  ;;  %v294_v60 = vld [vmem:[%s5263_s1 + $0xb8] sm:$0xff] }
  0x1a   : > { %v374_v31 = vadd.f32 %v373_v24, %v372_v26  ;;  %v2693_v54 = vld [vmem:[%s2596_s8 + $0x60] sm:$0xff]  ;;  %v293_v61 = vld [vmem:[%s5263_s1 + $0xb0] sm:$0xff]  ;;  %v393_v0 = vsel %vm367_vm0, %v2698_v57, 0.0  ;;  %v2714_v1 = vld [vmem:[%s2596_s8 + $0x78] sm:$0xff] }
  0x1b   : > { %v391_v59 = vsel %vm367_vm0, %v2693_v54, 0.0  ;;  %v2709_v62 = vld [vmem:[%s2596_s8 + $0x70] sm:$0xff]  ;;  %v296_v4 = vld [vmem:[%s5263_s1 + $0xc8] sm:$0xff]  ;;  %v295_v5 = vld [vmem:[%s5263_s1 + $0xc0] sm:$0xff] }
  0x1c   : > { %1094 = vperm.xlu1 %2329, %v278_v7   ;;  %1089 = vperm.xlu0 %2328, %v277_v8   ;;  %v376_v34 = vadd.f32 %v375_v27, %v374_v31  ;;  %v395_v3 = vsel %vm367_vm0, %v2709_v62, 0.0  ;;  %v2725_v6 = vld [vmem:[%s2596_s8 + $0x80] sm:$0xff]  ;;  %v397_v8 = vsel %vm367_vm0, %v2714_v1, 0.0  ;;  %v297_v17 = vld [vmem:[%s5263_s1 + $0xd0] sm:$0xff]  ;;  %v2746_v22 = vld [vmem:[%s2596_s8 + $0x98] sm:$0xff] }
  0x1d   : > { %v2741_v18 = vld [vmem:[%s2596_s8 + $0x90] sm:$0xff]  ;;  %v300_v26 = vld [vmem:[%s5263_s1 + $0xe8] sm:$0xff]  ;;  %v299_v27 = vld [vmem:[%s5263_s1 + $0xe0] sm:$0xff]  ;;  %v405_v31 = vsel %vm367_vm0, %v2746_v22, 0.0 }
  0x1e   : > { %v378_v39 = vadd.f32 %v377_v32, %v376_v34  ;;  %v403_v24 = vsel %vm367_vm0, %v2741_v18, 0.0  ;;  %v2762_v32 = vld [vmem:[%s2596_s8 + $0xa8] sm:$0xff] }
  0x20   : > { %1104 = vperm.xlu1 %2329, %v280_v9   ;;  %1099 = vperm.xlu0 %2328, %v279_v10   ;;  %v380_v42 = vadd.f32 %v379_v35, %v378_v39  ;;  %v2730_v9 = vld [vmem:[%s2596_s8 + $0x88] sm:$0xff]  ;;  %v2773_v39 = vld [vmem:[%s2596_s8 + $0xb0] sm:$0xff] }
  0x22   : > { %v382_v47 = vadd.f32 %v381_v40, %v380_v42  ;;  %v409_v42 = vsel %vm367_vm0, %v2762_v32, 0.0 }
  0x24   : > { %1114 = vperm.xlu1 %2329, %v282_v11   ;;  %1109 = vperm.xlu0 %2328, %v281_v12   ;;  %v384_v50 = vadd.f32 %v383_v43, %v382_v47  ;;  %v399_v11 = vsel %vm367_vm0, %v2725_v6, 0.0  ;;  %v298_v12 = vld [vmem:[%s5263_s1 + $0xd8] sm:$0xff]  ;;  %v304_v47 = vld [vmem:[%s5263_s1 + $0x108] sm:$0xff] }
  0x25   : > { %v2778_v43 = vld [vmem:[%s2596_s8 + $0xb8] sm:$0xff] }
  0x26   : > { %v386_v55 = vadd.f32 %v385_v48, %v384_v50  ;;  %v303_v48 = vld [vmem:[%s5263_s1 + $0x100] sm:$0xff] }
  0x27   : > { %v2789_v50 = vld [vmem:[%s2596_s8 + $0xc0] sm:$0xff] }
  0x28   : > { %1124 = vperm.xlu1 %2329, %v284_v19   ;;  %1119 = vperm.xlu0 %2328, %v283_v20   ;;  %v388_v58 = vadd.f32 %v387_v51, %v386_v55  ;;  %v401_v20 = vsel %vm367_vm0, %v2730_v9, 0.0 }
  0x2a   : > { %v390_v63 = vadd.f32 %v389_v56, %v388_v58  ;;  %v415_v56 = vsel %vm367_vm0, %v2789_v50, 0.0  ;;  %v306_v58 = vld [vmem:[%s5263_s1 + $0x118] sm:$0xff] }
  0x2c   : > { %1134 = vperm.xlu1 %2329, %v286_v28   ;;  %1129 = vperm.xlu0 %2328, %v285_v29   ;;  %v392_v2 = vadd.f32 %v391_v59, %v390_v63  ;;  %v2757_v28 = vld [vmem:[%s2596_s8 + $0xa0] sm:$0xff]  ;;  %v305_v59 = vld [vmem:[%s5263_s1 + $0x110] sm:$0xff] }
  0x2d   : > { %v407_v35 = vsel %vm367_vm0, %v2757_v28, 0.0 }
  0x2e   : > { %v394_v7 = vadd.f32 %v393_v0, %v392_v2  ;;  %v2810_v0 = vld [vmem:[%s2596_s8 + $0xd8] sm:$0xff] }
  0x30   : > { %1144 = vperm.xlu1 %2329, %v288_v36   ;;  %1139 = vperm.xlu0 %2328, %v287_v37   ;;  %v396_v10 = vadd.f32 %v395_v3, %v394_v7  ;;  %v302_v36 = vld [vmem:[%s5263_s1 + $0xf8] sm:$0xff]  ;;  %v301_v37 = vld [vmem:[%s5263_s1 + $0xf0] sm:$0xff]  ;;  %v565_v3 = vmul.f32 %v2605_v13, %v2605_v13  ;;  %v308_v7 = vld [vmem:[%s5263_s1 + $0x128] sm:$0xff] }
  0x32   : > { %v398_v19 = vadd.f32 %v397_v8, %v396_v10  ;;  %v307_v8 = vld [vmem:[%s5263_s1 + $0x120] sm:$0xff] }
  0x33   : > { %v2825_v10 = vld [vmem:[%s2596_s8 + $0xe0] sm:$0xff] }
  0x34   : > { %1154 = vperm.xlu1 %2329, %v290_v44   ;;  %1149 = vperm.xlu0 %2328, %v289_v45   ;;  %v400_v23 = vadd.f32 %v399_v11, %v398_v19  ;;  %v411_v45 = vsel %vm367_vm0, %v2773_v39, 0.0  ;;  %v421_v11 = vsel %vm367_vm0, %v2810_v0, 0.0  ;;  %v568_v19 = vmul.f32 %v2614_v16, %v2614_v16 }
  0x36   : > { %v402_v29 = vadd.f32 %v401_v20, %v400_v23  ;;  %v661_v20 = vsel %vm367_vm0, %v565_v3, 0.0  ;;  %v314_v3 = vld [vmem:[%s5263_s1 + $0x158] sm:$0xff] }
  0x38   : > { %1164 = vperm.xlu1 %2329, %v292_v52   ;;  %1159 = vperm.xlu0 %2328, %v291_v53   ;;  %v404_v34 = vadd.f32 %v403_v24, %v402_v29  ;;  %v413_v52 = vsel %vm367_vm0, %v2778_v43, 0.0  ;;  %v2794_v53 = vld [vmem:[%s2596_s8 + $0xc8] sm:$0xff]  ;;  %v423_v24 = vsel %vm367_vm0, %v2825_v10, 0.0  ;;  %v569_v29 = vmul.f32 %v2627_v21, %v2627_v21 }
  0x39   : > { %v417_v63 = vsel %vm367_vm0, %v2794_v53, 0.0 }
  0x3a   : > { %v406_v40 = vadd.f32 %v405_v31, %v404_v34 }
  0x3c   : > { %1174 = vperm.xlu1 %2329, %v294_v60   ;;  %1169 = vperm.xlu0 %2328, %v293_v61   ;;  %v408_v44 = vadd.f32 %v407_v35, %v406_v40  ;;  %v2805_v60 = vld [vmem:[%s2596_s8 + $0xd0] sm:$0xff]  ;;  %v570_v40 = vmul.f32 %v2634_v25, %v2634_v25 }
  0x3e   : > { %v410_v51 = vadd.f32 %v409_v42, %v408_v44  ;;  %v666_v42 = vsel %vm367_vm0, %v568_v19, 0.0  ;;  %v574_v19 = vmul.f32 %v2666_v41, %v2666_v41 }
  0x40   : > { %1184 = vperm.xlu1 %2329, %v296_v4   ;;  %1179 = vperm.xlu0 %2328, %v295_v5   ;;  %v412_v55 = vadd.f32 %v411_v45, %v410_v51  ;;  %v566_v4 = vmul.f32 %v2608_v14, %v2608_v14  ;;  %v419_v5 = vsel %vm367_vm0, %v2805_v60, 0.0  ;;  %v567_v14 = vmul.f32 %v2611_v15, %v2611_v15  ;;  %v310_v15 = vld [vmem:[%s5263_s1 + $0x138] sm:$0xff]  ;;  %v312_v45 = vld [vmem:[%s5263_s1 + $0x148] sm:$0xff] }
  0x41   : > { %v571_v51 = vmul.f32 %v2645_v30, %v2645_v30 }
  0x42   : > { %v414_v61 = vadd.f32 %v413_v52, %v412_v55  ;;  %v662_v23 = vsel %vm367_vm0, %v566_v4, 0.0  ;;  %v664_v31 = vsel %vm367_vm0, %v567_v14, 0.0  ;;  %v668_v52 = vsel %vm367_vm0, %v569_v29, 0.0  ;;  %v313_v4 = vld [vmem:[%s5263_s1 + $0x150] sm:$0xff] }
  0x43   : > { %v663_v35 = vadd.f32 %v662_v23, %v661_v20 }
  0x44   : > { %1194 = vperm.xlu1 %2329, %v298_v12   ;;  %1189 = vperm.xlu0 %2328, %v297_v17   ;;  %v416_v2 = vadd.f32 %v415_v56, %v414_v61  ;;  %v2832_v12 = vld [vmem:[%s2596_s8 + $0xe8] sm:$0xff]  ;;  %v572_v61 = vmul.f32 %v2650_v33, %v2650_v33 }
  0x45   : > { %v425_v34 = vsel %vm367_vm0, %v2832_v12, 0.0  ;;  %v665_v44 = vadd.f32 %v664_v31, %v663_v35  ;;  %v2921_v35 = vld [vmem:[%s2596_s8 + $0x128] sm:$0xff] }
  0x46   : > { %v418_v13 = vadd.f32 %v417_v63, %v416_v2  ;;  %v670_v63 = vsel %vm367_vm0, %v570_v40, 0.0  ;;  %v674_v20 = vsel %vm367_vm0, %v572_v61, 0.0  ;;  %v576_v40 = vmul.f32 %v2682_v49, %v2682_v49 }
  0x47   : > { %v667_v56 = vadd.f32 %v666_v42, %v665_v44  ;;  %v678_v42 = vsel %vm367_vm0, %v574_v19, 0.0  ;;  %v318_v44 = vld [vmem:[%s5263_s1 + $0x178] sm:$0xff]  ;;  %v578_v61 = vmul.f32 %v2698_v57, %v2698_v57  ;;  %v580_v19 = vmul.f32 %v2714_v1, %v2714_v1 }
  0x48   : > { %1204 = vperm.xlu1 %2329, %v300_v26   ;;  %1199 = vperm.xlu0 %2328, %v299_v27   ;;  %v420_v17 = vadd.f32 %v419_v5, %v418_v13  ;;  %v309_v26 = vld [vmem:[%s5263_s1 + $0x130] sm:$0xff] }
  0x49   : > { %v2847_v27 = vld [vmem:[%s2596_s8 + $0xf0] sm:$0xff]  ;;  %v669_v2 = vadd.f32 %v668_v52, %v667_v56  ;;  %v441_v52 = vsel %vm367_vm0, %v2921_v35, 0.0  ;;  %v2943_v56 = vld [vmem:[%s2596_s8 + $0x138] sm:$0xff] }
  0x4a   : > { %v422_v16 = vadd.f32 %v421_v11, %v420_v17  ;;  %v427_v21 = vsel %vm367_vm0, %v2847_v27, 0.0  ;;  %v2891_v5 = vld [vmem:[%s2596_s8 + $0x110] sm:$0xff]  ;;  %v2899_v11 = vld [vmem:[%s2596_s8 + $0x118] sm:$0xff] }
  0x4b   : > { %v671_v14 = vadd.f32 %v670_v63, %v669_v2  ;;  %v437_v31 = vsel %vm367_vm0, %v2899_v11, 0.0  ;;  %v682_v63 = vsel %vm367_vm0, %v576_v40, 0.0  ;;  %v320_v2 = vld [vmem:[%s5263_s1 + $0x188] sm:$0xff]  ;;  %v582_v40 = vmul.f32 %v2730_v9, %v2730_v9 }
  0x4c   : > { %1214 = vperm.xlu1 %2329, %v302_v36   ;;  %1209 = vperm.xlu0 %2328, %v301_v37   ;;  %v2855_v36 = vld [vmem:[%s2596_s8 + $0xf8] sm:$0xff]  ;;  %v424_v37 = vadd.f32 %v423_v24, %v422_v16  ;;  %v316_v24 = vld [vmem:[%s5263_s1 + $0x168] sm:$0xff]  ;;  %v575_v16 = vmul.f32 %v2677_v46, %v2677_v46 }
  0x4d   : > { %v429_v55 = vsel %vm367_vm0, %v2855_v36, 0.0 }
  0x4e   : > { %v426_v25 = vadd.f32 %v425_v34, %v424_v37 }
  0x50   : > { %1224 = vperm.xlu1 %2329, %v304_v47   ;;  %1219 = vperm.xlu0 %2328, %v303_v48   ;;  %v311_v47 = vld [vmem:[%s5263_s1 + $0x140] sm:$0xff] }
  0x51   : > { %v2869_v48 = vld [vmem:[%s2596_s8 + $0x100] sm:$0xff] }
  0x52   : > { %v431_v30 = vsel %vm367_vm0, %v2869_v48, 0.0 }
  0x54   : > { %1234 = vperm.xlu1 %2329, %v306_v58   ;;  %1229 = vperm.xlu0 %2328, %v305_v59   ;;  %v2877_v58 = vld [vmem:[%s2596_s8 + $0x108] sm:$0xff]  ;;  %v428_v59 = vadd.f32 %v427_v21, %v426_v25  ;;  %v577_v25 = vmul.f32 %v2693_v54, %v2693_v54 }
  0x55   : > { %v433_v13 = vsel %vm367_vm0, %v2877_v58, 0.0 }
  0x56   : > { %v430_v33 = vadd.f32 %v429_v55, %v428_v59 }
  0x58   : > { %1244 = vperm.xlu1 %2329, %v308_v7   ;;  %1239 = vperm.xlu0 %2328, %v307_v8   ;;  %v573_v7 = vmul.f32 %v2661_v38, %v2661_v38  ;;  %v672_v8 = vsel %vm367_vm0, %v571_v51, 0.0  ;;  %v432_v17 = vadd.f32 %v431_v30, %v430_v33  ;;  %v435_v38 = vsel %vm367_vm0, %v2891_v5, 0.0 }
  0x59   : > { %v673_v23 = vadd.f32 %v672_v8, %v671_v14  ;;  %v680_v51 = vsel %vm367_vm0, %v575_v16, 0.0  ;;  %v579_v33 = vmul.f32 %v2709_v62, %v2709_v62  ;;  %v445_v8 = vsel %vm367_vm0, %v2943_v56, 0.0  ;;  %v2965_v14 = vld [vmem:[%s2596_s8 + $0x148] sm:$0xff] }
  0x5a   : > { %v434_v41 = vadd.f32 %v433_v13, %v432_v17  ;;  %v676_v29 = vsel %vm367_vm0, %v573_v7, 0.0  ;;  %v684_v7 = vsel %vm367_vm0, %v577_v25, 0.0 }
  0x5b   : > { %v675_v34 = vadd.f32 %v674_v20, %v673_v23  ;;  %v686_v20 = vsel %vm367_vm0, %v578_v61, 0.0  ;;  %v322_v23 = vld [vmem:[%s5263_s1 + $0x198] sm:$0xff]  ;;  %v688_v16 = vsel %vm367_vm0, %v579_v33, 0.0  ;;  %v584_v61 = vmul.f32 %v2746_v22, %v2746_v22 }
  0x5c   : > { %1254 = vperm.xlu1 %2329, %v310_v15   ;;  %1249 = vperm.xlu0 %2328, %v309_v26   ;;  %v315_v15 = vld [vmem:[%s5263_s1 + $0x160] sm:$0xff]  ;;  %v436_v37 = vadd.f32 %v435_v38, %v434_v41  ;;  %v581_v41 = vmul.f32 %v2725_v6, %v2725_v6 }
  0x5d   : > { %v2913_v26 = vld [vmem:[%s2596_s8 + $0x120] sm:$0xff]  ;;  %v677_v21 = vadd.f32 %v676_v29, %v675_v34  ;;  %v449_v29 = vsel %vm367_vm0, %v2965_v14, 0.0  ;;  %v2987_v34 = vld [vmem:[%s2596_s8 + $0x158] sm:$0xff] }
  0x5e   : > { %v439_v46 = vsel %vm367_vm0, %v2913_v26, 0.0  ;;  %v438_v49 = vadd.f32 %v437_v31, %v436_v37  ;;  %v692_v25 = vsel %vm367_vm0, %v581_v41, 0.0 }
  0x5f   : > { %v679_v55 = vadd.f32 %v678_v42, %v677_v21  ;;  %v690_v42 = vsel %vm367_vm0, %v580_v19, 0.0  ;;  %v324_v21 = vld [vmem:[%s5263_s1 + $0x1a8] sm:$0xff]  ;;  %v586_v19 = vmul.f32 %v2762_v32, %v2762_v32 }
  0x60   : > { %1264 = vperm.xlu1 %2329, %v312_v45   ;;  %1259 = vperm.xlu0 %2328, %v311_v47   ;;  %v317_v45 = vld [vmem:[%s5263_s1 + $0x170] sm:$0xff]  ;;  %v440_v59 = vadd.f32 %v439_v46, %v438_v49  ;;  %v583_v49 = vmul.f32 %v2741_v18, %v2741_v18 }
  0x61   : > { %v2935_v47 = vld [vmem:[%s2596_s8 + $0x130] sm:$0xff]  ;;  %v681_v30 = vadd.f32 %v680_v51, %v679_v55  ;;  %v453_v51 = vsel %vm367_vm0, %v2987_v34, 0.0  ;;  %v3009_v55 = vld [vmem:[%s2596_s8 + $0x168] sm:$0xff] }
  0x62   : > { %v443_v54 = vsel %vm367_vm0, %v2935_v47, 0.0  ;;  %v442_v57 = vadd.f32 %v441_v52, %v440_v59  ;;  %v696_v33 = vsel %vm367_vm0, %v583_v49, 0.0 }
  0x63   : > { %v683_v13 = vadd.f32 %v682_v63, %v681_v30  ;;  %v694_v63 = vsel %vm367_vm0, %v582_v40, 0.0  ;;  %v326_v30 = vld [vmem:[%s5263_s1 + $0x1b8] sm:$0xff]  ;;  %v588_v40 = vmul.f32 %v2778_v43, %v2778_v43 }
  0x64   : > { %1274 = vperm.xlu1 %2329, %v314_v3   ;;  %1269 = vperm.xlu0 %2328, %v313_v4   ;;  %v319_v3 = vld [vmem:[%s5263_s1 + $0x180] sm:$0xff]  ;;  %v444_v17 = vadd.f32 %v443_v54, %v442_v57  ;;  %v585_v57 = vmul.f32 %v2757_v28, %v2757_v28 }
  0x65   : > { %v2957_v4 = vld [vmem:[%s2596_s8 + $0x140] sm:$0xff]  ;;  %v685_v38 = vadd.f32 %v684_v7, %v683_v13  ;;  %v457_v7 = vsel %vm367_vm0, %v3009_v55, 0.0  ;;  %v3031_v13 = vld [vmem:[%s2596_s8 + $0x178] sm:$0xff] }
  0x66   : > { %v447_v62 = vsel %vm367_vm0, %v2957_v4, 0.0  ;;  %v446_v1 = vadd.f32 %v445_v8, %v444_v17  ;;  %v700_v41 = vsel %vm367_vm0, %v585_v57, 0.0 }
  0x67   : > { %v687_v31 = vadd.f32 %v686_v20, %v685_v38  ;;  %v698_v20 = vsel %vm367_vm0, %v584_v61, 0.0  ;;  %v328_v38 = vld [vmem:[%s5263_s1 + $0x1c8] sm:$0xff]  ;;  %v590_v61 = vmul.f32 %v2794_v53, %v2794_v53 }
  0x68   : > { %1284 = vperm.xlu1 %2329, %v316_v24   ;;  %1279 = vperm.xlu0 %2328, %v315_v15   ;;  %v321_v24 = vld [vmem:[%s5263_s1 + $0x190] sm:$0xff]  ;;  %v448_v37 = vadd.f32 %v447_v62, %v446_v1  ;;  %v587_v1 = vmul.f32 %v2773_v39, %v2773_v39 }
  0x69   : > { %v2979_v15 = vld [vmem:[%s2596_s8 + $0x150] sm:$0xff]  ;;  %v689_v46 = vadd.f32 %v688_v16, %v687_v31  ;;  %v461_v16 = vsel %vm367_vm0, %v3031_v13, 0.0  ;;  %v3053_v31 = vld [vmem:[%s2596_s8 + $0x188] sm:$0xff] }
  0x6a   : > { %v451_v6 = vsel %vm367_vm0, %v2979_v15, 0.0  ;;  %v450_v9 = vadd.f32 %v449_v29, %v448_v37  ;;  %v704_v49 = vsel %vm367_vm0, %v587_v1, 0.0 }
  0x6b   : > { %v691_v52 = vadd.f32 %v690_v42, %v689_v46  ;;  %v702_v42 = vsel %vm367_vm0, %v586_v19, 0.0  ;;  %v330_v46 = vld [vmem:[%s5263_s1 + $0x1d8] sm:$0xff]  ;;  %v592_v19 = vmul.f32 %v2810_v0, %v2810_v0 }
  0x6c   : > { %1294 = vperm.xlu1 %2329, %v318_v44   ;;  %1289 = vperm.xlu0 %2328, %v317_v45   ;;  %v323_v44 = vld [vmem:[%s5263_s1 + $0x1a0] sm:$0xff]  ;;  %v452_v59 = vadd.f32 %v451_v6, %v450_v9  ;;  %v589_v9 = vmul.f32 %v2789_v50, %v2789_v50 }
  0x6d   : > { %v3001_v45 = vld [vmem:[%s2596_s8 + $0x160] sm:$0xff]  ;;  %v693_v54 = vadd.f32 %v692_v25, %v691_v52  ;;  %v465_v25 = vsel %vm367_vm0, %v3053_v31, 0.0  ;;  %v3075_v52 = vld [vmem:[%s2596_s8 + $0x198] sm:$0xff] }
  0x6e   : > { %v455_v18 = vsel %vm367_vm0, %v3001_v45, 0.0  ;;  %v454_v22 = vadd.f32 %v453_v51, %v452_v59  ;;  %v708_v57 = vsel %vm367_vm0, %v589_v9, 0.0  ;;  %v335_v9 = vld [vmem:[%s5263_s1 + $0x200] sm:$0xff] }
  0x6f   : > { %v695_v8 = vadd.f32 %v694_v63, %v693_v54  ;;  %v706_v63 = vsel %vm367_vm0, %v588_v40, 0.0  ;;  %v332_v54 = vld [vmem:[%s5263_s1 + $0x1e8] sm:$0xff]  ;;  %v594_v40 = vmul.f32 %v2832_v12, %v2832_v12 }
  0x70   : > { %1304 = vperm.xlu1 %2329, %v320_v2   ;;  %1299 = vperm.xlu0 %2328, %v319_v3   ;;  %v325_v2 = vld [vmem:[%s5263_s1 + $0x1b0] sm:$0xff]  ;;  %v456_v17 = vadd.f32 %v455_v18, %v454_v22  ;;  %v591_v22 = vmul.f32 %v2805_v60, %v2805_v60  ;;  %v336_v12 = vld [vmem:[%s5263_s1 + $0x208] sm:$0xff] }
  0x71   : > { %v3023_v3 = vld [vmem:[%s2596_s8 + $0x170] sm:$0xff]  ;;  %v697_v62 = vadd.f32 %v696_v33, %v695_v8  ;;  %v469_v33 = vsel %vm367_vm0, %v3075_v52, 0.0  ;;  %v3097_v8 = vld [vmem:[%s2596_s8 + $0x1a8] sm:$0xff] }
  0x72   : > { %v459_v28 = vsel %vm367_vm0, %v3023_v3, 0.0  ;;  %v458_v32 = vadd.f32 %v457_v7, %v456_v17  ;;  %v712_v1 = vsel %vm367_vm0, %v591_v22, 0.0  ;;  %v597_v22 = vmul.f32 %v2869_v48, %v2869_v48 }
  0x73   : > { %v699_v29 = vadd.f32 %v698_v20, %v697_v62  ;;  %v710_v20 = vsel %vm367_vm0, %v590_v61, 0.0  ;;  %v334_v62 = vld [vmem:[%s5263_s1 + $0x1f8] sm:$0xff]  ;;  %v596_v61 = vmul.f32 %v2855_v36, %v2855_v36  ;;  %v598_v48 = vmul.f32 %v2877_v58, %v2877_v58 }
  0x74   : > { %1314 = vperm.xlu1 %2329, %v322_v23   ;;  %1309 = vperm.xlu0 %2328, %v321_v24   ;;  %v327_v23 = vld [vmem:[%s5263_s1 + $0x1c0] sm:$0xff]  ;;  %v460_v37 = vadd.f32 %v459_v28, %v458_v32  ;;  %v593_v32 = vmul.f32 %v2825_v10, %v2825_v10  ;;  %v338_v36 = vld [vmem:[%s5263_s1 + $0x218] sm:$0xff]  ;;  %v724_v58 = vsel %vm367_vm0, %v597_v22, 0.0 }
  0x75   : > { %v3045_v24 = vld [vmem:[%s2596_s8 + $0x180] sm:$0xff]  ;;  %v701_v6 = vadd.f32 %v700_v41, %v699_v29  ;;  %v473_v41 = vsel %vm367_vm0, %v3097_v8, 0.0  ;;  %v3119_v29 = vld [vmem:[%s2596_s8 + $0x1b8] sm:$0xff] }
  0x76   : > { %v463_v39 = vsel %vm367_vm0, %v3045_v24, 0.0  ;;  %v462_v43 = vadd.f32 %v461_v16, %v460_v37 }
  0x77   : > { %v703_v51 = vadd.f32 %v702_v42, %v701_v6  ;;  %v714_v42 = vsel %vm367_vm0, %v592_v19, 0.0  ;;  %v3127_v6 = vld [vmem:[%s2596_s8 + $0x1c0] sm:$0xff]  ;;  %v3167_v19 = vld [vmem:[%s2596_s8 + $0x1d8] sm:$0xff] }
  0x78   : > { %1324 = vperm.xlu1 %2329, %v324_v21   ;;  %1319 = vperm.xlu0 %2328, %v323_v44   ;;  %v329_v21 = vld [vmem:[%s5263_s1 + $0x1d0] sm:$0xff]  ;;  %v464_v59 = vadd.f32 %v463_v39, %v462_v43  ;;  %v716_v43 = vsel %vm367_vm0, %v593_v32, 0.0  ;;  %v3179_v32 = vld [vmem:[%s2596_s8 + $0x1e0] sm:$0xff] }
  0x79   : > { %v3067_v44 = vld [vmem:[%s2596_s8 + $0x190] sm:$0xff]  ;;  %v705_v18 = vadd.f32 %v704_v49, %v703_v51  ;;  %v477_v49 = vsel %vm367_vm0, %v3119_v29, 0.0 }
  0x7a   : > { %v467_v50 = vsel %vm367_vm0, %v3067_v44, 0.0  ;;  %v466_v53 = vadd.f32 %v465_v25, %v464_v59  ;;  %v3143_v59 = vld [vmem:[%s2596_s8 + $0x1c8] sm:$0xff] }
  0x7b   : > { %v707_v7 = vadd.f32 %v706_v63, %v705_v18  ;;  %v718_v63 = vsel %vm367_vm0, %v594_v40, 0.0  ;;  %v479_v18 = vsel %vm367_vm0, %v3127_v6, 0.0  ;;  %v485_v40 = vsel %vm367_vm0, %v3167_v19, 0.0 }
  0x7c   : > { %1334 = vperm.xlu1 %2329, %v326_v30   ;;  %1329 = vperm.xlu0 %2328, %v325_v2   ;;  %v331_v30 = vld [vmem:[%s5263_s1 + $0x1e0] sm:$0xff]  ;;  %v468_v17 = vadd.f32 %v467_v50, %v466_v53 }
  0x7d   : > { %v3089_v2 = vld [vmem:[%s2596_s8 + $0x1a0] sm:$0xff]  ;;  %v709_v28 = vadd.f32 %v708_v57, %v707_v7  ;;  %v481_v7 = vsel %vm367_vm0, %v3143_v59, 0.0 }
  0x7e   : > { %v471_v60 = vsel %vm367_vm0, %v3089_v2, 0.0  ;;  %v470_v0 = vadd.f32 %v469_v33, %v468_v17  ;;  %v337_v33 = vld [vmem:[%s5263_s1 + $0x210] sm:$0xff] }
  0x7f   : > { %v711_v16 = vadd.f32 %v710_v20, %v709_v28 }
  0x80   : > { %1344 = vperm.xlu1 %2329, %v328_v38   ;;  %1339 = vperm.xlu0 %2328, %v327_v23   ;;  %v333_v38 = vld [vmem:[%s5263_s1 + $0x1f0] sm:$0xff]  ;;  %v472_v37 = vadd.f32 %v471_v60, %v470_v0  ;;  %v722_v60 = vsel %vm367_vm0, %v596_v61, 0.0  ;;  %v342_v61 = vld [vmem:[%s5263_s1 + $0x238] sm:$0xff] }
  0x81   : > { %v3111_v23 = vld [vmem:[%s2596_s8 + $0x1b0] sm:$0xff]  ;;  %v713_v39 = vadd.f32 %v712_v1, %v711_v16  ;;  %v340_v16 = vld [vmem:[%s5263_s1 + $0x228] sm:$0xff] }
  0x82   : > { %v475_v10 = vsel %vm367_vm0, %v3111_v23, 0.0 }
  0x83   : > { %v715_v25 = vadd.f32 %v714_v42, %v713_v39 }
  0x84   : > { %1354 = vperm.xlu1 %2329, %v330_v46   ;;  %1349 = vperm.xlu0 %2328, %v329_v21   ;;  %v474_v46 = vadd.f32 %v473_v41, %v472_v37  ;;  %v595_v21 = vmul.f32 %v2847_v27, %v2847_v27  ;;  %v599_v41 = vmul.f32 %v2891_v5, %v2891_v5  ;;  %v339_v37 = vld [vmem:[%s5263_s1 + $0x220] sm:$0xff] }
  0x85   : > { %v600_v5 = vmul.f32 %v2899_v11, %v2899_v11 }
  0x86   : > { %v476_v27 = vadd.f32 %v475_v10, %v474_v46  ;;  %v720_v57 = vsel %vm367_vm0, %v595_v21, 0.0  ;;  %v3193_v10 = vld [vmem:[%s2596_s8 + $0x1e8] sm:$0xff]  ;;  %v726_v46 = vsel %vm367_vm0, %v598_v48, 0.0  ;;  %v728_v11 = vsel %vm367_vm0, %v599_v41, 0.0 }
  0x88   : > { %1364 = vperm.xlu1 %2329, %v332_v54   ;;  %1359 = vperm.xlu0 %2328, %v331_v30   ;;  %v717_v54 = vadd.f32 %v716_v43, %v715_v25  ;;  %v3153_v30 = vld [vmem:[%s2596_s8 + $0x1d0] sm:$0xff]  ;;  %v478_v53 = vadd.f32 %v477_v49, %v476_v27  ;;  %v601_v27 = vmul.f32 %v2913_v26, %v2913_v26 }
  0x89   : > { %v3205_v49 = vld [vmem:[%s2596_s8 + $0x1f0] sm:$0xff]  ;;  %v602_v26 = vmul.f32 %v2921_v35, %v2921_v35 }
  0x8a   : > { %v719_v17 = vadd.f32 %v718_v63, %v717_v54  ;;  %v480_v20 = vadd.f32 %v479_v18, %v478_v53  ;;  %v341_v63 = vld [vmem:[%s5263_s1 + $0x230] sm:$0xff]  ;;  %v489_v18 = vsel %vm367_vm0, %v3193_v10, 0.0  ;;  %v3219_v53 = vld [vmem:[%s2596_s8 + $0x1f8] sm:$0xff]  ;;  %v732_v35 = vsel %vm367_vm0, %v601_v27, 0.0 }
  0x8b   : > { %v345_v27 = vld [vmem:[%s5263_s1 + $0x250] sm:$0xff] }
  0x8c   : > { %1374 = vperm.xlu1 %2329, %v334_v62   ;;  %1369 = vperm.xlu0 %2328, %v333_v38   ;;  %v483_v38 = vsel %vm367_vm0, %v3153_v30, 0.0  ;;  %v721_v0 = vadd.f32 %v720_v57, %v719_v17  ;;  %v482_v1 = vadd.f32 %v481_v7, %v480_v20  ;;  %v730_v57 = vsel %vm367_vm0, %v600_v5, 0.0  ;;  %v3231_v20 = vld [vmem:[%s2596_s8 + $0x200] sm:$0xff] }
  0x8d   : > { %v491_v7 = vsel %vm367_vm0, %v3205_v49, 0.0 }
  0x8e   : > { %v723_v42 = vadd.f32 %v722_v60, %v721_v0  ;;  %v484_v39 = vadd.f32 %v483_v38, %v482_v1  ;;  %v603_v60 = vmul.f32 %v2935_v47, %v2935_v47  ;;  %v344_v38 = vld [vmem:[%s5263_s1 + $0x248] sm:$0xff]  ;;  %v343_v0 = vld [vmem:[%s5263_s1 + $0x240] sm:$0xff]  ;;  %v493_v1 = vsel %vm367_vm0, %v3219_v53, 0.0 }
  0x8f   : > { %v3140_v51 = vpop.permute.xlu1 %1069  ;;  %v3148_v50 = vpop.permute.xlu0 %1059  ;;  %v604_v47 = vmul.f32 %v2943_v56, %v2943_v56 }
  0x90   : > { %5284 = vst [vmem:[#allocation2_spill] sm:$0xff] %v3140_v51  ;;  %5285 = vst [vmem:[#allocation3_spill] sm:$0xff] %v3148_v50  ;;  %1384 = vperm.xlu1 %2329, %v336_v12   ;;  %1379 = vperm.xlu0 %2328, %v335_v9   ;;  %v487_v12 = vsel %vm367_vm0, %v3179_v32, 0.0  ;;  %v725_v9 = vadd.f32 %v724_v58, %v723_v42  ;;  %v486_v25 = vadd.f32 %v485_v40, %v484_v39  ;;  %v3245_v58 = vld [vmem:[%s2596_s8 + $0x208] sm:$0xff]  ;;  %v4183_v50 = vld [vmem:[%s2596_s8 + $0x1d0] sm:$0xff] }
  0x91   : > { %v495_v39 = vsel %vm367_vm0, %v3231_v20, 0.0  ;;  %v736_v56 = vsel %vm367_vm0, %v603_v60, 0.0  ;;  %v607_v60 = vmul.f32 %v2979_v15, %v2979_v15  ;;  %v608_v15 = vmul.f32 %v2987_v34, %v2987_v34  ;;  %v4188_v51 = vld [vmem:[%s2596_s8 + $0x1e8] sm:$0xff] }
  0x92   : > { %v727_v54 = vadd.f32 %v726_v46, %v725_v9  ;;  %v488_v22 = vadd.f32 %v487_v12, %v486_v25  ;;  %v3257_v46 = vld [vmem:[%s2596_s8 + $0x210] sm:$0xff]  ;;  %v605_v9 = vmul.f32 %v2957_v4, %v2957_v4  ;;  %v346_v25 = vld [vmem:[%s5263_s1 + $0x258] sm:$0xff]  ;;  %v606_v4 = vmul.f32 %v2965_v14, %v2965_v14 }
  0x93   : > { %v3172_v28 = vpop.permute.xlu1 %1074  ;;  %v3174_v62 = vpop.permute.xlu0 %1064  ;;  %v744_v34 = vsel %vm367_vm0, %v607_v60, 0.0 }
  0x94   : > { %5286 = vst [vmem:[#allocation4_spill] sm:$0xff] %v3172_v28  ;;  %5287 = vst [vmem:[#allocation5_spill] sm:$0xff] %v3174_v62  ;;  %1394 = vperm.xlu1 %2329, %v338_v36   ;;  %1389 = vperm.xlu0 %2328, %v337_v33   ;;  %v729_v17 = vadd.f32 %v728_v11, %v727_v54  ;;  %v490_v48 = vadd.f32 %v489_v18, %v488_v22  ;;  %v497_v11 = vsel %vm367_vm0, %v3245_v58, 0.0  ;;  %v4170_v62 = vld [vmem:[%s2596_s8 + $0x1c0] sm:$0xff]  ;;  %v4178_v28 = vld [vmem:[%s2596_s8 + $0x1d8] sm:$0xff] }
  0x95   : > { %v738_v54 = vsel %vm367_vm0, %v604_v47, 0.0  ;;  %v740_v14 = vsel %vm367_vm0, %v605_v9, 0.0  ;;  %v742_v47 = vsel %vm367_vm0, %v606_v4, 0.0  ;;  %v3309_v9 = vld [vmem:[%s2596_s8 + $0x230] sm:$0xff]  ;;  %v3323_v4 = vld [vmem:[%s2596_s8 + $0x238] sm:$0xff] }
  0x96   : > { %v731_v41 = vadd.f32 %v730_v57, %v729_v17  ;;  %v499_v57 = vsel %vm367_vm0, %v3257_v46, 0.0  ;;  %v3283_v17 = vld [vmem:[%s2596_s8 + $0x220] sm:$0xff]  ;;  %v507_v60 = vsel %vm367_vm0, %v3309_v9, 0.0 }
  0x97   : > { %v3198_v21 = vpop.permute.xlu1 %1084  ;;  %v3200_v43 = vpop.permute.xlu0 %1079 }
  0x98   : > { %5288 = vst [vmem:[#allocation6_spill] sm:$0xff] %v3198_v21  ;;  %5289 = vst [vmem:[#allocation7_spill] sm:$0xff] %v3200_v43  ;;  %1404 = vperm.xlu1 %2329, %v340_v16   ;;  %1399 = vperm.xlu0 %2328, %v339_v37   ;;  %v492_v16 = vadd.f32 %v491_v7, %v490_v48  ;;  %v734_v37 = vsel %vm367_vm0, %v602_v26, 0.0  ;;  %v733_v5 = vadd.f32 %v732_v35, %v731_v41  ;;  %v348_v35 = vld [vmem:[%s5263_s1 + $0x268] sm:$0xff]  ;;  %v4160_v43 = vld [vmem:[%s2596_s8 + $0x1b0] sm:$0xff] }
  0x99   : > { %v3297_v41 = vld [vmem:[%s2596_s8 + $0x228] sm:$0xff] }
  0x9a   : > { %v494_v12 = vadd.f32 %v493_v1, %v492_v16  ;;  %v4165_v21 = vld [vmem:[%s2596_s8 + $0x1c8] sm:$0xff] }
  0x9b   : > { %v3224_v36 = vpop.permute.xlu1 %1094  ;;  %v3226_v33 = vpop.permute.xlu0 %1089 }
  0x9c   : > { %5290 = vst [vmem:[#allocation8_spill] sm:$0xff] %v3224_v36  ;;  %5291 = vst [vmem:[#allocation9_spill] sm:$0xff] %v3226_v33  ;;  %1414 = vperm.xlu1 %2329, %v342_v61   ;;  %1409 = vperm.xlu0 %2328, %v341_v63   ;;  %v735_v61 = vadd.f32 %v734_v37, %v733_v5  ;;  %v3271_v63 = vld [vmem:[%s2596_s8 + $0x218] sm:$0xff]  ;;  %v496_v18 = vadd.f32 %v495_v39, %v494_v12  ;;  %v503_v5 = vsel %vm367_vm0, %v3283_v17, 0.0 }
  0x9d   : > { %v4155_v36 = vld [vmem:[%s2596_s8 + $0x1b8] sm:$0xff] }
  0x9e   : > { %v737_v7 = vadd.f32 %v736_v56, %v735_v61  ;;  %v498_v48 = vadd.f32 %v497_v11, %v496_v18  ;;  %v349_v11 = vld [vmem:[%s5263_s1 + $0x270] sm:$0xff]  ;;  %v505_v61 = vsel %vm367_vm0, %v3297_v41, 0.0 }
  0x9f   : > { %v3250_v40 = vpop.permute.xlu1 %1104  ;;  %v3252_v42 = vpop.permute.xlu0 %1099 }
  0xa0   : > { %5292 = vst [vmem:[#allocation10_spill] sm:$0xff] %v3250_v40  ;;  %5293 = vst [vmem:[#allocation11_spill] sm:$0xff] %v3252_v42  ;;  %1424 = vperm.xlu1 %2329, %v344_v38   ;;  %1419 = vperm.xlu0 %2328, %v343_v0   ;;  %v347_v38 = vld [vmem:[%s5263_s1 + $0x260] sm:$0xff]  ;;  %v501_v0 = vsel %vm367_vm0, %v3271_v63, 0.0  ;;  %v739_v1 = vadd.f32 %v738_v54, %v737_v7  ;;  %v500_v16 = vadd.f32 %v499_v57, %v498_v48  ;;  %v4096_v42 = vld [vmem:[%s2596_s8 + $0x168] sm:$0xff] }
  0xa1   : > { %v746_v57 = vsel %vm367_vm0, %v608_v15, 0.0  ;;  %v509_v15 = vsel %vm367_vm0, %v3323_v4, 0.0  ;;  %v4101_v40 = vld [vmem:[%s2596_s8 + $0x160] sm:$0xff] }
  0xa2   : > { %v741_v12 = vadd.f32 %v740_v14, %v739_v1  ;;  %v502_v56 = vadd.f32 %v501_v0, %v500_v16  ;;  %v611_v0 = vmul.f32 %v3023_v3, %v3023_v3  ;;  %v352_v1 = vld [vmem:[%s5263_s1 + $0x288] sm:$0xff]  ;;  %v351_v16 = vld [vmem:[%s5263_s1 + $0x280] sm:$0xff]  ;;  %v612_v3 = vmul.f32 %v3031_v13, %v3031_v13 }
  0xa3   : > { %v3276_v22 = vpop.permute.xlu1 %1114  ;;  %v3278_v26 = vpop.permute.xlu0 %1109 }
  0xa4   : > { %5294 = vst [vmem:[#allocation12_spill] sm:$0xff] %v3276_v22  ;;  %5295 = vst [vmem:[#allocation13_spill] sm:$0xff] %v3278_v26  ;;  %1434 = vperm.xlu1 %2329, %v346_v25   ;;  %1429 = vperm.xlu0 %2328, %v345_v27   ;;  %v609_v25 = vmul.f32 %v3001_v45, %v3001_v45  ;;  %v350_v27 = vld [vmem:[%s5263_s1 + $0x278] sm:$0xff]  ;;  %v743_v18 = vadd.f32 %v742_v47, %v741_v12  ;;  %v752_v13 = vsel %vm367_vm0, %v611_v0, 0.0  ;;  %v4091_v22 = vld [vmem:[%s2596_s8 + $0x150] sm:$0xff] }
  0xa5   : > { %v504_v54 = vadd.f32 %v503_v5, %v502_v56  ;;  %v610_v45 = vmul.f32 %v3009_v55, %v3009_v55  ;;  %v3349_v5 = vld [vmem:[%s2596_s8 + $0x248] sm:$0xff]  ;;  %v754_v0 = vsel %vm367_vm0, %v612_v3, 0.0 }
  0xa6   : > { %v745_v14 = vadd.f32 %v744_v34, %v743_v18  ;;  %v748_v55 = vsel %vm367_vm0, %v609_v25, 0.0  ;;  %v356_v3 = vld [vmem:[%s5263_s1 + $0x2a8] sm:$0xff] }
  0xa7   : > { %v3302_v37 = vpop.permute.xlu1 %1124  ;;  %v3304_v39 = vpop.permute.xlu0 %1119  ;;  %v750_v56 = vsel %vm367_vm0, %v610_v45, 0.0  ;;  %v354_v45 = vld [vmem:[%s5263_s1 + $0x298] sm:$0xff] }
  0xa8   : > { %5296 = vst [vmem:[#allocation14_spill] sm:$0xff] %v3302_v37  ;;  %5297 = vst [vmem:[#allocation15_spill] sm:$0xff] %v3304_v39  ;;  %1444 = vperm.xlu1 %2329, %v348_v35   ;;  %1439 = vperm.xlu0 %2328, %v347_v38   ;;  %v3335_v35 = vld [vmem:[%s2596_s8 + $0x240] sm:$0xff]  ;;  %v506_v38 = vadd.f32 %v505_v61, %v504_v54  ;;  %v747_v47 = vadd.f32 %v746_v57, %v745_v14  ;;  %v3361_v61 = vld [vmem:[%s2596_s8 + $0x250] sm:$0xff] }
  0xa9   : > { %v613_v54 = vmul.f32 %v3045_v24, %v3045_v24  ;;  %v353_v57 = vld [vmem:[%s5263_s1 + $0x290] sm:$0xff]  ;;  %v614_v24 = vmul.f32 %v3053_v31, %v3053_v31  ;;  %v2409_v39 = vld [vmem:[%s2596_s8 + $0x138] sm:$0xff] }
  0xaa   : > { %v508_v12 = vadd.f32 %v507_v60, %v506_v38  ;;  %v513_v60 = vsel %vm367_vm0, %v3349_v5, 0.0  ;;  %v3375_v38 = vld [vmem:[%s2596_s8 + $0x258] sm:$0xff]  ;;  %v2410_v37 = vld [vmem:[%s2596_s8 + $0x130] sm:$0xff] }
  0xab   : > { %v3328_v7 = vpop.permute.xlu1 %1134  ;;  %v3330_v48 = vpop.permute.xlu0 %1129  ;;  %v756_v31 = vsel %vm367_vm0, %v613_v54, 0.0 }
  0xac   : > { %5298 = vst [vmem:[#allocation16_spill] sm:$0xff] %v3328_v7  ;;  %5299 = vst [vmem:[#allocation17_spill] sm:$0xff] %v3330_v48  ;;  %1454 = vperm.xlu1 %2329, %v350_v27   ;;  %1449 = vperm.xlu0 %2328, %v349_v11   ;;  %v511_v27 = vsel %vm367_vm0, %v3335_v35, 0.0  ;;  %v749_v11 = vadd.f32 %v748_v55, %v747_v47  ;;  %v510_v18 = vadd.f32 %v509_v15, %v508_v12  ;;  %v3387_v12 = vld [vmem:[%s2596_s8 + $0x260] sm:$0xff]  ;;  %v4056_v48 = vld [vmem:[%s2596_s8 + $0x88] sm:$0xff] }
  0xad   : > { %v515_v15 = vsel %vm367_vm0, %v3361_v61, 0.0  ;;  %5390 = vst [vmem:[#allocation108_spill] sm:$0xff] %v4056_v48  ;;  %v4061_v7 = vld [vmem:[%s2596_s8 + $0x80] sm:$0xff]  ;;  %v4132_v48 = vld [vmem:[%s2596_s8 + $0x198] sm:$0xff] }
  0xae   : > { %v751_v14 = vadd.f32 %v750_v56, %v749_v11  ;;  %v512_v55 = vadd.f32 %v511_v27, %v510_v18  ;;  %v615_v27 = vmul.f32 %v3067_v44, %v3067_v44  ;;  %v355_v11 = vld [vmem:[%s5263_s1 + $0x2a0] sm:$0xff]  ;;  %v517_v18 = vsel %vm367_vm0, %v3375_v38, 0.0  ;;  %5391 = vst [vmem:[#allocation109_spill] sm:$0xff] %v4061_v7  ;;  %v2426_v7 = vld [vmem:[%s5263_s1 + $0x1d0] sm:$0xff] }
  0xaf   : > { %v3354_v25 = vpop.permute.xlu1 %1144  ;;  %v3356_v34 = vpop.permute.xlu0 %1139  ;;  %v758_v44 = vsel %vm367_vm0, %v614_v24, 0.0  ;;  %v358_v24 = vld [vmem:[%s5263_s1 + $0x2b8] sm:$0xff] }
  0xb0   : > { %5300 = vst [vmem:[#allocation18_spill] sm:$0xff] %v3354_v25  ;;  %5301 = vst [vmem:[#allocation19_spill] sm:$0xff] %v3356_v34  ;;  %1464 = vperm.xlu1 %2329, %v352_v1   ;;  %1459 = vperm.xlu0 %2328, %v351_v16   ;;  %v753_v47 = vadd.f32 %v752_v13, %v751_v14  ;;  %v514_v56 = vadd.f32 %v513_v60, %v512_v55  ;;  %v519_v14 = vsel %vm367_vm0, %v3387_v12, 0.0  ;;  %v4046_v25 = vld [vmem:[%s2596_s8 + $0x78] sm:$0xff]  ;;  %v4051_v34 = vld [vmem:[%s2596_s8 + $0x70] sm:$0xff] }
  0xb1   : > { %5388 = vst [vmem:[#allocation106_spill] sm:$0xff] %v4046_v25  ;;  %5389 = vst [vmem:[#allocation107_spill] sm:$0xff] %v4051_v34  ;;  %v4110_v25 = vld [vmem:[%s2596_s8 + $0x178] sm:$0xff] }
  0xb2   : > { %v755_v13 = vadd.f32 %v754_v0, %v753_v47  ;;  %v357_v47 = vld [vmem:[%s5263_s1 + $0x2b0] sm:$0xff] }
  0xb3   : > { %v3380_v1 = vpop.permute.xlu1 %1154  ;;  %v3382_v16 = vpop.permute.xlu0 %1149 }
  0xb4   : > { %5302 = vst [vmem:[#allocation20_spill] sm:$0xff] %v3380_v1  ;;  %5303 = vst [vmem:[#allocation21_spill] sm:$0xff] %v3382_v16  ;;  %1474 = vperm.xlu1 %2329, %v354_v45   ;;  %1469 = vperm.xlu0 %2328, %v353_v57   ;;  %v516_v45 = vadd.f32 %v515_v15, %v514_v56  ;;  %v616_v57 = vmul.f32 %v3075_v52, %v3075_v52  ;;  %v3410_v1 = vld [vmem:[%s2596_s8 + $0x268] sm:$0xff]  ;;  %v760_v52 = vsel %vm367_vm0, %v615_v27, 0.0 }
  0xb5   : > { %v757_v55 = vadd.f32 %v756_v31, %v755_v13  ;;  %v617_v15 = vmul.f32 %v3089_v2, %v3089_v2  ;;  %v521_v27 = vsel %vm367_vm0, %v3410_v1, 0.0  ;;  %v4036_v16 = vld [vmem:[%s2596_s8 + $0x68] sm:$0xff] }
  0xb6   : > { %v518_v0 = vadd.f32 %v517_v18, %v516_v45  ;;  %v3431_v45 = vld [vmem:[%s2596_s8 + $0x270] sm:$0xff]  ;;  %5386 = vst [vmem:[#allocation104_spill] sm:$0xff] %v4036_v16  ;;  %v4120_v16 = vld [vmem:[%s2596_s8 + $0x188] sm:$0xff] }
  0xb7   : > { %v3403_v60 = vpop.permute.xlu1 %1164  ;;  %v3405_v54 = vpop.permute.xlu0 %1159  ;;  %v759_v56 = vadd.f32 %v758_v44, %v757_v55  ;;  %v619_v44 = vmul.f32 %v3111_v23, %v3111_v23 }
  0xb8   : > { %5304 = vst [vmem:[#allocation22_spill] sm:$0xff] %v3403_v60  ;;  %5305 = vst [vmem:[#allocation23_spill] sm:$0xff] %v3405_v54  ;;  %1484 = vperm.xlu1 %2329, %v356_v3   ;;  %1479 = vperm.xlu0 %2328, %v355_v11   ;;  %v520_v31 = vadd.f32 %v519_v14, %v518_v0  ;;  %v618_v3 = vmul.f32 %v3097_v8, %v3097_v8  ;;  %v762_v11 = vsel %vm367_vm0, %v616_v57, 0.0  ;;  %v360_v57 = vld [vmem:[%s5263_s1 + $0x2c8] sm:$0xff]  ;;  %v359_v14 = vld [vmem:[%s5263_s1 + $0x2c0] sm:$0xff] }
  0xb9   : > { %v761_v13 = vadd.f32 %v760_v52, %v759_v56  ;;  %v764_v8 = vsel %vm367_vm0, %v617_v15, 0.0  ;;  %v620_v52 = vmul.f32 %v3119_v29, %v3119_v29  ;;  %v523_v15 = vsel %vm367_vm0, %v3431_v45, 0.0  ;;  %v4031_v54 = vld [vmem:[%s2596_s8 + $0x50] sm:$0xff] }
  0xba   : > { %v522_v0 = vadd.f32 %v521_v27, %v520_v31  ;;  %v621_v31 = vmul.f32 %v3127_v6, %v3127_v6  ;;  %v768_v29 = vsel %vm367_vm0, %v619_v44, 0.0  ;;  %5385 = vst [vmem:[#allocation103_spill] sm:$0xff] %v4031_v54 }
  0xbb   : > { %v3424_v18 = vpop.permute.xlu1 %1174  ;;  %v3426_v2 = vpop.permute.xlu0 %1169  ;;  %v763_v55 = vadd.f32 %v762_v11, %v761_v13  ;;  %v361_v11 = vld [vmem:[%s5263_s1 + $0x2d0] sm:$0xff] }
  0xbc   : > { %5306 = vst [vmem:[#allocation24_spill] sm:$0xff] %v3424_v18  ;;  %5307 = vst [vmem:[#allocation25_spill] sm:$0xff] %v3426_v2  ;;  %1494 = vperm.xlu1 %2329, %v358_v24   ;;  %1489 = vperm.xlu0 %2328, %v357_v47   ;;  %v766_v24 = vsel %vm367_vm0, %v618_v3, 0.0  ;;  %v3452_v18 = vld [vmem:[%s2596_s8 + $0x278] sm:$0xff]  ;;  %v524_v13 = vadd.f32 %v523_v15, %v522_v0  ;;  %v623_v0 = vmul.f32 %v3153_v30, %v3153_v30 }
  0xbd   : > { %v765_v56 = vadd.f32 %v764_v8, %v763_v55  ;;  %v362_v3 = vld [vmem:[%s5263_s1 + $0x2d8] sm:$0xff]  ;;  %v622_v8 = vmul.f32 %v3143_v59, %v3143_v59  ;;  %v525_v44 = vsel %vm367_vm0, %v3452_v18, 0.0  ;;  %v772_v59 = vsel %vm367_vm0, %v621_v31, 0.0 }
  0xbf   : > { %v3445_v47 = vpop.permute.xlu1 %1184  ;;  %v3447_v23 = vpop.permute.xlu0 %1179  ;;  %v767_v27 = vadd.f32 %v766_v24, %v765_v56  ;;  %v363_v24 = vld [vmem:[%s5263_s1 + $0x2e0] sm:$0xff]  ;;  %v526_v56 = vadd.f32 %v525_v44, %v524_v13  ;;  %v625_v13 = vmul.f32 %v3179_v32, %v3179_v32 }
  0xc0   : > { %5308 = vst [vmem:[#allocation26_spill] sm:$0xff] %v3445_v47  ;;  %5309 = vst [vmem:[#allocation27_spill] sm:$0xff] %v3447_v23  ;;  %1504 = vperm.xlu1 %2329, %v360_v57   ;;  %1499 = vperm.xlu0 %2328, %v359_v14   ;;  %v770_v57 = vsel %vm367_vm0, %v620_v52, 0.0  ;;  %v3473_v47 = vld [vmem:[%s2596_s8 + $0x280] sm:$0xff]  ;;  %v364_v52 = vld [vmem:[%s5263_s1 + $0x2e8] sm:$0xff] }
  0xc1   : > { %v769_v55 = vadd.f32 %v768_v29, %v767_v27  ;;  %v624_v29 = vmul.f32 %v3167_v19, %v3167_v19  ;;  %v527_v31 = vsel %vm367_vm0, %v3473_v47, 0.0  ;;  %v776_v19 = vsel %vm367_vm0, %v623_v0, 0.0 }
  0xc3   : > { %v3466_v14 = vpop.permute.xlu1 %1194  ;;  %v3468_v6 = vpop.permute.xlu0 %1189  ;;  %v771_v15 = vadd.f32 %v770_v57, %v769_v55  ;;  %v365_v57 = vld [vmem:[%s5263_s1 + $0x2f0] sm:$0xff]  ;;  %v528_v55 = vadd.f32 %v527_v31, %v526_v56  ;;  %v627_v56 = vmul.f32 %v3205_v49, %v3205_v49  ;;  %v628_v31 = vmul.f32 %v3219_v53, %v3219_v53  ;;  %v3530_v49 = vld [vmem:[%s2596_s8 + $0x298] sm:$0xff] }
  0xc4   : > { %5310 = vst [vmem:[#allocation28_spill] sm:$0xff] %v3466_v14  ;;  %5311 = vst [vmem:[#allocation29_spill] sm:$0xff] %v3468_v6  ;;  %1514 = vperm.xlu1 %2329, %v362_v3   ;;  %1509 = vperm.xlu0 %2328, %v361_v11   ;;  %v774_v3 = vsel %vm367_vm0, %v622_v8, 0.0  ;;  %v3494_v14 = vld [vmem:[%s2596_s8 + $0x288] sm:$0xff]  ;;  %v366_v8 = vld [vmem:[%s5263_s1 + $0x2f8] sm:$0xff] }
  0xc5   : > { %v773_v27 = vadd.f32 %v772_v59, %v771_v15  ;;  %v626_v59 = vmul.f32 %v3193_v10, %v3193_v10  ;;  %v529_v0 = vsel %vm367_vm0, %v3494_v14, 0.0  ;;  %v780_v10 = vsel %vm367_vm0, %v625_v13, 0.0 }
  0xc6   : > { %v629_v13 = vmul.f32 %v3231_v20, %v3231_v20  ;;  %v784_v53 = vsel %vm367_vm0, %v627_v56, 0.0 }
  0xc7   : > { %v3487_v11 = vpop.permute.xlu1 %1204  ;;  %v3489_v30 = vpop.permute.xlu0 %1199  ;;  %v775_v44 = vadd.f32 %v774_v3, %v773_v27  ;;  %v782_v27 = vsel %vm367_vm0, %v626_v59, 0.0  ;;  %v2335_v59 = vld [vmem:[%s5263_s1] sm:$0xff] }
  0xc8   : > { %5312 = vst [vmem:[#allocation30_spill] sm:$0xff] %v3487_v11  ;;  %5313 = vst [vmem:[#allocation31_spill] sm:$0xff] %v3489_v30  ;;  %1524 = vperm.xlu1 %2329, %v364_v52   ;;  %1519 = vperm.xlu0 %2328, %v363_v24   ;;  %v778_v52 = vsel %vm367_vm0, %v624_v29, 0.0  ;;  %v3515_v11 = vld [vmem:[%s2596_s8 + $0x290] sm:$0xff]  ;;  %v530_v29 = vadd.f32 %v529_v0, %v528_v55  ;;  %v2334_v55 = vld [vmem:[%s5263_s1 + $0x8] sm:$0xff] }
  0xc9   : > { %v777_v15 = vadd.f32 %v776_v19, %v775_v44  ;;  %v2524_v44 = vmov 1  }
  0xcb   : > { %v3508_v24 = vpop.permute.xlu1 %1214  ;;  %v3510_v32 = vpop.permute.xlu0 %1209  ;;  %v779_v3 = vadd.f32 %v778_v52, %v777_v15  ;;  %v630_v15 = vmul.f32 %v3245_v58, %v3245_v58  ;;  %v2336_v58 = vld [vmem:[%s5263_s1 + $0x10] sm:$0xff] }
  0xcc   : > { %5314 = vst [vmem:[#allocation32_spill] sm:$0xff] %v3508_v24  ;;  %5315 = vst [vmem:[#allocation33_spill] sm:$0xff] %v3510_v32  ;;  %1534 = vperm.xlu1 %2329, %v366_v8   ;;  %1529 = vperm.xlu0 %2328, %v365_v57   ;;  %v531_v8 = vsel %vm367_vm0, %v3515_v11, 0.0  ;;  %v3698_v32 = vld [vmem:[%s2596_s8 + $0x2d8] sm:$0xff] }
  0xcd   : > { %v781_v57 = vadd.f32 %v780_v10, %v779_v3  ;;  %v532_v0 = vadd.f32 %v531_v8, %v530_v29  ;;  %v786_v10 = vsel %vm367_vm0, %v628_v31, 0.0  ;;  %v533_v3 = vsel %vm367_vm0, %v3530_v49, 0.0  ;;  %v2337_v31 = vld [vmem:[%s5263_s1 + $0x18] sm:$0xff] }
  0xce   : > { %v788_v29 = vsel %vm367_vm0, %v629_v13, 0.0 }
  0xcf   : > { %v3523_v24 = vpop.permute.xlu1 %1224  ;;  %v3525_v19 = vpop.permute.xlu0 %1219  ;;  %v783_v52 = vadd.f32 %v782_v27, %v781_v57  ;;  %v631_v27 = vmul.f32 %v3257_v46, %v3257_v46  ;;  %v534_v57 = vadd.f32 %v533_v3, %v532_v0 }
  0xd0   : > { %5316 = vst [vmem:[#allocation34_spill] sm:$0xff] %v3523_v24  ;;  %5317 = vst [vmem:[#allocation35_spill] sm:$0xff] %v3525_v19  ;;  %2331 = vset.pattern.permute.xlu1 %v2524_v44  ;;  %2330 = vset.pattern.permute.xlu0 %v2524_v44  ;;  %v3656_v24 = vld [vmem:[%s2596_s8 + $0x2c8] sm:$0xff]  ;;  %v3677_v19 = vld [vmem:[%s2596_s8 + $0x2d0] sm:$0xff] }
  0xd1   : > { %1638 = vperm.xlu1 %2331, %v2334_v55   ;;  %1634 = vperm.xlu0 %2330, %v2335_v59   ;;  %v785_v44 = vadd.f32 %v784_v53, %v783_v52  ;;  %v3551_v55 = vld [vmem:[%s2596_s8 + $0x2a0] sm:$0xff]  ;;  %v632_v53 = vmul.f32 %v3271_v63, %v3271_v63  ;;  %v790_v59 = vsel %vm367_vm0, %v630_v15, 0.0  ;;  %v792_v0 = vsel %vm367_vm0, %v631_v27, 0.0  ;;  %v2339_v15 = vld [vmem:[%s5263_s1 + $0x28] sm:$0xff] }
  0xd2   : > { %v535_v52 = vsel %vm367_vm0, %v3551_v55, 0.0  ;;  %v2338_v63 = vld [vmem:[%s5263_s1 + $0x20] sm:$0xff] }
  0xd3   : > { %v3544_v20 = vpop.permute.xlu1 %1234  ;;  %v3546_v56 = vpop.permute.xlu0 %1229  ;;  %v787_v8 = vadd.f32 %v786_v10, %v785_v44  ;;  %v633_v10 = vmul.f32 %v3283_v17, %v3283_v17  ;;  %v536_v44 = vadd.f32 %v535_v52, %v534_v57  ;;  %v2341_v52 = vld [vmem:[%s5263_s1 + $0x38] sm:$0xff] }
  0xd4   : > { %5318 = vst [vmem:[#allocation36_spill] sm:$0xff] %v3544_v20  ;;  %5319 = vst [vmem:[#allocation37_spill] sm:$0xff] %v3546_v56  ;;  %v3572_v20 = vld [vmem:[%s2596_s8 + $0x2a8] sm:$0xff]  ;;  %v3635_v56 = vld [vmem:[%s2596_s8 + $0x2c0] sm:$0xff] }
  0xd5   : > { %1642 = vperm.xlu1 %2331, %v2336_v58   ;;  %1646 = vperm.xlu0 %2330, %v2337_v31   ;;  %v789_v58 = vadd.f32 %v788_v29, %v787_v8  ;;  %v634_v29 = vmul.f32 %v3297_v41, %v3297_v41  ;;  %v794_v31 = vsel %vm367_vm0, %v632_v53, 0.0  ;;  %v537_v8 = vsel %vm367_vm0, %v3572_v20, 0.0  ;;  %v2340_v53 = vld [vmem:[%s5263_s1 + $0x30] sm:$0xff] }
  0xd6   : > { %v796_v57 = vsel %vm367_vm0, %v633_v10, 0.0 }
  0xd7   : > { %v3565_v46 = vpop.permute.xlu1 %1244  ;;  %v3567_v13 = vpop.permute.xlu0 %1239  ;;  %v791_v3 = vadd.f32 %v790_v59, %v789_v58  ;;  %v635_v59 = vmul.f32 %v3309_v9, %v3309_v9 }
  0xd8   : > { %5320 = vst [vmem:[#allocation38_spill] sm:$0xff] %v3565_v46  ;;  %5321 = vst [vmem:[#allocation39_spill] sm:$0xff] %v3567_v13  ;;  %v3593_v46 = vld [vmem:[%s2596_s8 + $0x2b0] sm:$0xff]  ;;  %v3614_v13 = vld [vmem:[%s2596_s8 + $0x2b8] sm:$0xff] }
  0xd9   : > { %1650 = vperm.xlu1 %2331, %v2338_v63   ;;  %1654 = vperm.xlu0 %2330, %v2339_v15   ;;  %v793_v63 = vadd.f32 %v792_v0, %v791_v3  ;;  %v538_v0 = vadd.f32 %v537_v8, %v536_v44  ;;  %v636_v15 = vmul.f32 %v3323_v4, %v3323_v4  ;;  %v798_v3 = vsel %vm367_vm0, %v634_v29, 0.0  ;;  %v2342_v29 = vld [vmem:[%s5263_s1 + $0x40] sm:$0xff]  ;;  %v2343_v8 = vld [vmem:[%s5263_s1 + $0x48] sm:$0xff] }
  0xda   : > { %v800_v44 = vsel %vm367_vm0, %v635_v59, 0.0 }
  0xdb   : > { %v3586_v17 = vpop.permute.xlu1 %1254  ;;  %v3588_v27 = vpop.permute.xlu0 %1249  ;;  %v795_v58 = vadd.f32 %v794_v31, %v793_v63  ;;  %v637_v31 = vmul.f32 %v3335_v35, %v3335_v35 }
  0xdc   : > { %5322 = vst [vmem:[#allocation40_spill] sm:$0xff] %v3586_v17  ;;  %5323 = vst [vmem:[#allocation41_spill] sm:$0xff] %v3588_v27  ;;  %v539_v27 = vsel %vm367_vm0, %v3593_v46, 0.0 }
  0xdd   : > { %1658 = vperm.xlu1 %2331, %v2340_v53   ;;  %1662 = vperm.xlu0 %2330, %v2341_v52   ;;  %v797_v53 = vadd.f32 %v796_v57, %v795_v58  ;;  %v540_v57 = vadd.f32 %v539_v27, %v538_v0  ;;  %v638_v52 = vmul.f32 %v3349_v5, %v3349_v5  ;;  %v802_v58 = vsel %vm367_vm0, %v636_v15, 0.0  ;;  %v2344_v0 = vld [vmem:[%s5263_s1 + $0x50] sm:$0xff]  ;;  %v2345_v15 = vld [vmem:[%s5263_s1 + $0x58] sm:$0xff] }
  0xde   : > { %v804_v27 = vsel %vm367_vm0, %v637_v31, 0.0 }
  0xdf   : > { %v3607_v17 = vpop.permute.xlu1 %1264  ;;  %v3609_v10 = vpop.permute.xlu0 %1259  ;;  %v799_v63 = vadd.f32 %v798_v3, %v797_v53  ;;  %v639_v3 = vmul.f32 %v3361_v61, %v3361_v61 }
  0xe0   : > { %5324 = vst [vmem:[#allocation42_spill] sm:$0xff] %v3607_v17  ;;  %5325 = vst [vmem:[#allocation43_spill] sm:$0xff] %v3609_v10  ;;  %v541_v10 = vsel %vm367_vm0, %v3614_v13, 0.0 }
  0xe1   : > { %1666 = vperm.xlu1 %2331, %v2342_v29   ;;  %1670 = vperm.xlu0 %2330, %v2343_v8   ;;  %v801_v29 = vadd.f32 %v800_v44, %v799_v63  ;;  %v542_v44 = vadd.f32 %v541_v10, %v540_v57  ;;  %v640_v8 = vmul.f32 %v3375_v38, %v3375_v38  ;;  %v806_v63 = vsel %vm367_vm0, %v638_v52, 0.0  ;;  %v2346_v57 = vld [vmem:[%s5263_s1 + $0x60] sm:$0xff]  ;;  %v2347_v52 = vld [vmem:[%s5263_s1 + $0x68] sm:$0xff] }
  0xe2   : > { %v808_v10 = vsel %vm367_vm0, %v639_v3, 0.0 }
  0xe3   : > { %v3628_v17 = vpop.permute.xlu1 %1274  ;;  %v3630_v59 = vpop.permute.xlu0 %1269  ;;  %v803_v53 = vadd.f32 %v802_v58, %v801_v29  ;;  %v641_v58 = vmul.f32 %v3387_v12, %v3387_v12 }
  0xe4   : > { %5326 = vst [vmem:[#allocation44_spill] sm:$0xff] %v3628_v17  ;;  %5327 = vst [vmem:[#allocation45_spill] sm:$0xff] %v3630_v59  ;;  %v543_v59 = vsel %vm367_vm0, %v3635_v56, 0.0 }
  0xe5   : > { %1674 = vperm.xlu1 %2331, %v2344_v0   ;;  %1678 = vperm.xlu0 %2330, %v2345_v15   ;;  %v805_v0 = vadd.f32 %v804_v27, %v803_v53  ;;  %v544_v27 = vadd.f32 %v543_v59, %v542_v44  ;;  %v642_v15 = vmul.f32 %v3410_v1, %v3410_v1  ;;  %v810_v53 = vsel %vm367_vm0, %v640_v8, 0.0  ;;  %v2348_v44 = vld [vmem:[%s5263_s1 + $0x70] sm:$0xff]  ;;  %v2349_v8 = vld [vmem:[%s5263_s1 + $0x78] sm:$0xff] }
  0xe6   : > { %v812_v59 = vsel %vm367_vm0, %v641_v58, 0.0 }
  0xe7   : > { %v3649_v17 = vpop.permute.xlu1 %1284  ;;  %v3651_v31 = vpop.permute.xlu0 %1279  ;;  %v807_v29 = vadd.f32 %v806_v63, %v805_v0  ;;  %v643_v63 = vmul.f32 %v3431_v45, %v3431_v45 }
  0xe8   : > { %5328 = vst [vmem:[#allocation46_spill] sm:$0xff] %v3649_v17  ;;  %5329 = vst [vmem:[#allocation47_spill] sm:$0xff] %v3651_v31  ;;  %v545_v31 = vsel %vm367_vm0, %v3656_v24, 0.0 }
  0xe9   : > { %1682 = vperm.xlu1 %2331, %v2346_v57   ;;  %1686 = vperm.xlu0 %2330, %v2347_v52   ;;  %v809_v57 = vadd.f32 %v808_v10, %v807_v29  ;;  %v546_v10 = vadd.f32 %v545_v31, %v544_v27  ;;  %v644_v52 = vmul.f32 %v3452_v18, %v3452_v18  ;;  %v814_v29 = vsel %vm367_vm0, %v642_v15, 0.0  ;;  %v2350_v27 = vld [vmem:[%s5263_s1 + $0x80] sm:$0xff] }
  0xea   : > { %v816_v31 = vsel %vm367_vm0, %v643_v63, 0.0 }
  0xeb   : > { %v3670_v17 = vpop.permute.xlu1 %1294  ;;  %v3672_v3 = vpop.permute.xlu0 %1289  ;;  %v811_v0 = vadd.f32 %v810_v53, %v809_v57  ;;  %v645_v53 = vmul.f32 %v3473_v47, %v3473_v47  ;;  %v2351_v57 = vld [vmem:[%s5263_s1 + $0x88] sm:$0xff] }
  0xec   : > { %5330 = vst [vmem:[#allocation48_spill] sm:$0xff] %v3670_v17  ;;  %5331 = vst [vmem:[#allocation49_spill] sm:$0xff] %v3672_v3  ;;  %v547_v3 = vsel %vm367_vm0, %v3677_v19, 0.0 }
  0xed   : > { %1690 = vperm.xlu1 %2331, %v2348_v44   ;;  %1694 = vperm.xlu0 %2330, %v2349_v8   ;;  %v813_v44 = vadd.f32 %v812_v59, %v811_v0  ;;  %v548_v59 = vadd.f32 %v547_v3, %v546_v10  ;;  %v646_v8 = vmul.f32 %v3494_v14, %v3494_v14  ;;  %v818_v0 = vsel %vm367_vm0, %v644_v52, 0.0  ;;  %v2352_v10 = vld [vmem:[%s5263_s1 + $0x90] sm:$0xff] }
  0xee   : > { %v820_v3 = vsel %vm367_vm0, %v645_v53, 0.0 }
  0xef   : > { %v3691_v17 = vpop.permute.xlu1 %1304  ;;  %v3693_v58 = vpop.permute.xlu0 %1299  ;;  %v815_v15 = vadd.f32 %v814_v29, %v813_v44  ;;  %v3719_v29 = vld [vmem:[%s2596_s8 + $0x2e0] sm:$0xff]  ;;  %v647_v44 = vmul.f32 %v3515_v11, %v3515_v11 }
  0xf0   : > { %5332 = vst [vmem:[#allocation50_spill] sm:$0xff] %v3691_v17  ;;  %5333 = vst [vmem:[#allocation51_spill] sm:$0xff] %v3693_v58  ;;  %v549_v58 = vsel %vm367_vm0, %v3698_v32, 0.0  ;;  %v551_v30 = vsel %vm367_vm0, %v3719_v29, 0.0 }
  0xf1   : > { %1698 = vperm.xlu1 %2331, %v2350_v27   ;;  %1702 = vperm.xlu0 %2330, %v2351_v57   ;;  %v817_v27 = vadd.f32 %v816_v31, %v815_v15  ;;  %v2353_v57 = vld [vmem:[%s5263_s1 + $0x98] sm:$0xff]  ;;  %v550_v31 = vadd.f32 %v549_v58, %v548_v59  ;;  %v648_v15 = vmul.f32 %v3530_v49, %v3530_v49  ;;  %v824_v58 = vsel %vm367_vm0, %v647_v44, 0.0  ;;  %v2354_v59 = vld [vmem:[%s5263_s1 + $0xa0] sm:$0xff] }
  0xf3   : > { %v3712_v17 = vpop.permute.xlu1 %1314  ;;  %v3714_v63 = vpop.permute.xlu0 %1309  ;;  %v819_v52 = vadd.f32 %v818_v0, %v817_v27  ;;  %v3740_v0 = vld [vmem:[%s2596_s8 + $0x2e8] sm:$0xff]  ;;  %v649_v27 = vmul.f32 %v3551_v55, %v3551_v55 }
  0xf4   : > { %5334 = vst [vmem:[#allocation52_spill] sm:$0xff] %v3712_v17  ;;  %5335 = vst [vmem:[#allocation53_spill] sm:$0xff] %v3714_v63  ;;  %v822_v17 = vsel %vm367_vm0, %v646_v8, 0.0  ;;  %v553_v6 = vsel %vm367_vm0, %v3740_v0, 0.0 }
  0xf5   : > { %1706 = vperm.xlu1 %2331, %v2352_v10   ;;  %1710 = vperm.xlu0 %2330, %v2353_v57   ;;  %v821_v10 = vadd.f32 %v820_v3, %v819_v52  ;;  %v2355_v57 = vld [vmem:[%s5263_s1 + $0xa8] sm:$0xff]  ;;  %v552_v3 = vadd.f32 %v551_v30, %v550_v31  ;;  %v650_v52 = vmul.f32 %v3572_v20, %v3572_v20  ;;  %v828_v30 = vsel %vm367_vm0, %v649_v27, 0.0  ;;  %v2356_v31 = vld [vmem:[%s5263_s1 + $0xb0] sm:$0xff] }
  0xf7   : > { %v3733_v63 = vpop.permute.xlu1 %1324  ;;  %v3735_v53 = vpop.permute.xlu0 %1319  ;;  %v823_v8 = vadd.f32 %v822_v17, %v821_v10  ;;  %v3761_v17 = vld [vmem:[%s2596_s8 + $0x2f0] sm:$0xff]  ;;  %v651_v10 = vmul.f32 %v3593_v46, %v3593_v46 }
  0xf8   : > { %5336 = vst [vmem:[#allocation54_spill] sm:$0xff] %v3733_v63  ;;  %5337 = vst [vmem:[#allocation55_spill] sm:$0xff] %v3735_v53  ;;  %v826_v63 = vsel %vm367_vm0, %v648_v15, 0.0  ;;  %v555_v23 = vsel %vm367_vm0, %v3761_v17, 0.0 }
  0xf9   : > { %1714 = vperm.xlu1 %2331, %v2354_v59   ;;  %1718 = vperm.xlu0 %2330, %v2355_v57   ;;  %v825_v59 = vadd.f32 %v824_v58, %v823_v8  ;;  %v2357_v57 = vld [vmem:[%s5263_s1 + $0xb8] sm:$0xff]  ;;  %v554_v58 = vadd.f32 %v553_v6, %v552_v3  ;;  %v652_v8 = vmul.f32 %v3614_v13, %v3614_v13  ;;  %v832_v6 = vsel %vm367_vm0, %v651_v10, 0.0  ;;  %v2358_v3 = vld [vmem:[%s5263_s1 + $0xc0] sm:$0xff] }
  0xfb   : > { %v3754_v53 = vpop.permute.xlu1 %1334  ;;  %v3756_v44 = vpop.permute.xlu0 %1329  ;;  %v827_v15 = vadd.f32 %v826_v63, %v825_v59  ;;  %v3782_v63 = vld [vmem:[%s2596_s8 + $0x2f8] sm:$0xff]  ;;  %v653_v59 = vmul.f32 %v3635_v56, %v3635_v56 }
  0xfc   : > { %5338 = vst [vmem:[#allocation56_spill] sm:$0xff] %v3754_v53  ;;  %5339 = vst [vmem:[#allocation57_spill] sm:$0xff] %v3756_v44  ;;  %v830_v53 = vsel %vm367_vm0, %v650_v52, 0.0  ;;  %v557_v2 = vsel %vm367_vm0, %v3782_v63, 0.0 }
  0xfd   : > { %1722 = vperm.xlu1 %2331, %v2356_v31   ;;  %1726 = vperm.xlu0 %2330, %v2357_v57   ;;  %v829_v31 = vadd.f32 %v828_v30, %v827_v15  ;;  %v2359_v57 = vld [vmem:[%s5263_s1 + $0xc8] sm:$0xff]  ;;  %v654_v30 = vmul.f32 %v3656_v24, %v3656_v24  ;;  %v834_v15 = vsel %vm367_vm0, %v652_v8, 0.0  ;;  %v2361_v8 = vld [vmem:[%s5263_s1 + $0xd8] sm:$0xff] }
  0xff   : > { %v3775_v44 = vpop.permute.xlu1 %1344  ;;  %v3777_v27 = vpop.permute.xlu0 %1339  ;;  %v831_v52 = vadd.f32 %v830_v53, %v829_v31  ;;  %v655_v53 = vmul.f32 %v3677_v19, %v3677_v19  ;;  %v836_v31 = vsel %vm367_vm0, %v653_v59, 0.0 }
 0x100   : > { %5340 = vst [vmem:[#allocation58_spill] sm:$0xff] %v3775_v44  ;;  %5341 = vst [vmem:[#allocation59_spill] sm:$0xff] %v3777_v27  ;;  %v556_v44 = vadd.f32 %v555_v23, %v554_v58  ;;  %v2360_v23 = vld [vmem:[%s5263_s1 + $0xd0] sm:$0xff] }
 0x101   : > { %1730 = vperm.xlu1 %2331, %v2358_v3   ;;  %1734 = vperm.xlu0 %2330, %v2359_v57   ;;  %v833_v3 = vadd.f32 %v832_v6, %v831_v52  ;;  %v656_v6 = vmul.f32 %v3698_v32, %v3698_v32  ;;  %v838_v52 = vsel %vm367_vm0, %v654_v30, 0.0 }
 0x102   : > { %v558_v57 = vadd.f32 %v557_v2, %v556_v44  ;;  %v2363_v44 = vld [vmem:[%s5263_s1 + $0xe8] sm:$0xff] }
 0x103   : > { %v3796_v27 = vpop.permute.xlu1 %1354  ;;  %v3798_v10 = vpop.permute.xlu0 %1349  ;;  %v835_v58 = vadd.f32 %v834_v15, %v833_v3  ;;  %v840_v15 = vsel %vm367_vm0, %v655_v53, 0.0  ;;  %v2362_v3 = vld [vmem:[%s5263_s1 + $0xe0] sm:$0xff] }
 0x104   : > { %5342 = vst [vmem:[#allocation60_spill] sm:$0xff] %v3796_v27  ;;  %5343 = vst [vmem:[#allocation61_spill] sm:$0xff] %v3798_v10  ;;  %v559_v30 = vrot.slane %v558_v57, 4 }
 0x105   : > { %1738 = vperm.xlu1 %2331, %v2360_v23   ;;  %1742 = vperm.xlu0 %2330, %v2361_v8   ;;  %v837_v10 = vadd.f32 %v836_v31, %v835_v58  ;;  %v657_v23 = vmul.f32 %v3719_v29, %v3719_v29  ;;  %v658_v31 = vmul.f32 %v3740_v0, %v3740_v0  ;;  %v842_v58 = vsel %vm367_vm0, %v656_v6, 0.0  ;;  %v2365_v6 = vld [vmem:[%s5263_s1 + $0xf8] sm:$0xff] }
 0x107   : > { %v3814_v27 = vpop.permute.xlu1 %1364  ;;  %v3816_v59 = vpop.permute.xlu0 %1359  ;;  %v839_v2 = vadd.f32 %v838_v52, %v837_v10  ;;  %v844_v10 = vsel %vm367_vm0, %v657_v23, 0.0  ;;  %v2364_v52 = vld [vmem:[%s5263_s1 + $0xf0] sm:$0xff] }
 0x108   : > { %5344 = vst [vmem:[#allocation62_spill] sm:$0xff] %v3814_v27  ;;  %5345 = vst [vmem:[#allocation63_spill] sm:$0xff] %v3816_v59 }
 0x109   : > { %1746 = vperm.xlu1 %2331, %v2362_v3   ;;  %1750 = vperm.xlu0 %2330, %v2363_v44   ;;  %v841_v27 = vadd.f32 %v840_v15, %v839_v2  ;;  %v659_v3 = vmul.f32 %v3761_v17, %v3761_v17  ;;  %v660_v15 = vmul.f32 %v3782_v63, %v3782_v63  ;;  %v846_v2 = vsel %vm367_vm0, %v658_v31, 0.0 }
 0x10b   : > { %v3830_v8 = vpop.permute.xlu1 %1374  ;;  %v3832_v53 = vpop.permute.xlu0 %1369  ;;  %v843_v44 = vadd.f32 %v842_v58, %v841_v27  ;;  %v848_v60 = vsel %vm367_vm0, %v659_v3, 0.0  ;;  %v2366_v27 = vld [vmem:[%s5263_s1 + $0x100] sm:$0xff]  ;;  %v850_v31 = vsel %vm367_vm0, %v660_v15, 0.0  ;;  %v2368_v3 = vld [vmem:[%s5263_s1 + $0x110] sm:$0xff] }
 0x10c   : > { %5346 = vst [vmem:[#allocation64_spill] sm:$0xff] %v3830_v8  ;;  %5347 = vst [vmem:[#allocation65_spill] sm:$0xff] %v3832_v53  ;;  %v560_v8 = vadd.f32 %v559_v30, %v558_v57  ;;  %v2367_v57 = vld [vmem:[%s5263_s1 + $0x108] sm:$0xff] }
 0x10d   : > { %1754 = vperm.xlu1 %2331, %v2364_v52   ;;  %1758 = vperm.xlu0 %2330, %v2365_v6   ;;  %v845_v59 = vadd.f32 %v844_v10, %v843_v44 }
 0x10e   : > { %v561_v30 = vrot.slane %v560_v8, 2 }
 0x10f   : > { %v3846_v53 = vpop.permute.xlu1 %1384  ;;  %v3848_v23 = vpop.permute.xlu0 %1379  ;;  %v847_v58 = vadd.f32 %v846_v2, %v845_v59  ;;  %v2369_v59 = vld [vmem:[%s5263_s1 + $0x118] sm:$0xff] }
 0x110   : > { %5348 = vst [vmem:[#allocation66_spill] sm:$0xff] %v3846_v53  ;;  %5349 = vst [vmem:[#allocation67_spill] sm:$0xff] %v3848_v23  ;;  %v562_v2 = vadd.f32 %v561_v30, %v560_v8  ;;  %v4026_v23 = vld [vmem:[%s2596_s8 + $0x58] sm:$0xff] }
 0x111   : > { %1762 = vperm.xlu1 %2331, %v2366_v27   ;;  %1766 = vperm.xlu0 %2330, %v2367_v57   ;;  %v849_v10 = vadd.f32 %v848_v60, %v847_v58  ;;  %v2370_v60 = vld [vmem:[%s5263_s1 + $0x120] sm:$0xff]  ;;  %5384 = vst [vmem:[#allocation102_spill] sm:$0xff] %v4026_v23  ;;  %v4137_v23 = vld [vmem:[%s2596_s8 + $0x190] sm:$0xff] }
 0x113   : > { %v3858_v52 = vpop.permute.xlu1 %1394  ;;  %v3860_v6 = vpop.permute.xlu0 %1389  ;;  %v851_v44 = vadd.f32 %v850_v31, %v849_v10  ;;  %v2371_v31 = vld [vmem:[%s5263_s1 + $0x128] sm:$0xff]  ;;  %v563_v10 = vrot.slane %v562_v2, 1 }
 0x114   : > { %5350 = vst [vmem:[#allocation68_spill] sm:$0xff] %v3858_v52  ;;  %5351 = vst [vmem:[#allocation69_spill] sm:$0xff] %v3860_v6  ;;  %v4012_v52 = vld [vmem:[%s2596_s8 + $0x48] sm:$0xff]  ;;  %v4017_v6 = vld [vmem:[%s2596_s8 + $0x40] sm:$0xff] }
 0x115   : > { %1770 = vperm.xlu1 %2331, %v2368_v3   ;;  %1774 = vperm.xlu0 %2330, %v2369_v59   ;;  %v852_v57 = vrot.slane %v851_v44, 4  ;;  %v2372_v59 = vld [vmem:[%s5263_s1 + $0x130] sm:$0xff]  ;;  %5380 = vst [vmem:[#allocation98_spill] sm:$0xff] %v4012_v52  ;;  %5381 = vst [vmem:[#allocation99_spill] sm:$0xff] %v4017_v6  ;;  %v4142_v6 = vld [vmem:[%s2596_s8 + $0x1a8] sm:$0xff] }
 0x116   : > { %v4147_v52 = vld [vmem:[%s2596_s8 + $0x1a0] sm:$0xff] }
 0x117   : > { %v3868_v27 = vpop.permute.xlu1 %1404  ;;  %v3870_v15 = vpop.permute.xlu0 %1399  ;;  %v853_v58 = vadd.f32 %v852_v57, %v851_v44  ;;  %v2373_v44 = vld [vmem:[%s5263_s1 + $0x138] sm:$0xff]  ;;  %v564_v57 = vadd.f32 %v563_v10, %v562_v2 }
 0x118   : > { %5352 = vst [vmem:[#allocation70_spill] sm:$0xff] %v3868_v27  ;;  %5353 = vst [vmem:[#allocation71_spill] sm:$0xff] %v3870_v15  ;;  %v2377_v10 = vld [vmem:[%s5263_s1 + $0x158] sm:$0xff] }
 0x119   : > { %1778 = vperm.xlu1 %2331, %v2370_v60   ;;  %1782 = vperm.xlu0 %2330, %v2371_v31   ;;  %v854_v30 = vrot.slane %v853_v58, 2  ;;  %v3898_v15 = vmul.f32 0.0013020834, %v564_v57 }
 0x11b   : > { %v3878_v3 = vpop.permute.xlu1 %1414  ;;  %v3880_v8 = vpop.permute.xlu0 %1409  ;;  %v855_v60 = vadd.f32 %v854_v30, %v853_v58  ;;  %v2376_v58 = vld [vmem:[%s5263_s1 + $0x150] sm:$0xff]  ;;  %v859_v30 = vmul.f32 %v3898_v15, %v564_v57  ;;  %v903_v26 = vsub.f32 %v2410_v37, %v3898_v15 }
 0x11c   : > { %5354 = vst [vmem:[#allocation72_spill] sm:$0xff] %v3878_v3  ;;  %5355 = vst [vmem:[#allocation73_spill] sm:$0xff] %v3880_v8  ;;  %v2374_v3 = vld [vmem:[%s5263_s1 + $0x140] sm:$0xff]  ;;  %v2380_v57 = vld [vmem:[%s5263_s1 + $0x170] sm:$0xff] }
 0x11d   : > { %1786 = vperm.xlu1 %2331, %v2372_v59   ;;  %1790 = vperm.xlu0 %2330, %v2373_v44   ;;  %v2375_v59 = vld [vmem:[%s5263_s1 + $0x148] sm:$0xff]  ;;  %v856_v8 = vrot.slane %v855_v60, 1 }
 0x11f   : > { %v3888_v27 = vpop.permute.xlu1 %1424  ;;  %v3890_v31 = vpop.permute.xlu0 %1419 }
 0x120   : > { %5356 = vst [vmem:[#allocation74_spill] sm:$0xff] %v3888_v27  ;;  %5357 = vst [vmem:[#allocation75_spill] sm:$0xff] %v3890_v31 }
 0x121   : > { %1794 = vperm.xlu1 %2331, %v2374_v3   ;;  %1798 = vperm.xlu0 %2330, %v2375_v59   ;;  %v857_v3 = vadd.f32 %v856_v8, %v855_v60  ;;  %v2381_v60 = vld [vmem:[%s5263_s1 + $0x178] sm:$0xff] }
 0x123   : > { %v3900_v44 = vpop.permute.xlu1 %1434  ;;  %v3902_v2 = vpop.permute.xlu0 %1429 }
 0x124   : > { %5358 = vst [vmem:[#allocation76_spill] sm:$0xff] %v3900_v44  ;;  %5359 = vst [vmem:[#allocation77_spill] sm:$0xff] %v3902_v2  ;;  %v2378_v44 = vld [vmem:[%s5263_s1 + $0x160] sm:$0xff]  ;;  %v860_v2 = vsub.f32 %v857_v3, %v859_v30  ;;  %v2383_v30 = vld [vmem:[%s5263_s1 + $0x188] sm:$0xff] }
 0x125   : > { %1802 = vperm.xlu1 %2331, %v2376_v58   ;;  %1806 = vperm.xlu0 %2330, %v2377_v10   ;;  %v2379_v58 = vld [vmem:[%s5263_s1 + $0x168] sm:$0xff]  ;;  %v2382_v3 = vld [vmem:[%s5263_s1 + $0x180] sm:$0xff] }
 0x127   : > { %v3911_v59 = vpop.permute.xlu1 %1444  ;;  %v3913_v27 = vpop.permute.xlu0 %1439 }
 0x128   : > { %5360 = vst [vmem:[#allocation78_spill] sm:$0xff] %v3911_v59  ;;  %5361 = vst [vmem:[#allocation79_spill] sm:$0xff] %v3913_v27  ;;  %v4007_v27 = vld [vmem:[%s2596_s8 + $0x30] sm:$0xff] }
 0x129   : > { %1810 = vperm.xlu1 %2331, %v2378_v44   ;;  %1814 = vperm.xlu0 %2330, %v2379_v58   ;;  %v861_v44 = vmax.f32 %v860_v2, 0.0  ;;  %v2384_v2 = vld [vmem:[%s5263_s1 + $0x190] sm:$0xff]  ;;  %5379 = vst [vmem:[#allocation97_spill] sm:$0xff] %v4007_v27  ;;  %v4193_v27 = vld [vmem:[%s2596_s8 + $0x1e0] sm:$0xff] }
 0x12b   : > { %v3921_v31 = vpop.permute.xlu1 %1454  ;;  %v3923_v8 = vpop.permute.xlu0 %1449  ;;  %v862_v58 = vmul.f32 0.0013037809, %v861_v44 }
 0x12c   : > { %5362 = vst [vmem:[#allocation80_spill] sm:$0xff] %v3921_v31  ;;  %5363 = vst [vmem:[#allocation81_spill] sm:$0xff] %v3923_v8  ;;  %v3994_v31 = vld [vmem:[%s2596_s8 + $0x20] sm:$0xff]  ;;  %v4002_v8 = vld [vmem:[%s2596_s8 + $0x38] sm:$0xff] }
 0x12d   : > { %1818 = vperm.xlu1 %2331, %v2380_v57   ;;  %1822 = vperm.xlu0 %2330, %v2381_v60   ;;  %5377 = vst [vmem:[#allocation95_spill] sm:$0xff] %v3994_v31  ;;  %5378 = vst [vmem:[#allocation96_spill] sm:$0xff] %v4002_v8 }
 0x12f   : > { %v3931_v10 = vpop.permute.xlu1 %1464  ;;  %v3933_v59 = vpop.permute.xlu0 %1459 }
 0x130   : > { %5364 = vst [vmem:[#allocation82_spill] sm:$0xff] %v3931_v10  ;;  %5365 = vst [vmem:[#allocation83_spill] sm:$0xff] %v3933_v59  ;;  %v863_v10 = vadd.f32 1e-05, %v862_v58  ;;  %v3989_v59 = vld [vmem:[%s2596_s8 + $0x28] sm:$0xff] }
 0x131   : > { %1826 = vperm.xlu1 %2331, %v2382_v3   ;;  %1830 = vperm.xlu0 %2330, %v2383_v30   ;;  %v2385_v3 = vld [vmem:[%s5263_s1 + $0x198] sm:$0xff]  ;;  %5376 = vst [vmem:[#allocation94_spill] sm:$0xff] %v3989_v59 }
 0x132   : > { %2332 = vrsqrt.f32 %v863_v10  ;;  %v2390_v10 = vld [vmem:[%s5263_s1 + $0x1b0] sm:$0xff]  ;;  %v4208_v59 = vld [vmem:[%s2596_s8 + $0x1f8] sm:$0xff] }
 0x133   : > { %v3941_v57 = vpop.permute.xlu1 %1474  ;;  %v3943_v60 = vpop.permute.xlu0 %1469 }
 0x134   : > { %5366 = vst [vmem:[#allocation84_spill] sm:$0xff] %v3941_v57  ;;  %5367 = vst [vmem:[#allocation85_spill] sm:$0xff] %v3943_v60  ;;  %v2386_v57 = vld [vmem:[%s5263_s1 + $0x1a0] sm:$0xff] }
 0x135   : > { %1834 = vperm.xlu1 %2331, %v2384_v2   ;;  %1838 = vperm.xlu0 %2330, %v2385_v3   ;;  %v2387_v2 = vld [vmem:[%s5263_s1 + $0x1a8] sm:$0xff]  ;;  %v3971_v60 = vld [vmem:[%s2596_s8] sm:$0xff] }
 0x136   : > { %5373 = vst [vmem:[#allocation91_spill] sm:$0xff] %v3971_v60  ;;  %v4243_v60 = vld [vmem:[%s2596_s8 + $0x220] sm:$0xff] }
 0x137   : > { %v3951_v30 = vpop.permute.xlu1 %1484  ;;  %v3953_v44 = vpop.permute.xlu0 %1479  ;;  %5398 = vst [vmem:[#allocation116_spill] sm:$0xff] %v4243_v60 }
 0x138   : > { %5368 = vst [vmem:[#allocation86_spill] sm:$0xff] %v3951_v30  ;;  %5369 = vst [vmem:[#allocation87_spill] sm:$0xff] %v3953_v44  ;;  %v3966_v30 = vld [vmem:[%s2596_s8 + $0x10] sm:$0xff] }
 0x139   : > { %1842 = vperm.xlu1 %2331, %v2386_v57   ;;  %1846 = vperm.xlu0 %2330, %v2387_v2   ;;  %5372 = vst [vmem:[#allocation90_spill] sm:$0xff] %v3966_v30  ;;  %v3979_v2 = vld [vmem:[%s2596_s8 + $0x18] sm:$0xff]  ;;  %v2408_v57 = vld [vmem:[%s5263_s1 + $0x1c0] sm:$0xff] }
 0x13a   : > { %5374 = vst [vmem:[#allocation92_spill] sm:$0xff] %v3979_v2  ;;  %v2442_v2 = vld [vmem:[%s5263_s1 + $0x1e0] sm:$0xff] }
 0x13b   : > { %v3961_v58 = vpop.permute.xlu1 %1494  ;;  %v3963_v3 = vpop.permute.xlu0 %1489 }
 0x13c   : > { %5370 = vst [vmem:[#allocation88_spill] sm:$0xff] %v3961_v58  ;;  %5371 = vst [vmem:[#allocation89_spill] sm:$0xff] %v3963_v3  ;;  %v3984_v3 = vld [vmem:[%s2596_s8 + $0x8] sm:$0xff]  ;;  %v2395_v58 = vld [vmem:[%s5263_s1 + $0x1b8] sm:$0xff]  ;;  %v4129_v54 = vpop.eup %2332 }
 0x13d   : > { %1850 = vperm.xlu1 %2331, %v2390_v10   ;;  %5375 = vst [vmem:[#allocation93_spill] sm:$0xff] %v3984_v3  ;;  %1854 = vperm.xlu0 %2330, %v2395_v58   ;;  %v904_v10 = vsub.f32 %v2409_v39, %v3898_v15  ;;  %v4073_v58 = vld [vmem:[%s2596_s8 + $0x148] sm:$0xff]  ;;  %v4086_v39 = vld [vmem:[%s2596_s8 + $0x158] sm:$0xff]  ;;  %v4205_v33 = vmul.f32 %v4129_v54, %v903_v26  ;;  %v4213_v3 = vld [vmem:[%s2596_s8 + $0x1f0] sm:$0xff] }
 0x13e   : > { %v5402_v30 = vsub.f32 %v4086_v39, %v3898_v15 }
 0x13f   : > { %v4021_v53 = vpop.permute.xlu1 %1504  ;;  %v4023_v44 = vpop.permute.xlu0 %1499  ;;  %v4202_v31 = vmul.f32 %v4129_v54, %v904_v10  ;;  %5397 = vst [vmem:[#allocation115_spill] sm:$0xff] %v4205_v33  ;;  %v4233_v33 = vld [vmem:[%s2596_s8 + $0x210] sm:$0xff] }
 0x140   : > { %5382 = vst [vmem:[#allocation100_spill] sm:$0xff] %v4021_v53  ;;  %5383 = vst [vmem:[#allocation101_spill] sm:$0xff] %v4023_v44  ;;  %v4041_v53 = vld [vmem:[%s2596_s8 + $0x60] sm:$0xff] }
 0x141   : > { %5387 = vst [vmem:[#allocation105_spill] sm:$0xff] %v4041_v53  ;;  %1858 = vperm.xlu1 %2331, %v2408_v57   ;;  %v4078_v44 = vld [vmem:[%s2596_s8 + $0x140] sm:$0xff]  ;;  %v2413_v57 = vld [vmem:[%s5263_s1 + $0x1c8] sm:$0xff]  ;;  %v4115_v53 = vld [vmem:[%s2596_s8 + $0x170] sm:$0xff] }
 0x142   : > { %1862 = vperm.xlu0 %2330, %v2413_v57   ;;  %v2431_v57 = vld [vmem:[%s5263_s1 + $0x1d8] sm:$0xff]  ;;  %5396 = vst [vmem:[#allocation114_spill] sm:$0xff] %v4202_v31  ;;  %v5401_v26 = vsub.f32 %v4078_v44, %v3898_v15  ;;  %v5405_v44 = vsub.f32 %v4096_v42, %v3898_v15 }
 0x143   : > { %v4105_v34 = vpop.permute.xlu1 %1514  ;;  %v4107_v37 = vpop.permute.xlu0 %1509  ;;  %v4228_v31 = vld [vmem:[%s2596_s8 + $0x218] sm:$0xff] }
 0x144   : > { %5392 = vst [vmem:[#allocation110_spill] sm:$0xff] %v4105_v34  ;;  %5393 = vst [vmem:[#allocation111_spill] sm:$0xff] %v4107_v37  ;;  %v4125_v34 = vld [vmem:[%s2596_s8 + $0x180] sm:$0xff]  ;;  %v4264_v60 = vmul.f32 %v4129_v54, %v5401_v26  ;;  %v4286_v26 = vmul.f32 %v4129_v54, %v5405_v44 }
 0x145   : > { %1866 = vperm.xlu1 %2331, %v2426_v7   ;;  %v4270_v7 = vmul.f32 %v4129_v54, %v5402_v30  ;;  %v5406_v30 = vsub.f32 %v4101_v40, %v3898_v15 }
 0x146   : > { %1870 = vperm.xlu0 %2330, %v2431_v57   ;;  %v2444_v57 = vld [vmem:[%s5263_s1 + $0x1e8] sm:$0xff] }
 0x147   : > { %v4197_v8 = vpop.permute.xlu1 %1524  ;;  %v4199_v37 = vpop.permute.xlu0 %1519  ;;  %5403 = vst [vmem:[#allocation118_spill] sm:$0xff] %v4270_v7  ;;  %v4292_v39 = vmul.f32 %v4129_v54, %v5406_v30  ;;  %v5408_v7 = vsub.f32 %v4115_v53, %v3898_v15  ;;  %v5411_v30 = vsub.f32 %v4132_v48, %v3898_v15 }
 0x148   : > { %5394 = vst [vmem:[#allocation112_spill] sm:$0xff] %v4197_v8  ;;  %5395 = vst [vmem:[#allocation113_spill] sm:$0xff] %v4199_v37  ;;  %v4218_v8 = vld [vmem:[%s2596_s8 + $0x208] sm:$0xff]  ;;  %v4223_v37 = vld [vmem:[%s2596_s8 + $0x200] sm:$0xff] }
 0x149   : > { %1874 = vperm.xlu1 %2331, %v2442_v2   ;;  %v5399_v2 = vsub.f32 %v4073_v58, %v3898_v15  ;;  %v4304_v42 = vmul.f32 %v4129_v54, %v5408_v7  ;;  %v5410_v7 = vsub.f32 %v4125_v34, %v3898_v15  ;;  %v4344_v40 = vmul.f32 %v4129_v54, %v5411_v30 }
 0x14a   : > { %1878 = vperm.xlu0 %2330, %v2444_v57   ;;  %v5404_v57 = vsub.f32 %v4091_v22, %v3898_v15  ;;  %v5407_v22 = vsub.f32 %v4110_v25, %v3898_v15  ;;  %v2446_v25 = vld [vmem:[%s5263_s1 + $0x1f8] sm:$0xff]  ;;  %v5416_v30 = vsub.f32 %v4155_v36, %v3898_v15  ;;  %v5424_v36 = vsub.f32 %v4178_v28, %v3898_v15 }
 0x14b   : > { %v4258_v10 = vmul.f32 %v4129_v54, %v5399_v2  ;;  %v4278_v2 = vpop.permute.xlu1 %1534  ;;  %v4338_v53 = vmul.f32 %v4129_v54, %v5410_v7  ;;  %v5415_v7 = vsub.f32 %v4147_v52, %v3898_v15  ;;  %v5422_v52 = vsub.f32 %v4170_v62, %v3898_v15 }
 0x14c   : > { %v4276_v58 = vmul.f32 %v4129_v54, %v5404_v57  ;;  %v4298_v57 = vmul.f32 %v4129_v54, %v5407_v22  ;;  %v2445_v22 = vld [vmem:[%s5263_s1 + $0x1f0] sm:$0xff] }
 0x14d   : > { %5400 = vst [vmem:[#allocation117_spill] sm:$0xff] %v4258_v10  ;;  %v4280_v10 = vpop.permute.xlu0 %1529  ;;  %1882 = vperm.xlu1 %2331, %v2445_v22   ;;  %v5409_v22 = vsub.f32 %v4120_v16, %v3898_v15  ;;  %v4362_v48 = vmul.f32 %v4129_v54, %v5415_v7  ;;  %v4418_v7 = vmul.f32 %v4129_v54, %v5424_v36 }
 0x14e   : > { %1886 = vperm.xlu0 %2330, %v2446_v25   ;;  %v5412_v25 = vsub.f32 %v4137_v23, %v3898_v15  ;;  %v4368_v23 = vmul.f32 %v4129_v54, %v5416_v30  ;;  %v2448_v30 = vld [vmem:[%s5263_s1 + $0x208] sm:$0xff]  ;;  %v5432_v36 = vsub.f32 %v4208_v59, %v3898_v15  ;;  %v5440_v59 = vsub.f32 %v4228_v31, %v3898_v15 }
 0x14f   : > { %v4332_v44 = vmul.f32 %v4129_v54, %v5409_v22  ;;  %v5413_v22 = vsub.f32 %v4142_v6, %v3898_v15  ;;  %5425 = vst [vmem:[#allocation124_spill] sm:$0xff] %v4418_v7  ;;  %v5467_v7 = vld [vmem:[#allocation97_spill] sm:$0xff] }
 0x150   : > { %v4350_v16 = vmul.f32 %v4129_v54, %v5412_v25  ;;  %5417 = vst [vmem:[#allocation120_spill] sm:$0xff] %v4368_v23  ;;  %v5418_v25 = vsub.f32 %v4160_v43, %v3898_v15  ;;  %v2447_v43 = vld [vmem:[%s5263_s1 + $0x200] sm:$0xff] }
 0x151   : > { %v4356_v34 = vmul.f32 %v4129_v54, %v5413_v22  ;;  %v4376_v22 = vpop.permute.xlu1 %1638  ;;  %1890 = vperm.xlu1 %2331, %v2447_v43   ;;  %v5420_v43 = vsub.f32 %v4165_v21, %v3898_v15 }
 0x152   : > { %v4374_v6 = vmul.f32 %v4129_v54, %v5418_v25  ;;  %1894 = vperm.xlu0 %2330, %v2448_v30   ;;  %v4412_v25 = vmul.f32 %v4129_v54, %v5422_v52  ;;  %v5426_v30 = vsub.f32 %v4183_v50, %v3898_v15  ;;  %v5430_v52 = vsub.f32 %v4193_v27, %v3898_v15 }
 0x153   : > { %5414 = vst [vmem:[#allocation119_spill] sm:$0xff] %v4356_v34  ;;  %v4378_v34 = vpop.permute.xlu0 %1634  ;;  %v4406_v23 = vmul.f32 %v4129_v54, %v5420_v43  ;;  %v5428_v43 = vsub.f32 %v4188_v51, %v3898_v15  ;;  %v4442_v50 = vmul.f32 %v4129_v54, %v5432_v36  ;;  %v2450_v36 = vld [vmem:[%s5263_s1 + $0x218] sm:$0xff]  ;;  %v5438_v27 = vsub.f32 %v4223_v37, %v3898_v15 }
 0x154   : > { %5419 = vst [vmem:[#allocation121_spill] sm:$0xff] %v4374_v6  ;;  %5423 = vst [vmem:[#allocation123_spill] sm:$0xff] %v4412_v25  ;;  %v4424_v21 = vmul.f32 %v4129_v54, %v5426_v30  ;;  %v4436_v28 = vmul.f32 %v4129_v54, %v5430_v52  ;;  %v5434_v30 = vsub.f32 %v4213_v3, %v3898_v15  ;;  %v2449_v3 = vld [vmem:[%s5263_s1 + $0x210] sm:$0xff]  ;;  %v5492_v25 = vld [vmem:[#allocation9_spill] sm:$0xff] }
 0x155   : > { %5421 = vst [vmem:[#allocation122_spill] sm:$0xff] %v4406_v23  ;;  %v4430_v62 = vmul.f32 %v4129_v54, %v5428_v43  ;;  %5433 = vst [vmem:[#allocation128_spill] sm:$0xff] %v4442_v50  ;;  %v4450_v43 = vpop.permute.xlu1 %1642  ;;  %1898 = vperm.xlu1 %2331, %v2449_v3   ;;  %v5436_v3 = vsub.f32 %v4218_v8, %v3898_v15  ;;  %v4492_v52 = vmul.f32 %v4129_v54, %v5440_v59 }
 0x156   : > { %5427 = vst [vmem:[#allocation125_spill] sm:$0xff] %v4424_v21  ;;  %5431 = vst [vmem:[#allocation127_spill] sm:$0xff] %v4436_v28  ;;  %v4448_v51 = vmul.f32 %v4129_v54, %v5434_v30  ;;  %1902 = vperm.xlu0 %2330, %v2450_v36   ;;  %v4486_v30 = vmul.f32 %v4129_v54, %v5438_v27  ;;  %v5442_v36 = vsub.f32 %v4233_v33, %v3898_v15  ;;  %v5446_v27 = vld [vmem:[#allocation116_spill] sm:$0xff] }
 0x157   : > { %5429 = vst [vmem:[#allocation126_spill] sm:$0xff] %v4430_v62  ;;  %v4452_v62 = vpop.permute.xlu0 %1646  ;;  %v4480_v50 = vmul.f32 %v4129_v54, %v5436_v3  ;;  %5441 = vst [vmem:[#allocation132_spill] sm:$0xff] %v4492_v52  ;;  %v5444_v3 = vsub.f32 %v3297_v41, %v3898_v15  ;;  %v5449_v59 = vsub.f32 %v3323_v4, %v3898_v15  ;;  %v5455_v52 = vld [vmem:[#allocation91_spill] sm:$0xff]  ;;  %v5465_v28 = vld [vmem:[#allocation96_spill] sm:$0xff] }
 0x158   : > { %5435 = vst [vmem:[#allocation129_spill] sm:$0xff] %v4448_v51  ;;  %5439 = vst [vmem:[#allocation131_spill] sm:$0xff] %v4486_v30  ;;  %v4498_v8 = vmul.f32 %v4129_v54, %v5442_v36  ;;  %v5451_v36 = vsub.f32 %v3309_v9, %v3898_v15  ;;  %v5456_v4 = vsub.f32 %v5455_v52, %v3898_v15  ;;  %v5463_v51 = vld [vmem:[#allocation95_spill] sm:$0xff] }
 0x159   : > { %5437 = vst [vmem:[#allocation130_spill] sm:$0xff] %v4480_v50  ;;  %v4504_v37 = vmul.f32 %v4129_v54, %v5444_v3  ;;  %v5447_v50 = vsub.f32 %v5446_v27, %v3898_v15  ;;  %v4516_v33 = vmul.f32 %v4129_v54, %v5449_v59  ;;  %v4524_v3 = vpop.permute.xlu1 %1650  ;;  %v5453_v27 = vld [vmem:[#allocation90_spill] sm:$0xff]  ;;  %v5468_v21 = vsub.f32 %v5467_v7, %v3898_v15 }
 0x15a   : > { %5443 = vst [vmem:[#allocation133_spill] sm:$0xff] %v4498_v8  ;;  %v4522_v41 = vmul.f32 %v4129_v54, %v5451_v36  ;;  %v961_v59 = vmul.f32 %v4129_v54, %v5456_v4  ;;  %v5473_v7 = vsub.f32 %v3375_v38, %v3898_v15 }
 0x15b   : > { %5445 = vst [vmem:[#allocation134_spill] sm:$0xff] %v4504_v37  ;;  %v4510_v31 = vmul.f32 %v4129_v54, %v5447_v50  ;;  %5450 = vst [vmem:[#allocation135_spill] sm:$0xff] %v4516_v33  ;;  %v4526_v37 = vpop.permute.xlu0 %1654  ;;  %v5454_v50 = vsub.f32 %v5453_v27, %v3898_v15  ;;  %v5457_v33 = vld [vmem:[#allocation92_spill] sm:$0xff]  ;;  %v2451_v27 = vld [vmem:[%s5263_s1 + $0x220] sm:$0xff] }
 0x15c   : > { %5452 = vst [vmem:[#allocation136_spill] sm:$0xff] %v4522_v41  ;;  %v5458_v9 = vsub.f32 %v5457_v33, %v3898_v15  ;;  %v5459_v41 = vld [vmem:[#allocation93_spill] sm:$0xff]  ;;  %1906 = vperm.xlu1 %2331, %v2451_v27   ;;  %v5464_v33 = vsub.f32 %v5463_v51, %v3898_v15  ;;  %v967_v27 = vmul.f32 %v4129_v54, %v5468_v21 }
 0x15d   : > { %5448 = vst [vmem:[#allocation116_spill] sm:$0xff] %v4510_v31  ;;  %v963_v31 = vmul.f32 %v4129_v54, %v5454_v50  ;;  %v5460_v8 = vsub.f32 %v5459_v41, %v3898_v15  ;;  %v5461_v50 = vld [vmem:[#allocation94_spill] sm:$0xff]  ;;  %v5466_v41 = vsub.f32 %v5465_v28, %v3898_v15  ;;  %v5469_v51 = vsub.f32 %v3349_v5, %v3898_v15 }
 0x15e   : > { %v964_v36 = vmul.f32 %v4129_v54, %v5458_v9  ;;  %v5462_v52 = vsub.f32 %v5461_v50, %v3898_v15  ;;  %v965_v9 = vmul.f32 %v4129_v54, %v5464_v33  ;;  %v2452_v50 = vld [vmem:[%s5263_s1 + $0x228] sm:$0xff]  ;;  %v5471_v28 = vsub.f32 %v3335_v35, %v3898_v15 }
 0x15f   : > { %v962_v30 = vmul.f32 %v4129_v54, %v5460_v8  ;;  %v968_v8 = vmul.f32 %v4129_v54, %v5466_v41  ;;  %1910 = vperm.xlu0 %2330, %v2452_v50   ;;  %v4582_v21 = vmul.f32 %v4129_v54, %v5473_v7  ;;  %v5475_v41 = vsub.f32 %v3361_v61, %v3898_v15 }
 0x160   : > { %v966_v4 = vmul.f32 %v4129_v54, %v5462_v52  ;;  %v4570_v52 = vmul.f32 %v4129_v54, %v5469_v51  ;;  %v4576_v33 = vmul.f32 %v4129_v54, %v5471_v28  ;;  %v5477_v50 = vsub.f32 %v3410_v1, %v3898_v15 }
 0x161   : > { %5474 = vst [vmem:[#allocation92_spill] sm:$0xff] %v4582_v21  ;;  %v4588_v5 = vmul.f32 %v4129_v54, %v5475_v41  ;;  %v5479_v51 = vsub.f32 %v3387_v12, %v3898_v15  ;;  %v5481_v28 = vsub.f32 %v3452_v18, %v3898_v15  ;;  %v5483_v7 = vsub.f32 %v3431_v45, %v3898_v15  ;;  %v4614_v41 = vpop.permute.xlu1 %1658  ;;  %v5485_v12 = vld [vmem:[#allocation2_spill] sm:$0xff]  ;;  %v5487_v21 = vld [vmem:[#allocation4_spill] sm:$0xff]  ;;  %v5488_v18 = vld [vmem:[#allocation5_spill] sm:$0xff] }
 0x162   : > { %5470 = vst [vmem:[#allocation90_spill] sm:$0xff] %v4570_v52  ;;  %5472 = vst [vmem:[#allocation91_spill] sm:$0xff] %v4576_v33  ;;  %v4594_v35 = vmul.f32 %v4129_v54, %v5477_v50  ;;  %v4616_v50 = vpop.permute.xlu0 %1662  ;;  %v1538_v52 = vmul.f32 %v5488_v18, %v962_v30  ;;  %v5489_v45 = vld [vmem:[#allocation6_spill] sm:$0xff]  ;;  %v5491_v33 = vld [vmem:[#allocation8_spill] sm:$0xff]  ;;  %v1543_v6 = vmul.f32 %v5492_v25, %v967_v27 }
 0x163   : > { %5476 = vst [vmem:[#allocation93_spill] sm:$0xff] %v4588_v5  ;;  %v4600_v38 = vmul.f32 %v4129_v54, %v5479_v51  ;;  %v4606_v61 = vmul.f32 %v4129_v54, %v5481_v28  ;;  %v4612_v1 = vmul.f32 %v4129_v54, %v5483_v7  ;;  %v5486_v51 = vld [vmem:[#allocation3_spill] sm:$0xff]  ;;  %v1540_v5 = vmul.f32 %v5487_v21, %v964_v36  ;;  %v2453_v28 = vld [vmem:[%s5263_s1 + $0x230] sm:$0xff]  ;;  %v5504_v18 = vld [vmem:[#allocation98_spill] sm:$0xff] }
 0x164   : > { %5478 = vst [vmem:[#allocation94_spill] sm:$0xff] %v4594_v35  ;;  %v1539_v35 = vmul.f32 %v5485_v12, %v963_v31  ;;  %1914 = vperm.xlu1 %2331, %v2453_v28   ;;  %v1542_v7 = vmul.f32 %v5489_v45, %v966_v4  ;;  %v1544_v23 = vmul.f32 %v5491_v33, %v968_v8  ;;  %v2454_v31 = vld [vmem:[%s5263_s1 + $0x238] sm:$0xff]  ;;  %v5506_v45 = vld [vmem:[#allocation99_spill] sm:$0xff] }
 0x165   : > { %5480 = vst [vmem:[#allocation95_spill] sm:$0xff] %v4600_v38  ;;  %5482 = vst [vmem:[#allocation96_spill] sm:$0xff] %v4606_v61  ;;  %v1537_v38 = vmul.f32 %v5486_v51, %v961_v59  ;;  %v5490_v61 = vld [vmem:[#allocation7_spill] sm:$0xff]  ;;  %1918 = vperm.xlu0 %2330, %v2454_v31   ;;  %v5493_v30 = vsub.f32 %v3494_v14, %v3898_v15  ;;  %v5494_v36 = vsub.f32 %v3473_v47, %v3898_v15  ;;  %v1667_v12 = vpop.permute.xlu1 %1666 }
 0x166   : > { %5484 = vst [vmem:[#allocation97_spill] sm:$0xff] %v4612_v1  ;;  %v1541_v1 = vmul.f32 %v5490_v61, %v965_v9  ;;  %v5495_v25 = vsub.f32 %v3530_v49, %v3898_v15  ;;  %v5496_v8 = vsub.f32 %v3515_v11, %v3898_v15  ;;  %v5497_v27 = vsub.f32 %v3572_v20, %v3898_v15  ;;  %v1671_v51 = vpop.permute.xlu0 %1670 }
 0x167   : > { %v4636_v59 = vmul.f32 %v4129_v54, %v5493_v30  ;;  %v4642_v4 = vmul.f32 %v4129_v54, %v5494_v36  ;;  %v5499_v33 = vsub.f32 %v3551_v55, %v3898_v15  ;;  %v5500_v21 = vsub.f32 %v3614_v13, %v3898_v15  ;;  %v5508_v30 = vld [vmem:[#allocation102_spill] sm:$0xff] }
 0x168   : > { %v4648_v9 = vmul.f32 %v4129_v54, %v5495_v25  ;;  %v4654_v14 = vmul.f32 %v4129_v54, %v5496_v8  ;;  %v4660_v47 = vmul.f32 %v4129_v54, %v5497_v27  ;;  %v5502_v61 = vsub.f32 %v3593_v46, %v3898_v15  ;;  %v5510_v25 = vld [vmem:[#allocation103_spill] sm:$0xff] }
 0x169   : > { %v4666_v49 = vmul.f32 %v4129_v54, %v5499_v33  ;;  %v4672_v11 = vmul.f32 %v4129_v54, %v5500_v21  ;;  %v5505_v55 = vsub.f32 %v5504_v18, %v3898_v15  ;;  %v5507_v31 = vsub.f32 %v5506_v45, %v3898_v15  ;;  %v2455_v33 = vld [vmem:[%s5263_s1 + $0x240] sm:$0xff]  ;;  %v5512_v21 = vld [vmem:[#allocation104_spill] sm:$0xff] }
 0x16a   : > { %5498 = vst [vmem:[#allocation2_spill] sm:$0xff] %v4660_v47  ;;  %v4678_v20 = vmul.f32 %v4129_v54, %v5502_v61  ;;  %v5509_v36 = vsub.f32 %v5508_v30, %v3898_v15  ;;  %v5511_v8 = vsub.f32 %v5510_v25, %v3898_v15  ;;  %1922 = vperm.xlu1 %2331, %v2455_v33   ;;  %v5516_v30 = vld [vmem:[#allocation106_spill] sm:$0xff] }
 0x16b   : > { %5501 = vst [vmem:[#allocation3_spill] sm:$0xff] %v4672_v11  ;;  %v970_v28 = vmul.f32 %v4129_v54, %v5505_v55  ;;  %v969_v13 = vmul.f32 %v4129_v54, %v5507_v31  ;;  %v5513_v61 = vsub.f32 %v5512_v21, %v3898_v15  ;;  %v5514_v55 = vld [vmem:[#allocation105_spill] sm:$0xff]  ;;  %v2456_v21 = vld [vmem:[%s5263_s1 + $0x248] sm:$0xff] }
 0x16c   : > { %5503 = vst [vmem:[#allocation4_spill] sm:$0xff] %v4678_v20  ;;  %v972_v46 = vmul.f32 %v4129_v54, %v5509_v36  ;;  %v971_v27 = vmul.f32 %v4129_v54, %v5511_v8  ;;  %v5515_v45 = vsub.f32 %v5514_v55, %v3898_v15  ;;  %v5517_v36 = vsub.f32 %v5516_v30, %v3898_v15  ;;  %v5518_v8 = vld [vmem:[#allocation107_spill] sm:$0xff] }
 0x16d   : > { %v974_v18 = vmul.f32 %v4129_v54, %v5513_v61  ;;  %v5519_v11 = vsub.f32 %v5518_v8, %v3898_v15  ;;  %1926 = vperm.xlu0 %2330, %v2456_v21   ;;  %v5520_v61 = vsub.f32 %v3656_v24, %v3898_v15  ;;  %v5526_v8 = vsub.f32 %v3677_v19, %v3898_v15 }
 0x16e   : > { %v973_v31 = vmul.f32 %v4129_v54, %v5515_v45  ;;  %v976_v25 = vmul.f32 %v4129_v54, %v5517_v36  ;;  %v5522_v45 = vsub.f32 %v3635_v56, %v3898_v15  ;;  %v5528_v21 = vsub.f32 %v3740_v0, %v3898_v15 }
 0x16f   : > { %v975_v33 = vmul.f32 %v4129_v54, %v5519_v11  ;;  %v4722_v55 = vmul.f32 %v4129_v54, %v5520_v61  ;;  %v5524_v11 = vsub.f32 %v3698_v32, %v3898_v15  ;;  %v4740_v24 = vmul.f32 %v4129_v54, %v5526_v8  ;;  %v1675_v8 = vpop.permute.xlu1 %1674 }
 0x170   : > { %v4728_v30 = vmul.f32 %v4129_v54, %v5522_v45  ;;  %v4746_v56 = vmul.f32 %v4129_v54, %v5528_v21  ;;  %v5530_v61 = vsub.f32 %v3719_v29, %v3898_v15  ;;  %v5532_v45 = vsub.f32 %v3782_v63, %v3898_v15  ;;  %v1679_v21 = vpop.permute.xlu0 %1678  ;;  %v2457_v63 = vld [vmem:[%s5263_s1 + $0x250] sm:$0xff] }
 0x171   : > { %5521 = vst [vmem:[#allocation5_spill] sm:$0xff] %v4722_v55  ;;  %v4734_v36 = vmul.f32 %v4129_v54, %v5524_v11  ;;  %5527 = vst [vmem:[#allocation8_spill] sm:$0xff] %v4740_v24  ;;  %v5533_v11 = vsub.f32 %v3761_v17, %v3898_v15  ;;  %v5535_v24 = vld [vmem:[#allocation11_spill] sm:$0xff]  ;;  %v5536_v55 = vld [vmem:[#allocation12_spill] sm:$0xff]  ;;  %1930 = vperm.xlu1 %2331, %v2457_v63  }
 0x172   : > { %5523 = vst [vmem:[#allocation6_spill] sm:$0xff] %v4728_v30  ;;  %5529 = vst [vmem:[#allocation9_spill] sm:$0xff] %v4746_v56  ;;  %v4752_v32 = vmul.f32 %v4129_v54, %v5530_v61  ;;  %v1056_v19 = vmul.f32 %v4129_v54, %v5532_v45  ;;  %v5534_v56 = vld [vmem:[#allocation10_spill] sm:$0xff]  ;;  %v1545_v29 = vmul.f32 %v5535_v24, %v969_v13  ;;  %v5537_v61 = vld [vmem:[#allocation13_spill] sm:$0xff] }
 0x173   : > { %5525 = vst [vmem:[#allocation7_spill] sm:$0xff] %v4734_v36  ;;  %v1055_v0 = vmul.f32 %v4129_v54, %v5533_v11  ;;  %v1546_v36 = vmul.f32 %v5534_v56, %v970_v28  ;;  %v1548_v30 = vmul.f32 %v5536_v55, %v972_v46  ;;  %v5538_v45 = vld [vmem:[#allocation14_spill] sm:$0xff]  ;;  %v5539_v17 = vld [vmem:[#allocation15_spill] sm:$0xff]  ;;  %v2458_v13 = vld [vmem:[%s5263_s1 + $0x258] sm:$0xff]  ;;  %v2019_v46 = vadd.f32 %v4450_v43, %v1539_v35  ;;  %v1683_v56 = vpop.permute.xlu1 %1682 }
 0x174   : > { %5531 = vst [vmem:[#allocation98_spill] sm:$0xff] %v4752_v32  ;;  %v1547_v32 = vmul.f32 %v5537_v61, %v971_v27  ;;  %v1550_v20 = vmul.f32 %v5538_v45, %v974_v18  ;;  %v1549_v47 = vmul.f32 %v5539_v17, %v973_v31  ;;  %v4772_v11 = vmul.f32 %v4278_v2, %v1056_v19  ;;  %v2465_v45 = vld [vmem:[%s2596_s8 + $0xa0] sm:$0xff] }
 0x175   : > { %v4775_v28 = vmul.f32 %v4280_v10, %v1055_v0  ;;  %1934 = vperm.xlu0 %2330, %v2458_v13   ;;  %v2018_v2 = vadd.f32 %v4376_v22, %v1538_v52  ;;  %v2017_v10 = vadd.f32 %v4378_v34, %v1537_v38  ;;  %v2020_v27 = vadd.f32 %v4452_v62, %v1540_v5  ;;  %v1687_v22 = vpop.permute.xlu0 %1686  ;;  %v2460_v52 = vld [vmem:[%s5263_s1 + $0x268] sm:$0xff]  ;;  %v5540_v5 = vld [vmem:[#allocation16_spill] sm:$0xff]  ;;  %v5541_v38 = vld [vmem:[#allocation17_spill] sm:$0xff] }
 0x176   : > { %v2021_v18 = vadd.f32 %v4524_v3, %v1541_v1  ;;  %v2022_v31 = vadd.f32 %v4526_v37, %v1542_v7  ;;  %v2023_v55 = vadd.f32 %v4614_v41, %v1543_v6  ;;  %v2024_v24 = vadd.f32 %v4616_v50, %v1544_v23  ;;  %2115 = vst.msk [vmem:[%s4782_s30 + $0x10] sm:$0xff] %vm367_vm0, %v2019_v46  ;;  %v2459_v23 = vld [vmem:[%s5263_s1 + $0x260] sm:$0xff]  ;;  %v5542_v41 = vld [vmem:[#allocation109_spill] sm:$0xff]  ;;  %v2466_v46 = vld [vmem:[%s2596_s8 + $0xa8] sm:$0xff] }
 0x177   : > { %2114 = vst.msk [vmem:[%s4782_s30 + $0x8] sm:$0xff] %vm367_vm0, %v2018_v2  ;;  %2113 = vst.msk [vmem:[%s4782_s30] sm:$0xff] %vm367_vm0, %v2017_v10  ;;  %v2025_v34 = vadd.f32 %v1667_v12, %v1545_v29  ;;  %v2026_v62 = vadd.f32 %v1671_v51, %v1546_v36  ;;  %v2027_v43 = vadd.f32 %v1675_v8, %v1547_v32  ;;  %1938 = vperm.xlu1 %2331, %v2459_v23   ;;  %v2461_v12 = vld [vmem:[%s2596_s8 + $0x90] sm:$0xff]  ;;  %v1691_v36 = vpop.permute.xlu1 %1690  ;;  %v5546_v29 = vld [vmem:[#allocation19_spill] sm:$0xff] }
 0x178   : > { %2116 = vst.msk [vmem:[%s4782_s30 + $0x18] sm:$0xff] %vm367_vm0, %v2020_v27  ;;  %v2028_v37 = vadd.f32 %v1679_v21, %v1548_v30  ;;  %2117 = vst.msk [vmem:[%s4782_s30 + $0x20] sm:$0xff] %vm367_vm0, %v2021_v18  ;;  %v2029_v6 = vadd.f32 %v1683_v56, %v1549_v47  ;;  %v2030_v3 = vadd.f32 %v1687_v22, %v1550_v20  ;;  %v5544_v20 = vld [vmem:[#allocation108_spill] sm:$0xff]  ;;  %v2464_v21 = vld [vmem:[%s5263_s1 + $0x278] sm:$0xff] }
 0x179   : > { %2118 = vst.msk [vmem:[%s4782_s30 + $0x28] sm:$0xff] %vm367_vm0, %v2022_v31  ;;  %2119 = vst.msk [vmem:[%s4782_s30 + $0x30] sm:$0xff] %vm367_vm0, %v2023_v55  ;;  %1942 = vperm.xlu0 %2330, %v2460_v52   ;;  %v1552_v35 = vmul.f32 %v5540_v5, %v976_v25  ;;  %v1551_v1 = vmul.f32 %v5541_v38, %v975_v33  ;;  %v5543_v50 = vsub.f32 %v5542_v41, %v3898_v15  ;;  %v2462_v33 = vld [vmem:[%s2596_s8 + $0x98] sm:$0xff]  ;;  %v1695_v32 = vpop.permute.xlu0 %1694  ;;  %v2463_v8 = vld [vmem:[%s5263_s1 + $0x270] sm:$0xff] }
 0x17a   : > { %2120 = vst.msk [vmem:[%s4782_s30 + $0x38] sm:$0xff] %vm367_vm0, %v2024_v24  ;;  %v883_v47 = vsub.f32 %v2461_v12, %v3898_v15  ;;  %2121 = vst.msk [vmem:[%s4782_s30 + $0x40] sm:$0xff] %vm367_vm0, %v2025_v34  ;;  %v5545_v51 = vsub.f32 %v5544_v20, %v3898_v15  ;;  %v884_v30 = vsub.f32 %v2462_v33, %v3898_v15  ;;  %v5547_v13 = vld [vmem:[#allocation18_spill] sm:$0xff]  ;;  %v2468_v22 = vld [vmem:[%s5263_s1 + $0x288] sm:$0xff] }
 0x17b   : > { %v977_v7 = vmul.f32 %v4129_v54, %v5543_v50  ;;  %2122 = vst.msk [vmem:[%s4782_s30 + $0x48] sm:$0xff] %vm367_vm0, %v2026_v62  ;;  %2123 = vst.msk [vmem:[%s4782_s30 + $0x50] sm:$0xff] %vm367_vm0, %v2027_v43  ;;  %v2031_v19 = vadd.f32 %v1691_v36, %v1551_v1  ;;  %v2032_v0 = vadd.f32 %v1695_v32, %v1552_v35  ;;  %1946 = vperm.xlu1 %2331, %v2463_v8   ;;  %v1699_v18 = vpop.permute.xlu1 %1698  ;;  %v2467_v24 = vld [vmem:[%s5263_s1 + $0x280] sm:$0xff]  ;;  %v5548_v34 = vld [vmem:[#allocation21_spill] sm:$0xff] }
 0x17c   : > { %2124 = vst.msk [vmem:[%s4782_s30 + $0x58] sm:$0xff] %vm367_vm0, %v2028_v37  ;;  %v978_v25 = vmul.f32 %v4129_v54, %v5545_v51  ;;  %2125 = vst.msk [vmem:[%s4782_s30 + $0x60] sm:$0xff] %vm367_vm0, %v2029_v6  ;;  %v979_v63 = vmul.f32 %v4129_v54, %v883_v47  ;;  %v885_v17 = vsub.f32 %v2465_v45, %v3898_v15  ;;  %v2469_v37 = vld [vmem:[%s2596_s8 + $0xb0] sm:$0xff]  ;;  %v2470_v5 = vld [vmem:[%s2596_s8 + $0xb8] sm:$0xff] }
 0x17d   : > { %2126 = vst.msk [vmem:[%s4782_s30 + $0x68] sm:$0xff] %vm367_vm0, %v2030_v3  ;;  %1950 = vperm.xlu0 %2330, %v2464_v21   ;;  %v1553_v61 = vmul.f32 %v5546_v29, %v977_v7  ;;  %2127 = vst.msk [vmem:[%s4782_s30 + $0x70] sm:$0xff] %vm367_vm0, %v2031_v19  ;;  %v980_v10 = vmul.f32 %v4129_v54, %v884_v30  ;;  %v886_v27 = vsub.f32 %v2466_v46, %v3898_v15  ;;  %v1703_v55 = vpop.permute.xlu0 %1702  ;;  %v5549_v6 = vld [vmem:[#allocation20_spill] sm:$0xff]  ;;  %v2472_v12 = vld [vmem:[%s5263_s1 + $0x298] sm:$0xff] }
 0x17e   : > { %2128 = vst.msk [vmem:[%s4782_s30 + $0x78] sm:$0xff] %vm367_vm0, %v2032_v0  ;;  %v1554_v2 = vmul.f32 %v5547_v13, %v978_v25  ;;  %v1555_v62 = vmul.f32 %v5548_v34, %v979_v63  ;;  %v981_v43 = vmul.f32 %v4129_v54, %v885_v17  ;;  %v887_v23 = vsub.f32 %v2469_v37, %v3898_v15  ;;  %v2471_v50 = vld [vmem:[%s5263_s1 + $0x290] sm:$0xff]  ;;  %v5550_v47 = vld [vmem:[#allocation23_spill] sm:$0xff]  ;;  %v2473_v25 = vld [vmem:[%s2596_s8 + $0xc0] sm:$0xff] }
 0x17f   : > { %v2033_v31 = vadd.f32 %v1699_v18, %v1553_v61  ;;  %1954 = vperm.xlu1 %2331, %v2467_v24   ;;  %v1556_v3 = vmul.f32 %v5549_v6, %v980_v10  ;;  %v982_v52 = vmul.f32 %v4129_v54, %v886_v27  ;;  %v888_v35 = vsub.f32 %v2470_v5, %v3898_v15  ;;  %v1707_v38 = vpop.permute.xlu1 %1706  ;;  %v5551_v30 = vld [vmem:[#allocation22_spill] sm:$0xff]  ;;  %v2474_v19 = vld [vmem:[%s2596_s8 + $0xc8] sm:$0xff]  ;;  %v5552_v17 = vld [vmem:[#allocation25_spill] sm:$0xff] }
 0x180   : > { %v2034_v56 = vadd.f32 %v1703_v55, %v1554_v2  ;;  %v2035_v1 = vadd.f32 %v1707_v38, %v1555_v62  ;;  %v1557_v20 = vmul.f32 %v5550_v47, %v981_v43  ;;  %v983_v51 = vmul.f32 %v4129_v54, %v887_v23  ;;  %v2475_v61 = vld [vmem:[%s5263_s1 + $0x2a0] sm:$0xff]  ;;  %v2476_v45 = vld [vmem:[%s5263_s1 + $0x2a8] sm:$0xff]  ;;  %v2477_v10 = vld [vmem:[%s2596_s8 + $0xd0] sm:$0xff] }
 0x181   : > { %1958 = vperm.xlu0 %2330, %v2468_v22   ;;  %2129 = vst.msk [vmem:[%s4782_s30 + $0x80] sm:$0xff] %vm367_vm0, %v2033_v31  ;;  %v1711_v41 = vpop.permute.xlu0 %1710  ;;  %v889_v33 = vsub.f32 %v2473_v25, %v3898_v15  ;;  %v1558_v36 = vmul.f32 %v5551_v30, %v982_v52  ;;  %v984_v32 = vmul.f32 %v4129_v54, %v888_v35  ;;  %v5553_v27 = vld [vmem:[#allocation24_spill] sm:$0xff]  ;;  %v2478_v55 = vld [vmem:[%s2596_s8 + $0xd8] sm:$0xff]  ;;  %v5554_v23 = vld [vmem:[#allocation27_spill] sm:$0xff] }
 0x182   : > { %2130 = vst.msk [vmem:[%s4782_s30 + $0x88] sm:$0xff] %vm367_vm0, %v2034_v56  ;;  %v2036_v7 = vadd.f32 %v1711_v41, %v1556_v3  ;;  %2131 = vst.msk [vmem:[%s4782_s30 + $0x90] sm:$0xff] %vm367_vm0, %v2035_v1  ;;  %v890_v0 = vsub.f32 %v2474_v19, %v3898_v15  ;;  %v1559_v13 = vmul.f32 %v5552_v17, %v983_v51  ;;  %v2479_v62 = vld [vmem:[%s5263_s1 + $0x2b0] sm:$0xff]  ;;  %v2480_v37 = vld [vmem:[%s5263_s1 + $0x2b8] sm:$0xff] }
 0x183   : > { %1962 = vperm.xlu1 %2331, %v2471_v50   ;;  %v1715_v8 = vpop.permute.xlu1 %1714  ;;  %v985_v2 = vmul.f32 %v4129_v54, %v889_v33  ;;  %v891_v46 = vsub.f32 %v2477_v10, %v3898_v15  ;;  %v1560_v18 = vmul.f32 %v5553_v27, %v984_v32  ;;  %v892_v24 = vsub.f32 %v2478_v55, %v3898_v15  ;;  %v2481_v52 = vld [vmem:[%s2596_s8 + $0xe0] sm:$0xff]  ;;  %v2482_v41 = vld [vmem:[%s2596_s8 + $0xe8] sm:$0xff]  ;;  %v5556_v33 = vld [vmem:[#allocation29_spill] sm:$0xff] }
 0x184   : > { %2132 = vst.msk [vmem:[%s4782_s30 + $0x98] sm:$0xff] %vm367_vm0, %v2036_v7  ;;  %v2037_v21 = vadd.f32 %v1715_v8, %v1557_v20  ;;  %v986_v31 = vmul.f32 %v4129_v54, %v890_v0  ;;  %v893_v5 = vsub.f32 %v2481_v52, %v3898_v15  ;;  %v5555_v35 = vld [vmem:[#allocation26_spill] sm:$0xff]  ;;  %v894_v50 = vsub.f32 %v2482_v41, %v3898_v15  ;;  %v2484_v25 = vld [vmem:[%s5263_s1 + $0x2c8] sm:$0xff]  ;;  %v2485_v32 = vld [vmem:[%s2596_s8 + $0xf0] sm:$0xff] }
 0x185   : > { %1966 = vperm.xlu0 %2330, %v2472_v12   ;;  %v1719_v29 = vpop.permute.xlu0 %1718  ;;  %v1561_v6 = vmul.f32 %v5554_v23, %v985_v2  ;;  %v987_v3 = vmul.f32 %v4129_v54, %v891_v46  ;;  %v988_v1 = vmul.f32 %v4129_v54, %v892_v24  ;;  %v2483_v20 = vld [vmem:[%s5263_s1 + $0x2c0] sm:$0xff]  ;;  %v895_v19 = vsub.f32 %v2485_v32, %v3898_v15  ;;  %v5557_v0 = vld [vmem:[#allocation28_spill] sm:$0xff]  ;;  %v2488_v10 = vld [vmem:[%s5263_s1 + $0x2d8] sm:$0xff] }
 0x186   : > { %v2038_v63 = vadd.f32 %v1719_v29, %v1558_v36  ;;  %2133 = vst.msk [vmem:[%s4782_s30 + $0xa0] sm:$0xff] %vm367_vm0, %v2037_v21  ;;  %v1562_v38 = vmul.f32 %v5555_v35, %v986_v31  ;;  %v989_v36 = vmul.f32 %v4129_v54, %v893_v5  ;;  %v990_v21 = vmul.f32 %v4129_v54, %v894_v50  ;;  %v2486_v29 = vld [vmem:[%s2596_s8 + $0xf8] sm:$0xff]  ;;  %v5558_v46 = vld [vmem:[#allocation31_spill] sm:$0xff]  ;;  %v2489_v31 = vld [vmem:[%s2596_s8 + $0x100] sm:$0xff] }
 0x187   : > { %1970 = vperm.xlu1 %2331, %v2475_v61   ;;  %v1723_v56 = vpop.permute.xlu1 %1722  ;;  %v1563_v30 = vmul.f32 %v5556_v33, %v987_v3  ;;  %v1564_v8 = vmul.f32 %v5557_v0, %v988_v1  ;;  %v896_v61 = vsub.f32 %v2486_v29, %v3898_v15  ;;  %v897_v55 = vsub.f32 %v2489_v31, %v3898_v15  ;;  %v5559_v24 = vld [vmem:[#allocation30_spill] sm:$0xff]  ;;  %v2492_v52 = vld [vmem:[%s5263_s1 + $0x2e8] sm:$0xff]  ;;  %v5560_v5 = vld [vmem:[#allocation33_spill] sm:$0xff] }
 0x188   : > { %2134 = vst.msk [vmem:[%s4782_s30 + $0xa8] sm:$0xff] %vm367_vm0, %v2038_v63  ;;  %v2039_v22 = vadd.f32 %v1723_v56, %v1559_v13  ;;  %v2487_v13 = vld [vmem:[%s5263_s1 + $0x2d0] sm:$0xff]  ;;  %v1565_v27 = vmul.f32 %v5558_v46, %v989_v36  ;;  %v1566_v56 = vmul.f32 %v5559_v24, %v990_v21  ;;  %v2496_v32 = vld [vmem:[%s5263_s1 + $0x2f8] sm:$0xff]  ;;  %v2497_v21 = vld [vmem:[%s2596_s8 + $0x120] sm:$0xff] }
 0x189   : > { %1974 = vperm.xlu0 %2330, %v2476_v45   ;;  %v1727_v34 = vpop.permute.xlu0 %1726  ;;  %v2493_v1 = vld [vmem:[%s2596_s8 + $0x110] sm:$0xff]  ;;  %v901_v29 = vsub.f32 %v2497_v21, %v3898_v15 }
 0x18a   : > { %v2040_v43 = vadd.f32 %v1727_v34, %v1560_v18  ;;  %2135 = vst.msk [vmem:[%s4782_s30 + $0xb0] sm:$0xff] %vm367_vm0, %v2039_v22  ;;  %v991_v18 = vmul.f32 %v4129_v54, %v895_v19  ;;  %v992_v22 = vmul.f32 %v4129_v54, %v896_v61  ;;  %v2490_v34 = vld [vmem:[%s2596_s8 + $0x108] sm:$0xff]  ;;  %v899_v41 = vsub.f32 %v2493_v1, %v3898_v15  ;;  %v5561_v50 = vld [vmem:[#allocation32_spill] sm:$0xff]  ;;  %v5563_v61 = vld [vmem:[#allocation34_spill] sm:$0xff] }
 0x18b   : > { %1978 = vperm.xlu1 %2331, %v2479_v62   ;;  %v1731_v7 = vpop.permute.xlu1 %1730  ;;  %v898_v62 = vsub.f32 %v2490_v34, %v3898_v15  ;;  %v5562_v19 = vld [vmem:[#allocation35_spill] sm:$0xff]  ;;  %v5565_v24 = vld [vmem:[#allocation36_spill] sm:$0xff]  ;;  %v5569_v1 = vld [vmem:[#allocation41_spill] sm:$0xff] }
 0x18c   : > { %2136 = vst.msk [vmem:[%s4782_s30 + $0xb8] sm:$0xff] %vm367_vm0, %v2040_v43  ;;  %v2041_v12 = vadd.f32 %v1731_v7, %v1561_v6  ;;  %v2491_v6 = vld [vmem:[%s5263_s1 + $0x2e0] sm:$0xff]  ;;  %v1567_v35 = vmul.f32 %v5560_v5, %v991_v18  ;;  %v1568_v7 = vmul.f32 %v5561_v50, %v992_v22  ;;  %v5564_v18 = vld [vmem:[#allocation37_spill] sm:$0xff] }
 0x18d   : > { %1982 = vperm.xlu0 %2330, %v2480_v37   ;;  %v1735_v47 = vpop.permute.xlu0 %1734  ;;  %v5570_v50 = vld [vmem:[#allocation114_spill] sm:$0xff] }
 0x18e   : > { %v2042_v51 = vadd.f32 %v1735_v47, %v1562_v38  ;;  %2137 = vst.msk [vmem:[%s4782_s30 + $0xc0] sm:$0xff] %vm367_vm0, %v2041_v12  ;;  %v993_v38 = vmul.f32 %v4129_v54, %v897_v55  ;;  %v994_v12 = vmul.f32 %v4129_v54, %v898_v62  ;;  %v2494_v47 = vld [vmem:[%s2596_s8 + $0x118] sm:$0xff]  ;;  %v997_v55 = vmul.f32 %v4129_v54, %v901_v29 }
 0x18f   : > { %1986 = vperm.xlu1 %2331, %v2483_v20   ;;  %v1739_v63 = vpop.permute.xlu1 %1738  ;;  %v900_v20 = vsub.f32 %v2494_v47, %v3898_v15 }
 0x190   : > { %2138 = vst.msk [vmem:[%s4782_s30 + $0xc8] sm:$0xff] %vm367_vm0, %v2042_v51  ;;  %v2043_v45 = vadd.f32 %v1739_v63, %v1563_v30  ;;  %v2495_v30 = vld [vmem:[%s5263_s1 + $0x2f0] sm:$0xff]  ;;  %v1569_v0 = vmul.f32 %v5562_v19, %v993_v38  ;;  %v1570_v63 = vmul.f32 %v5563_v61, %v994_v12  ;;  %v5568_v38 = vld [vmem:[#allocation115_spill] sm:$0xff]  ;;  %v5575_v61 = vld [vmem:[#allocation45_spill] sm:$0xff] }
 0x191   : > { %1990 = vperm.xlu0 %2330, %v2484_v25   ;;  %v1743_v17 = vpop.permute.xlu0 %1742 }
 0x192   : > { %v2044_v2 = vadd.f32 %v1743_v17, %v1564_v8  ;;  %2139 = vst.msk [vmem:[%s4782_s30 + $0xd0] sm:$0xff] %vm367_vm0, %v2043_v45  ;;  %v995_v8 = vmul.f32 %v4129_v54, %v899_v41  ;;  %v996_v45 = vmul.f32 %v4129_v54, %v900_v20  ;;  %v2498_v17 = vld [vmem:[%s2596_s8 + $0x128] sm:$0xff]  ;;  %v1575_v41 = vmul.f32 %v5569_v1, %v5568_v38  ;;  %v5584_v38 = vld [vmem:[#allocation53_spill] sm:$0xff] }
 0x193   : > { %1994 = vperm.xlu1 %2331, %v2487_v13   ;;  %v1747_v43 = vpop.permute.xlu1 %1746  ;;  %v902_v13 = vsub.f32 %v2498_v17, %v3898_v15  ;;  %v1587_v1 = vmul.f32 %v5584_v38, %v4350_v16  ;;  %v5588_v16 = vld [vmem:[#allocation54_spill] sm:$0xff]  ;;  %v5605_v38 = vld [vmem:[#allocation129_spill] sm:$0xff] }
 0x194   : > { %2140 = vst.msk [vmem:[%s4782_s30 + $0xd8] sm:$0xff] %vm367_vm0, %v2044_v2  ;;  %v2045_v37 = vadd.f32 %v1747_v43, %v1565_v27  ;;  %v1571_v31 = vmul.f32 %v5564_v18, %v995_v8 }
 0x195   : > { %1998 = vperm.xlu0 %2330, %v2488_v10   ;;  %v1751_v23 = vpop.permute.xlu0 %1750  ;;  %v998_v22 = vmul.f32 %v4129_v54, %v902_v13 }
 0x196   : > { %v2046_v3 = vadd.f32 %v1751_v23, %v1566_v56  ;;  %2141 = vst.msk [vmem:[%s4782_s30 + $0xe0] sm:$0xff] %vm367_vm0, %v2045_v37  ;;  %v1572_v56 = vmul.f32 %v5565_v24, %v996_v45  ;;  %v5566_v37 = vld [vmem:[#allocation39_spill] sm:$0xff]  ;;  %v5576_v45 = vld [vmem:[#allocation118_spill] sm:$0xff] }
 0x197   : > { %2002 = vperm.xlu1 %2331, %v2491_v6   ;;  %v1755_v51 = vpop.permute.xlu1 %1754  ;;  %v1573_v23 = vmul.f32 %v5566_v37, %v997_v55  ;;  %v5567_v6 = vld [vmem:[#allocation38_spill] sm:$0xff] }
 0x198   : > { %2142 = vst.msk [vmem:[%s4782_s30 + $0xe8] sm:$0xff] %vm367_vm0, %v2046_v3  ;;  %v2047_v25 = vadd.f32 %v1755_v51, %v1567_v35  ;;  %v1574_v3 = vmul.f32 %v5567_v6, %v998_v22  ;;  %v5582_v6 = vld [vmem:[#allocation51_spill] sm:$0xff] }
 0x199   : > { %2006 = vperm.xlu0 %2330, %v2492_v52   ;;  %v1759_v33 = vpop.permute.xlu0 %1758 }
 0x19a   : > { %v2048_v36 = vadd.f32 %v1759_v33, %v1568_v7  ;;  %2143 = vst.msk [vmem:[%s4782_s30 + $0xf0] sm:$0xff] %vm367_vm0, %v2047_v25  ;;  %v5571_v7 = vld [vmem:[#allocation40_spill] sm:$0xff]  ;;  %v5572_v33 = vld [vmem:[#allocation43_spill] sm:$0xff] }
 0x19b   : > { %2010 = vperm.xlu1 %2331, %v2495_v30   ;;  %v1763_v2 = vpop.permute.xlu1 %1762  ;;  %v1576_v12 = vmul.f32 %v5571_v7, %v5570_v50  ;;  %v1577_v30 = vmul.f32 %v5572_v33, %v4264_v60  ;;  %v5577_v60 = vld [vmem:[#allocation44_spill] sm:$0xff] }
 0x19c   : > { %2144 = vst.msk [vmem:[%s4782_s30 + $0xf8] sm:$0xff] %vm367_vm0, %v2048_v36  ;;  %v2049_v10 = vadd.f32 %v1763_v2, %v1569_v0  ;;  %v5573_v36 = vld [vmem:[#allocation117_spill] sm:$0xff]  ;;  %v1580_v17 = vmul.f32 %v5577_v60, %v5576_v45  ;;  %v5593_v60 = vld [vmem:[#allocation123_spill] sm:$0xff] }
 0x19d   : > { %2014 = vperm.xlu0 %2330, %v2496_v32   ;;  %v1767_v46 = vpop.permute.xlu0 %1766  ;;  %v5574_v32 = vld [vmem:[#allocation42_spill] sm:$0xff] }
 0x19e   : > { %v2050_v27 = vadd.f32 %v1767_v46, %v1570_v63  ;;  %2145 = vst.msk [vmem:[%s4782_s30 + $0x100] sm:$0xff] %vm367_vm0, %v2049_v10  ;;  %v1578_v19 = vmul.f32 %v5574_v32, %v5573_v36  ;;  %v1579_v63 = vmul.f32 %v5575_v61, %v4276_v58  ;;  %v5579_v58 = vld [vmem:[#allocation46_spill] sm:$0xff]  ;;  %v5589_v32 = vld [vmem:[#allocation121_spill] sm:$0xff] }
 0x19f   : > { %v1771_v15 = vpop.permute.xlu1 %1770 }
 0x1a0   : > { %2146 = vst.msk [vmem:[%s4782_s30 + $0x108] sm:$0xff] %vm367_vm0, %v2050_v27  ;;  %v2051_v34 = vadd.f32 %v1771_v15, %v1571_v31  ;;  %v5578_v27 = vld [vmem:[#allocation47_spill] sm:$0xff]  ;;  %v1582_v31 = vmul.f32 %v5579_v58, %v4286_v26  ;;  %v5580_v15 = vld [vmem:[#allocation49_spill] sm:$0xff] }
 0x1a1   : > { %v1775_v62 = vpop.permute.xlu0 %1774  ;;  %v1581_v18 = vmul.f32 %v5578_v27, %v4292_v39  ;;  %v5581_v39 = vld [vmem:[#allocation48_spill] sm:$0xff] }
 0x1a2   : > { %v2052_v43 = vadd.f32 %v1775_v62, %v1572_v56  ;;  %2147 = vst.msk [vmem:[%s4782_s30 + $0x110] sm:$0xff] %vm367_vm0, %v2051_v34  ;;  %v1583_v34 = vmul.f32 %v5580_v15, %v4304_v42  ;;  %v1584_v62 = vmul.f32 %v5581_v39, %v4298_v57  ;;  %v5583_v42 = vld [vmem:[#allocation50_spill] sm:$0xff]  ;;  %v5600_v15 = vld [vmem:[#allocation60_spill] sm:$0xff] }
 0x1a3   : > { %v1779_v52 = vpop.permute.xlu1 %1778 }
 0x1a4   : > { %2148 = vst.msk [vmem:[%s4782_s30 + $0x118] sm:$0xff] %vm367_vm0, %v2052_v43  ;;  %v2053_v5 = vadd.f32 %v1779_v52, %v1573_v23  ;;  %v1586_v52 = vmul.f32 %v5583_v42, %v4332_v44  ;;  %v5604_v42 = vld [vmem:[#allocation62_spill] sm:$0xff] }
 0x1a5   : > { %v1783_v54 = vpop.permute.xlu0 %1782 }
 0x1a6   : > { %v2054_v35 = vadd.f32 %v1783_v54, %v1574_v3  ;;  %2149 = vst.msk [vmem:[%s4782_s30 + $0x120] sm:$0xff] %vm367_vm0, %v2053_v5  ;;  %v1585_v3 = vmul.f32 %v5582_v6, %v4338_v53  ;;  %v5585_v53 = vld [vmem:[#allocation52_spill] sm:$0xff] }
 0x1a7   : > { %v1787_v47 = vpop.permute.xlu1 %1786 }
 0x1a8   : > { %2150 = vst.msk [vmem:[%s4782_s30 + $0x128] sm:$0xff] %vm367_vm0, %v2054_v35  ;;  %v2055_v20 = vadd.f32 %v1787_v47, %v1575_v41  ;;  %v1588_v41 = vmul.f32 %v5585_v53, %v4344_v40  ;;  %v5586_v47 = vld [vmem:[#allocation55_spill] sm:$0xff] }
 0x1a9   : > { %v1791_v51 = vpop.permute.xlu0 %1790 }
 0x1aa   : > { %v2056_v25 = vadd.f32 %v1791_v51, %v1576_v12  ;;  %2151 = vst.msk [vmem:[%s4782_s30 + $0x130] sm:$0xff] %vm367_vm0, %v2055_v20  ;;  %v1589_v20 = vmul.f32 %v5586_v47, %v4362_v48  ;;  %v5587_v51 = vld [vmem:[#allocation119_spill] sm:$0xff]  ;;  %v5592_v48 = vld [vmem:[#allocation56_spill] sm:$0xff] }
 0x1ab   : > { %v1795_v0 = vpop.permute.xlu1 %1794 }
 0x1ac   : > { %2152 = vst.msk [vmem:[%s4782_s30 + $0x138] sm:$0xff] %vm367_vm0, %v2056_v25  ;;  %v2057_v8 = vadd.f32 %v1795_v0, %v1577_v30  ;;  %v1590_v25 = vmul.f32 %v5588_v16, %v5587_v51  ;;  %v5609_v51 = vld [vmem:[#allocation131_spill] sm:$0xff] }
 0x1ad   : > { %v1799_v21 = vpop.permute.xlu0 %1798  ;;  %v5610_v16 = vld [vmem:[#allocation67_spill] sm:$0xff] }
 0x1ae   : > { %v2058_v29 = vadd.f32 %v1799_v21, %v1578_v19  ;;  %2153 = vst.msk [vmem:[%s4782_s30 + $0x140] sm:$0xff] %vm367_vm0, %v2057_v8  ;;  %v5590_v19 = vld [vmem:[#allocation57_spill] sm:$0xff]  ;;  %v5591_v8 = vld [vmem:[#allocation120_spill] sm:$0xff] }
 0x1af   : > { %v1803_v13 = vpop.permute.xlu1 %1802  ;;  %v1591_v0 = vmul.f32 %v5590_v19, %v5589_v32  ;;  %v1592_v21 = vmul.f32 %v5592_v48, %v5591_v8  ;;  %v5613_v8 = vld [vmem:[#allocation133_spill] sm:$0xff] }
 0x1b0   : > { %2154 = vst.msk [vmem:[%s4782_s30 + $0x148] sm:$0xff] %vm367_vm0, %v2058_v29  ;;  %v2059_v2 = vadd.f32 %v1803_v13, %v1579_v63  ;;  %v5614_v48 = vld [vmem:[#allocation69_spill] sm:$0xff] }
 0x1b1   : > { %v1807_v10 = vpop.permute.xlu0 %1806 }
 0x1b2   : > { %v2060_v46 = vadd.f32 %v1807_v10, %v1580_v17  ;;  %2155 = vst.msk [vmem:[%s4782_s30 + $0x150] sm:$0xff] %vm367_vm0, %v2059_v2  ;;  %v5594_v17 = vld [vmem:[#allocation59_spill] sm:$0xff]  ;;  %v5595_v2 = vld [vmem:[#allocation122_spill] sm:$0xff] }
 0x1b3   : > { %v1811_v55 = vpop.permute.xlu1 %1810  ;;  %v1593_v13 = vmul.f32 %v5594_v17, %v5593_v60  ;;  %v5596_v10 = vld [vmem:[#allocation58_spill] sm:$0xff] }
 0x1b4   : > { %2156 = vst.msk [vmem:[%s4782_s30 + $0x158] sm:$0xff] %vm367_vm0, %v2060_v46  ;;  %v2061_v24 = vadd.f32 %v1811_v55, %v1581_v18  ;;  %v1594_v46 = vmul.f32 %v5596_v10, %v5595_v2  ;;  %v5597_v55 = vld [vmem:[#allocation125_spill] sm:$0xff]  ;;  %v5617_v2 = vld [vmem:[#allocation116_spill] sm:$0xff]  ;;  %v5618_v10 = vld [vmem:[#allocation71_spill] sm:$0xff] }
 0x1b5   : > { %v1815_v56 = vpop.permute.xlu0 %1814 }
 0x1b6   : > { %v2062_v22 = vadd.f32 %v1815_v56, %v1582_v31  ;;  %2157 = vst.msk [vmem:[%s4782_s30 + $0x160] sm:$0xff] %vm367_vm0, %v2061_v24  ;;  %v5598_v24 = vld [vmem:[#allocation61_spill] sm:$0xff] }
 0x1b7   : > { %v1819_v26 = vpop.permute.xlu1 %1818  ;;  %v1595_v56 = vmul.f32 %v5598_v24, %v5597_v55 }
 0x1b8   : > { %2158 = vst.msk [vmem:[%s4782_s30 + $0x168] sm:$0xff] %vm367_vm0, %v2062_v22  ;;  %v2063_v43 = vadd.f32 %v1819_v26, %v1583_v34  ;;  %v5599_v22 = vld [vmem:[#allocation124_spill] sm:$0xff] }
 0x1b9   : > { %v1823_v37 = vpop.permute.xlu0 %1822  ;;  %v1596_v34 = vmul.f32 %v5600_v15, %v5599_v22  ;;  %v5621_v22 = vld [vmem:[#allocation136_spill] sm:$0xff]  ;;  %v5622_v15 = vld [vmem:[#allocation73_spill] sm:$0xff] }
 0x1ba   : > { %v2064_v23 = vadd.f32 %v1823_v37, %v1584_v62  ;;  %2159 = vst.msk [vmem:[%s4782_s30 + $0x170] sm:$0xff] %vm367_vm0, %v2063_v43  ;;  %v5601_v37 = vld [vmem:[#allocation127_spill] sm:$0xff] }
 0x1bb   : > { %v1827_v57 = vpop.permute.xlu1 %1826 }
 0x1bc   : > { %2160 = vst.msk [vmem:[%s4782_s30 + $0x178] sm:$0xff] %vm367_vm0, %v2064_v23  ;;  %v2065_v5 = vadd.f32 %v1827_v57, %v1585_v3  ;;  %v5602_v23 = vld [vmem:[#allocation63_spill] sm:$0xff]  ;;  %v5603_v3 = vld [vmem:[#allocation126_spill] sm:$0xff] }
 0x1bd   : > { %v1831_v54 = vpop.permute.xlu0 %1830  ;;  %v1597_v6 = vmul.f32 %v5602_v23, %v5601_v37 }
 0x1be   : > { %v2066_v35 = vadd.f32 %v1831_v54, %v1586_v52  ;;  %2161 = vst.msk [vmem:[%s4782_s30 + $0x180] sm:$0xff] %vm367_vm0, %v2065_v5  ;;  %v1598_v52 = vmul.f32 %v5604_v42, %v5603_v3  ;;  %v5625_v3 = vld [vmem:[#allocation91_spill] sm:$0xff] }
 0x1bf   : > { %v1835_v44 = vpop.permute.xlu1 %1834  ;;  %v5626_v42 = vld [vmem:[#allocation75_spill] sm:$0xff] }
 0x1c0   : > { %2162 = vst.msk [vmem:[%s4782_s30 + $0x188] sm:$0xff] %vm367_vm0, %v2066_v35  ;;  %v2067_v50 = vadd.f32 %v1835_v44, %v1587_v1  ;;  %v5606_v1 = vld [vmem:[#allocation65_spill] sm:$0xff]  ;;  %v5608_v44 = vld [vmem:[#allocation64_spill] sm:$0xff] }
 0x1c1   : > { %v1839_v7 = vpop.permute.xlu0 %1838  ;;  %v1599_v53 = vmul.f32 %v5606_v1, %v5605_v38 }
 0x1c2   : > { %v2068_v12 = vadd.f32 %v1839_v7, %v1588_v41  ;;  %2163 = vst.msk [vmem:[%s4782_s30 + $0x190] sm:$0xff] %vm367_vm0, %v2067_v50  ;;  %v5607_v41 = vld [vmem:[#allocation128_spill] sm:$0xff] }
 0x1c3   : > { %v1843_v40 = vpop.permute.xlu1 %1842  ;;  %v1600_v50 = vmul.f32 %v5608_v44, %v5607_v41  ;;  %v5629_v41 = vld [vmem:[#allocation93_spill] sm:$0xff] }
 0x1c4   : > { %2164 = vst.msk [vmem:[%s4782_s30 + $0x198] sm:$0xff] %vm367_vm0, %v2068_v12  ;;  %v2069_v33 = vadd.f32 %v1843_v40, %v1589_v20  ;;  %v5611_v40 = vld [vmem:[#allocation130_spill] sm:$0xff]  ;;  %v5630_v44 = vld [vmem:[#allocation77_spill] sm:$0xff] }
 0x1c5   : > { %v1847_v30 = vpop.permute.xlu0 %1846 }
 0x1c6   : > { %v2070_v36 = vadd.f32 %v1847_v30, %v1590_v25  ;;  %2165 = vst.msk [vmem:[%s4782_s30 + $0x1a0] sm:$0xff] %vm367_vm0, %v2069_v33  ;;  %v1601_v25 = vmul.f32 %v5610_v16, %v5609_v51  ;;  %v5612_v33 = vld [vmem:[#allocation66_spill] sm:$0xff] }
 0x1c7   : > { %v1851_v29 = vpop.permute.xlu1 %1850  ;;  %v1602_v30 = vmul.f32 %v5612_v33, %v5611_v40  ;;  %v5633_v40 = vld [vmem:[#allocation95_spill] sm:$0xff] }
 0x1c8   : > { %2166 = vst.msk [vmem:[%s4782_s30 + $0x1a8] sm:$0xff] %vm367_vm0, %v2070_v36  ;;  %v2071_v61 = vadd.f32 %v1851_v29, %v1591_v0  ;;  %v5615_v29 = vld [vmem:[#allocation132_spill] sm:$0xff]  ;;  %v5634_v33 = vld [vmem:[#allocation79_spill] sm:$0xff] }
 0x1c9   : > { %v1855_v63 = vpop.permute.xlu0 %1854 }
 0x1ca   : > { %v2072_v45 = vadd.f32 %v1855_v63, %v1592_v21  ;;  %2167 = vst.msk [vmem:[%s4782_s30 + $0x1b0] sm:$0xff] %vm367_vm0, %v2071_v61  ;;  %v1603_v21 = vmul.f32 %v5614_v48, %v5613_v8  ;;  %v5616_v61 = vld [vmem:[#allocation68_spill] sm:$0xff] }
 0x1cb   : > { %v1859_v27 = vpop.permute.xlu1 %1858  ;;  %v1604_v63 = vmul.f32 %v5616_v61, %v5615_v29  ;;  %v5637_v29 = vld [vmem:[#allocation97_spill] sm:$0xff] }
 0x1cc   : > { %2168 = vst.msk [vmem:[%s4782_s30 + $0x1b8] sm:$0xff] %vm367_vm0, %v2072_v45  ;;  %v2073_v18 = vadd.f32 %v1859_v27, %v1593_v13  ;;  %v5619_v27 = vld [vmem:[#allocation134_spill] sm:$0xff]  ;;  %v5638_v61 = vld [vmem:[#allocation81_spill] sm:$0xff] }
 0x1cd   : > { %v1863_v58 = vpop.permute.xlu0 %1862 }
 0x1ce   : > { %v2074_v31 = vadd.f32 %v1863_v58, %v1594_v46  ;;  %2169 = vst.msk [vmem:[%s4782_s30 + $0x1c0] sm:$0xff] %vm367_vm0, %v2073_v18  ;;  %v1605_v46 = vmul.f32 %v5618_v10, %v5617_v2  ;;  %v5620_v18 = vld [vmem:[#allocation70_spill] sm:$0xff] }
 0x1cf   : > { %v1867_v39 = vpop.permute.xlu1 %1866  ;;  %v1606_v58 = vmul.f32 %v5620_v18, %v5619_v27  ;;  %v5641_v27 = vld [vmem:[#allocation83_spill] sm:$0xff] }
 0x1d0   : > { %2170 = vst.msk [vmem:[%s4782_s30 + $0x1c8] sm:$0xff] %vm367_vm0, %v2074_v31  ;;  %v2075_v62 = vadd.f32 %v1867_v39, %v1595_v56  ;;  %v5623_v39 = vld [vmem:[#allocation135_spill] sm:$0xff]  ;;  %v1617_v18 = vmul.f32 %v5641_v27, %v4642_v4  ;;  %v5644_v4 = vld [vmem:[#allocation84_spill] sm:$0xff] }
 0x1d1   : > { %v1871_v26 = vpop.permute.xlu0 %1870 }
 0x1d2   : > { %v2076_v43 = vadd.f32 %v1871_v26, %v1596_v34  ;;  %2171 = vst.msk [vmem:[%s4782_s30 + $0x1d0] sm:$0xff] %vm367_vm0, %v2075_v62  ;;  %v1607_v34 = vmul.f32 %v5622_v15, %v5621_v22  ;;  %v5624_v62 = vld [vmem:[#allocation72_spill] sm:$0xff]  ;;  %v5643_v15 = vld [vmem:[#allocation85_spill] sm:$0xff] }
 0x1d3   : > { %v1875_v57 = vpop.permute.xlu1 %1874  ;;  %v1608_v26 = vmul.f32 %v5624_v62, %v5623_v39  ;;  %v1620_v39 = vmul.f32 %v5644_v4, %v4648_v9 }
 0x1d4   : > { %2172 = vst.msk [vmem:[%s4782_s30 + $0x1d8] sm:$0xff] %vm367_vm0, %v2076_v43  ;;  %v2077_v5 = vadd.f32 %v1875_v57, %v1597_v6  ;;  %v5627_v57 = vld [vmem:[#allocation90_spill] sm:$0xff] }
 0x1d5   : > { %v1879_v54 = vpop.permute.xlu0 %1878 }
 0x1d6   : > { %v2078_v35 = vadd.f32 %v1879_v54, %v1598_v52  ;;  %2173 = vst.msk [vmem:[%s4782_s30 + $0x1e0] sm:$0xff] %vm367_vm0, %v2077_v5  ;;  %v1609_v52 = vmul.f32 %v5626_v42, %v5625_v3  ;;  %v5628_v5 = vld [vmem:[#allocation74_spill] sm:$0xff] }
 0x1d7   : > { %v1883_v7 = vpop.permute.xlu1 %1882  ;;  %v1610_v54 = vmul.f32 %v5628_v5, %v5627_v57  ;;  %v5648_v5 = vld [vmem:[#allocation4_spill] sm:$0xff] }
 0x1d8   : > { %2174 = vst.msk [vmem:[%s4782_s30 + $0x1e8] sm:$0xff] %vm367_vm0, %v2078_v35  ;;  %v2079_v12 = vadd.f32 %v1883_v7, %v1599_v53  ;;  %v5631_v7 = vld [vmem:[#allocation92_spill] sm:$0xff] }
 0x1d9   : > { %v1887_v47 = vpop.permute.xlu0 %1886 }
 0x1da   : > { %v2080_v20 = vadd.f32 %v1887_v47, %v1600_v50  ;;  %2175 = vst.msk [vmem:[%s4782_s30 + $0x1f0] sm:$0xff] %vm367_vm0, %v2079_v12  ;;  %v1611_v50 = vmul.f32 %v5630_v44, %v5629_v41  ;;  %v5632_v12 = vld [vmem:[#allocation76_spill] sm:$0xff] }
 0x1db   : > { %v1891_v36 = vpop.permute.xlu1 %1890  ;;  %v1612_v47 = vmul.f32 %v5632_v12, %v5631_v7  ;;  %v5652_v7 = vld [vmem:[#allocation6_spill] sm:$0xff]  ;;  %v5653_v12 = vld [vmem:[#allocation101_spill] sm:$0xff] }
 0x1dc   : > { %2176 = vst.msk [vmem:[%s4782_s30 + $0x1f8] sm:$0xff] %vm367_vm0, %v2080_v20  ;;  %v2081_v32 = vadd.f32 %v1891_v36, %v1601_v25  ;;  %v5635_v36 = vld [vmem:[#allocation94_spill] sm:$0xff] }
 0x1dd   : > { %v1895_v19 = vpop.permute.xlu0 %1894 }
 0x1de   : > { %v2082_v0 = vadd.f32 %v1895_v19, %v1602_v30  ;;  %2177 = vst.msk [vmem:[%s4782_s30 + $0x200] sm:$0xff] %vm367_vm0, %v2081_v32  ;;  %v1613_v30 = vmul.f32 %v5634_v33, %v5633_v40  ;;  %v5636_v32 = vld [vmem:[#allocation78_spill] sm:$0xff] }
 0x1df   : > { %v1899_v45 = vpop.permute.xlu1 %1898  ;;  %v1614_v19 = vmul.f32 %v5636_v32, %v5635_v36  ;;  %v5656_v36 = vld [vmem:[#allocation8_spill] sm:$0xff]  ;;  %v5657_v32 = vld [vmem:[#allocation111_spill] sm:$0xff] }
 0x1e0   : > { %2178 = vst.msk [vmem:[%s4782_s30 + $0x208] sm:$0xff] %vm367_vm0, %v2082_v0  ;;  %v2083_v60 = vadd.f32 %v1899_v45, %v1603_v21  ;;  %v5639_v45 = vld [vmem:[#allocation96_spill] sm:$0xff] }
 0x1e1   : > { %v1903_v17 = vpop.permute.xlu0 %1902 }
 0x1e2   : > { %v2084_v13 = vadd.f32 %v1903_v17, %v1604_v63  ;;  %2179 = vst.msk [vmem:[%s4782_s30 + $0x210] sm:$0xff] %vm367_vm0, %v2083_v60  ;;  %v1615_v63 = vmul.f32 %v5638_v61, %v5637_v29  ;;  %v5640_v60 = vld [vmem:[#allocation80_spill] sm:$0xff] }
 0x1e3   : > { %v1907_v31 = vpop.permute.xlu1 %1906  ;;  %v1616_v17 = vmul.f32 %v5640_v60, %v5639_v45  ;;  %v5660_v45 = vld [vmem:[#allocation98_spill] sm:$0xff]  ;;  %v5661_v60 = vld [vmem:[#allocation113_spill] sm:$0xff] }
 0x1e4   : > { %2180 = vst.msk [vmem:[%s4782_s30 + $0x218] sm:$0xff] %vm367_vm0, %v2084_v13  ;;  %v2085_v55 = vadd.f32 %v1907_v31, %v1605_v46 }
 0x1e5   : > { %v1911_v24 = vpop.permute.xlu0 %1910 }
 0x1e6   : > { %v2086_v56 = vadd.f32 %v1911_v24, %v1606_v58  ;;  %2181 = vst.msk [vmem:[%s4782_s30 + $0x220] sm:$0xff] %vm367_vm0, %v2085_v55  ;;  %v5642_v58 = vld [vmem:[#allocation82_spill] sm:$0xff] }
 0x1e7   : > { %v1915_v43 = vpop.permute.xlu1 %1914  ;;  %v1618_v31 = vmul.f32 %v5642_v58, %v4636_v59 }
 0x1e8   : > { %2182 = vst.msk [vmem:[%s4782_s30 + $0x228] sm:$0xff] %vm367_vm0, %v2086_v56  ;;  %v2087_v37 = vadd.f32 %v1915_v43, %v1607_v34  ;;  %v1619_v34 = vmul.f32 %v5643_v15, %v4654_v14  ;;  %v5647_v14 = vld [vmem:[#allocation86_spill] sm:$0xff] }
 0x1e9   : > { %v1919_v23 = vpop.permute.xlu0 %1918 }
 0x1ea   : > { %v2088_v6 = vadd.f32 %v1919_v23, %v1608_v26  ;;  %2183 = vst.msk [vmem:[%s4782_s30 + $0x230] sm:$0xff] %vm367_vm0, %v2087_v37  ;;  %v5645_v37 = vld [vmem:[#allocation87_spill] sm:$0xff] }
 0x1eb   : > { %v1923_v35 = vpop.permute.xlu1 %1922  ;;  %v1621_v23 = vmul.f32 %v5645_v37, %v4666_v49  ;;  %v5651_v49 = vld [vmem:[#allocation88_spill] sm:$0xff] }
 0x1ec   : > { %2184 = vst.msk [vmem:[%s4782_s30 + $0x238] sm:$0xff] %vm367_vm0, %v2088_v6  ;;  %v2089_v38 = vadd.f32 %v1923_v35, %v1609_v52  ;;  %v5646_v6 = vld [vmem:[#allocation2_spill] sm:$0xff] }
 0x1ed   : > { %v1927_v1 = vpop.permute.xlu0 %1926  ;;  %v1622_v3 = vmul.f32 %v5647_v14, %v5646_v6 }
 0x1ee   : > { %v2090_v53 = vadd.f32 %v1927_v1, %v1610_v54  ;;  %2185 = vst.msk [vmem:[%s4782_s30 + $0x240] sm:$0xff] %vm367_vm0, %v2089_v38  ;;  %v5649_v54 = vld [vmem:[#allocation89_spill] sm:$0xff]  ;;  %v5650_v38 = vld [vmem:[#allocation3_spill] sm:$0xff] }
 0x1ef   : > { %v1623_v35 = vmul.f32 %v5649_v54, %v5648_v5  ;;  %v1624_v1 = vmul.f32 %v5651_v49, %v5650_v38 }
 0x1f0   : > { %2186 = vst.msk [vmem:[%s4782_s30 + $0x248] sm:$0xff] %vm367_vm0, %v2090_v53  ;;  %v1931_v20 = vpop.permute.xlu1 %1930 }
 0x1f1   : > { %v2091_v51 = vadd.f32 %v1931_v20, %v1611_v50  ;;  %v5654_v20 = vld [vmem:[#allocation5_spill] sm:$0xff] }
 0x1f3   : > { %2187 = vst.msk [vmem:[%s4782_s30 + $0x250] sm:$0xff] %vm367_vm0, %v2091_v51  ;;  %v5655_v51 = vld [vmem:[#allocation100_spill] sm:$0xff] }
 0x1f4   : > { %v1935_v16 = vpop.permute.xlu0 %1934 }
 0x1f5   : > { %v2092_v25 = vadd.f32 %v1935_v16, %v1612_v47  ;;  %v1625_v47 = vmul.f32 %v5653_v12, %v5652_v7  ;;  %v1626_v16 = vmul.f32 %v5655_v51, %v5654_v20 }
 0x1f6   : > { %v1939_v0 = vpop.permute.xlu1 %1938 }
 0x1f7   : > { %2188 = vst.msk [vmem:[%s4782_s30 + $0x258] sm:$0xff] %vm367_vm0, %v2092_v25  ;;  %v2093_v8 = vadd.f32 %v1939_v0, %v1613_v30  ;;  %v5658_v0 = vld [vmem:[#allocation7_spill] sm:$0xff] }
 0x1f8   : > { %v1943_v48 = vpop.permute.xlu0 %1942 }
 0x1f9   : > { %v2094_v21 = vadd.f32 %v1943_v48, %v1614_v19  ;;  %2189 = vst.msk [vmem:[%s4782_s30 + $0x260] sm:$0xff] %vm367_vm0, %v2093_v8  ;;  %v1627_v19 = vmul.f32 %v5657_v32, %v5656_v36  ;;  %v5659_v8 = vld [vmem:[#allocation110_spill] sm:$0xff] }
 0x1fa   : > { %v1947_v13 = vpop.permute.xlu1 %1946  ;;  %v1628_v48 = vmul.f32 %v5659_v8, %v5658_v0 }
 0x1fb   : > { %2190 = vst.msk [vmem:[%s4782_s30 + $0x268] sm:$0xff] %vm367_vm0, %v2094_v21  ;;  %v2095_v2 = vadd.f32 %v1947_v13, %v1615_v63  ;;  %v5662_v13 = vld [vmem:[#allocation9_spill] sm:$0xff] }
 0x1fc   : > { %v1951_v10 = vpop.permute.xlu0 %1950 }
 0x1fd   : > { %v2096_v46 = vadd.f32 %v1951_v10, %v1616_v17  ;;  %2191 = vst.msk [vmem:[%s4782_s30 + $0x270] sm:$0xff] %vm367_vm0, %v2095_v2  ;;  %v1629_v17 = vmul.f32 %v5661_v60, %v5660_v45  ;;  %v5663_v2 = vld [vmem:[#allocation112_spill] sm:$0xff] }
 0x1fe   : > { %v1955_v55 = vpop.permute.xlu1 %1954  ;;  %v1630_v10 = vmul.f32 %v5663_v2, %v5662_v13 }
 0x1ff   : > { %2192 = vst.msk [vmem:[%s4782_s30 + $0x278] sm:$0xff] %vm367_vm0, %v2096_v46  ;;  %v2097_v24 = vadd.f32 %v1955_v55, %v1617_v18 }
 0x200   : > { %v1959_v56 = vpop.permute.xlu0 %1958 }
 0x201   : > { %v2098_v22 = vadd.f32 %v1959_v56, %v1618_v31  ;;  %2193 = vst.msk [vmem:[%s4782_s30 + $0x280] sm:$0xff] %vm367_vm0, %v2097_v24 }
 0x202   : > { %v1963_v59 = vpop.permute.xlu1 %1962 }
 0x203   : > { %2194 = vst.msk [vmem:[%s4782_s30 + $0x288] sm:$0xff] %vm367_vm0, %v2098_v22  ;;  %v2099_v62 = vadd.f32 %v1963_v59, %v1619_v34 }
 0x204   : > { %v1967_v26 = vpop.permute.xlu0 %1966 }
 0x205   : > { %v2100_v43 = vadd.f32 %v1967_v26, %v1620_v39  ;;  %2195 = vst.msk [vmem:[%s4782_s30 + $0x290] sm:$0xff] %vm367_vm0, %v2099_v62 }
 0x206   : > { %v1971_v9 = vpop.permute.xlu1 %1970 }
 0x207   : > { %2196 = vst.msk [vmem:[%s4782_s30 + $0x298] sm:$0xff] %vm367_vm0, %v2100_v43  ;;  %v2101_v42 = vadd.f32 %v1971_v9, %v1621_v23 }
 0x208   : > { %v1975_v52 = vpop.permute.xlu0 %1974 }
 0x209   : > { %v2102_v57 = vadd.f32 %v1975_v52, %v1622_v3  ;;  %2197 = vst.msk [vmem:[%s4782_s30 + $0x2a0] sm:$0xff] %vm367_vm0, %v2101_v42 }
 0x20a   : > { %v1979_v53 = vpop.permute.xlu1 %1978 }
 0x20b   : > { %2198 = vst.msk [vmem:[%s4782_s30 + $0x2a8] sm:$0xff] %vm367_vm0, %v2102_v57  ;;  %v2103_v41 = vadd.f32 %v1979_v53, %v1623_v35 }
 0x20c   : > { %v1983_v44 = vpop.permute.xlu0 %1982 }
 0x20d   : > { %v2104_v50 = vadd.f32 %v1983_v44, %v1624_v1  ;;  %2199 = vst.msk [vmem:[%s4782_s30 + $0x2b0] sm:$0xff] %vm367_vm0, %v2103_v41 }
 0x20e   : > { %v1987_v25 = vpop.permute.xlu1 %1986 }
 0x20f   : > { %2200 = vst.msk [vmem:[%s4782_s30 + $0x2b8] sm:$0xff] %vm367_vm0, %v2104_v50  ;;  %v2105_v40 = vadd.f32 %v1987_v25, %v1625_v47 }
 0x210   : > { %v1991_v33 = vpop.permute.xlu0 %1990 }
 0x211   : > { %v2106_v30 = vadd.f32 %v1991_v33, %v1626_v16  ;;  %2201 = vst.msk [vmem:[%s4782_s30 + $0x2c0] sm:$0xff] %vm367_vm0, %v2105_v40 }
 0x212   : > { %v1995_v21 = vpop.permute.xlu1 %1994 }
 0x213   : > { %2202 = vst.msk [vmem:[%s4782_s30 + $0x2c8] sm:$0xff] %vm367_vm0, %v2106_v30  ;;  %v2107_v29 = vadd.f32 %v1995_v21, %v1627_v19 }
 0x214   : > { %v1999_v61 = vpop.permute.xlu0 %1998 }
 0x215   : > { %v2108_v63 = vadd.f32 %v1999_v61, %v1628_v48  ;;  %2203 = vst.msk [vmem:[%s4782_s30 + $0x2d0] sm:$0xff] %vm367_vm0, %v2107_v29 }
 0x216   : > { %v2003_v46 = vpop.permute.xlu1 %2002 }
 0x217   : > { %2204 = vst.msk [vmem:[%s4782_s30 + $0x2d8] sm:$0xff] %vm367_vm0, %v2108_v63  ;;  %v2109_v27 = vadd.f32 %v2003_v46, %v1629_v17 }
 0x218   : > { %v2007_v18 = vpop.permute.xlu0 %2006 }
 0x219   : > { %v2110_v58 = vadd.f32 %v2007_v18, %v1630_v10  ;;  %2205 = vst.msk [vmem:[%s4782_s30 + $0x2e0] sm:$0xff] %vm367_vm0, %v2109_v27 }
 0x21a   : > { %v2011_v31 = vpop.permute.xlu1 %2010 }
 0x21b   : > { %2206 = vst.msk [vmem:[%s4782_s30 + $0x2e8] sm:$0xff] %vm367_vm0, %v2110_v58  ;;  %v2111_v55 = vadd.f32 %v2011_v31, %v4775_v28 }
 0x21c   : > { %v2015_v24 = vpop.permute.xlu0 %2014 }
 0x21d   : > { %v2112_v56 = vadd.f32 %v2015_v24, %v4772_v11  ;;  %2207 = vst.msk [vmem:[%s4782_s30 + $0x2f0] sm:$0xff] %vm367_vm0, %v2111_v55 }
 0x21f   : > { %2208 = vst.msk [vmem:[%s4782_s30 + $0x2f8] sm:$0xff] %vm367_vm0, %v2112_v56 }
 0x220 PF: > { %s12_s11 = sadd.s32 1, %s2521_s11   ;;  %s5664_s9 = smov %s2517_s10 }
 0x221   : > { %p9_p5 = scmp.ge.s32.totalorder %s12_s11, 4   ;;  %s5665_s10 = smov %s5667_s12 }
 0x223   :  { %11 = sbr.rel (!%p9_p5) target bundleno = 2 (0x2), region = 58 }

</bundles_post_ra>
